<compile_context>
chip_gen: v6e
topology: v6e:2x2x1
jax: 0.10.0
libtpu: 0.0.40
codegen_flags: <defaults>
</compile_context>

<pallas_src>
import fnmatch
from functools import partial

import numpy as np
import jax
import jax.numpy as jnp
from jax import lax
from jax.experimental import pallas as pl
from jax.experimental.pallas import tpu as pltpu

# ----------------------------- configuration --------------------------------
B = 2                     # batch
H = 2                     # horizon (<= max_horizon)
D = 32                    # token_embedding_size
NUM_LAYERS = 2
NUM_HEADS = 2
HEAD_DIM = D // NUM_HEADS
MLP_DIM = 64
MAX_HORIZON_DIM = 4       # positional-embedding table length

NUM_TOKENS = {'primary': 8, 'wrist': 4, 'language': 4, 'action': 1}
TASK_TOK_DIM = {'language': 16}
OBS_TOK_DIM = {'primary': 24, 'wrist': 24}
READOUTS = {'action': 1}

N_LANG = NUM_TOKENS['language']
N_PRIM = NUM_TOKENS['primary']
N_WRIST = NUM_TOKENS['wrist']
N_READ = READOUTS['action']
T_PER_STEP = N_PRIM + N_WRIST + N_READ            # 13 tokens per timestep
L = N_LANG + H * T_PER_STEP                       # 30 real tokens
L_PAD = ((L + 7) // 8) * 8                        # 32 (sublane multiple)
LN_EPS = 1e-6
NEG_INF = -1e9
TASK_FEAT = TASK_TOK_DIM['language']              # 16
OBS_FEAT = OBS_TOK_DIM['primary']                 # 24
VPL = 9                                           # vector-slab rows per layer

PREFIX_GROUPS = [
    ('task_language', N_LANG, {'task_*': 'causal'}),
]
TIMESTEP_GROUPS = [
    ('obs_primary', N_PRIM, {'task_*': 'causal', 'obs_*': 'causal'}),
    ('obs_wrist', N_WRIST, {'task_*': 'causal', 'obs_*': 'causal'}),
    ('readout_action', N_READ,
     {'task_*': 'causal', 'obs_*': 'causal', 'readout_action': 'causal'}),
]


# ------------------------------ parameters ----------------------------------
def init_params(key):
    keys = iter(jax.random.split(key, 32))

    def dense_w(din, dout):
        return jax.random.normal(next(keys), (din, dout), jnp.float32) / np.sqrt(din)

    p = {}
    p['task_language_projection_w'] = dense_w(TASK_FEAT, D)
    p['task_language_projection_b'] = jnp.zeros((1, D), jnp.float32)
    for name in ('primary', 'wrist'):
        p[f'obs_{name}_projection_w'] = dense_w(OBS_TOK_DIM[name], D)
        p[f'obs_{name}_projection_b'] = jnp.zeros((1, D), jnp.float32)

    p['task_language_pos_embedding'] = (
        jax.random.normal(next(keys), (N_LANG, D)) * 0.02)
    p['obs_primary_pos_embedding'] = (
        jax.random.normal(next(keys), (MAX_HORIZON_DIM, N_PRIM, D)) * 0.02)
    p['obs_wrist_pos_embedding'] = (
        jax.random.normal(next(keys), (MAX_HORIZON_DIM, N_WRIST, D)) * 0.02)
    p['readout_action_pos_embedding'] = (
        jax.random.normal(next(keys), (MAX_HORIZON_DIM, N_READ, D)) * 0.02)

    def stack_w(din, dout):
        return jnp.stack([dense_w(din, dout) for _ in range(NUM_LAYERS)])

    def zeros_b(d):
        return jnp.zeros((NUM_LAYERS, 1, d), jnp.float32)

    p['wq'] = stack_w(D, D); p['bq'] = zeros_b(D)
    p['wk'] = stack_w(D, D); p['bk'] = zeros_b(D)
    p['wv'] = stack_w(D, D); p['bv'] = zeros_b(D)
    p['wo'] = stack_w(D, D); p['bo'] = zeros_b(D)
    p['w1'] = stack_w(D, MLP_DIM); p['b1'] = zeros_b(MLP_DIM)
    p['w2'] = stack_w(MLP_DIM, D); p['b2'] = zeros_b(D)
    p['ln1_s'] = jnp.ones((NUM_LAYERS, 1, D)); p['ln1_b'] = jnp.zeros((NUM_LAYERS, 1, D))
    p['ln2_s'] = jnp.ones((NUM_LAYERS, 1, D)); p['ln2_b'] = jnp.zeros((NUM_LAYERS, 1, D))
    p['lnf_s'] = jnp.ones((1, D)); p['lnf_b'] = jnp.zeros((1, D))
    return p


# ------------------- blockwise-causal attention-rule mask --------------------
def build_rule_mask(horizon):
    meta = []
    for name, n, rules in PREFIX_GROUPS:
        meta += [(name, -1, rules)] * n
    for t in range(horizon):
        for name, n, rules in TIMESTEP_GROUPS:
            meta += [(name, t, rules)] * n
    ll = len(meta)
    m = np.zeros((ll, ll), dtype=bool)
    for i in range(ll):
        _, qt, qrules = meta[i]
        for j in range(ll):
            kname, kt, _ = meta[j]
            rule = None
            for pat, r in qrules.items():
                if fnmatch.fnmatch(kname, pat):
                    rule = r
                    break
            if rule == 'causal':
                m[i, j] = kt <= qt
    return m


def build_rule_add():
    rule = np.zeros((L_PAD, L_PAD), dtype=bool)
    rule[:L, :L] = build_rule_mask(H)
    return np.where(rule, 0.0, NEG_INF).astype(np.float32)


def build_scatter():
    """(L_PAD, 28) 0/1 matrices placing projected tokens at their sequence rows.
    Columns: [0:4] language, [4:20] primary (t-major), [20:28] wrist (t-major)."""
    scat = np.zeros((L_PAD, N_LANG + H * N_PRIM + H * N_WRIST), np.float32)
    for j in range(N_LANG):
        scat[j, j] = 1.0
    for t in range(H):
        base = N_LANG + t * T_PER_STEP
        for j in range(N_PRIM):
            scat[base + j, N_LANG + t * N_PRIM + j] = 1.0
        for j in range(N_WRIST):
            scat[base + N_PRIM + j, N_LANG + H * N_PRIM + t * N_WRIST + j] = 1.0
    return scat


# --------------------- host-side one-time operand packing --------------------
def pack_params(params):
    f32 = jnp.float32

    # projection weights: (3, 24, 32); row 0 holds the (16,32) language proj
    projw = jnp.zeros((3, OBS_FEAT, D), f32)
    projw = projw.at[0, :TASK_FEAT, :].set(params['task_language_projection_w'])
    projw = projw.at[1].set(params['obs_primary_projection_w'])
    projw = projw.at[2].set(params['obs_wrist_projection_w'])

    # per-sequence-row additive slab: positional embeddings + projection biases
    pet = params['task_language_pos_embedding'] + params['task_language_projection_b']
    pep = params['obs_primary_pos_embedding'][:H] + params['obs_primary_projection_b']
    pew = params['obs_wrist_pos_embedding'][:H] + params['obs_wrist_projection_b']
    per = params['readout_action_pos_embedding'][:H]
    rows = [pet]
    for t in range(H):
        rows += [pep[t], pew[t], per[t]]
    rows.append(jnp.zeros((L_PAD - L, D), f32))
    seq_bias = jnp.concatenate(rows, axis=0)                     # (32, 32)

    # attention weights slab: [wq | wk | wv | wo] per layer -> (NL, 32, 128)
    attnw = jnp.concatenate(
        [params['wq'], params['wk'], params['wv'], params['wo']], axis=-1)

    # LayerNorm / bias vector slab: 9 rows per layer + 2 final-LN rows
    vrows = []
    for l in range(NUM_LAYERS):
        vrows += [params['ln1_s'][l], params['ln1_b'][l],
                  params['bq'][l], params['bk'][l], params['bv'][l],
                  params['bo'][l],
                  params['ln2_s'][l], params['ln2_b'][l], params['b2'][l]]
    vrows += [params['lnf_s'], params['lnf_b']]
    vecs = jnp.concatenate(vrows, axis=0)                        # (NL*9+2, 32)

    return dict(
        rule_add=jnp.asarray(build_rule_add()),                  # (32, 32)
        scatter=jnp.asarray(build_scatter()),                    # (32, 28)
        projw=projw,                                             # (3, 24, 32)
        seq_bias=seq_bias,                                       # (32, 32)
        attnw=attnw,                                             # (NL, 32, 128)
        w1=params['w1'],                                         # (NL, 32, 64)
        b1=params['b1'],                                         # (NL, 1, 64)
        w2=params['w2'],                                         # (NL, 64, 32)
        vecs=vecs,                                               # (20, 32)
    )


# ----------------------------- the fused kernel ------------------------------
def octo_kernel(lang_ref, prim_ref, wrist_ref, padadd_ref,
                rule_ref, scat_ref, projw_ref, seqbias_ref,
                attnw_ref, w1_ref, b1_ref, w2_ref, vec_ref,
                o_ref, *, bb):
    f32 = jnp.float32
    scale = 1.0 / np.sqrt(HEAD_DIM)

    def layer_norm(v, s, b):
        mu = jnp.mean(v, axis=-1, keepdims=True)
        var = jnp.mean((v - mu) ** 2, axis=-1, keepdims=True)
        return (v - mu) * lax.rsqrt(var + LN_EPS) * s + b

    # constants / weights resident for the whole kernel
    wt = projw_ref[0, 0:TASK_FEAT, :]                  # (16, 32)
    wp = projw_ref[1]                                  # (24, 32)
    ww = projw_ref[2]                                  # (24, 32)
    scat = scat_ref[...]                               # (32, 28)
    seq_bias = seqbias_ref[...]                        # (32, 32)
    rule_add = rule_ref[...]                           # (32, 32)
    vec = vec_ref[...]                                 # (20, 32)

    s_lang = scat[:, 0:N_LANG]                                         # (32, 4)
    s_prim = scat[:, N_LANG:N_LANG + H * N_PRIM]                       # (32, 16)
    s_wrist = scat[:, N_LANG + H * N_PRIM:N_LANG + H * (N_PRIM + N_WRIST)]  # (32, 8)

    # ---- prologue: horizon-batched projections + scatter assembly ----------
    seq_parts = []
    negs = []
    for b in range(bb):
        lang_tok = jnp.dot(lang_ref[b], wt, preferred_element_type=f32)   # (4, 32)
        prim_tok = jnp.dot(prim_ref[b], wp, preferred_element_type=f32)   # (16, 32)
        wrist_tok = jnp.dot(wrist_ref[b], ww, preferred_element_type=f32)  # (8, 32)
        seq_b = (jnp.dot(s_lang, lang_tok, preferred_element_type=f32)
                 + jnp.dot(s_prim, prim_tok, preferred_element_type=f32)
                 + jnp.dot(s_wrist, wrist_tok, preferred_element_type=f32)
                 + seq_bias)                                              # (32, 32)
        seq_parts.append(seq_b)
        negs.append(rule_add + padadd_ref[b])                             # (32, 32)

    # batch stacked along sublanes for all per-token ops
    x = seq_parts[0] if bb == 1 else jnp.concatenate(seq_parts, axis=0)   # (bb*32, 32)

    # ---- transformer stack (static unroll over layers) ----------------------
    for l in range(NUM_LAYERS):
        r = l * VPL
        y = layer_norm(x, vec[r:r + 1], vec[r + 1:r + 2])

        aw = attnw_ref[l]                                                 # (32, 128)
        bqkv = jnp.concatenate(
            [vec[r + 2:r + 3], vec[r + 3:r + 4], vec[r + 4:r + 5]], axis=-1)  # (1, 96)
        qkv = jnp.dot(y, aw[:, 0:3 * D], preferred_element_type=f32) + bqkv   # (bb*32, 96)

        heads = []
        for b in range(bb):
            qkv_b = qkv[b * L_PAD:(b + 1) * L_PAD]
            neg = negs[b]
            hd_outs = []
            for hd in range(NUM_HEADS):
                sl = slice(hd * HEAD_DIM, (hd + 1) * HEAD_DIM)
                qh = qkv_b[:, sl]
                kh = qkv_b[:, D:2 * D][:, sl]
                vh = qkv_b[:, 2 * D:3 * D][:, sl]
                s = lax.dot_general(qh, kh, (((1,), (1,)), ((), ())),
                                    preferred_element_type=f32)
                s = s * scale + neg
                s = s - jnp.max(s, axis=-1, keepdims=True)
                p = jnp.exp(s)
                p = p * pl.reciprocal(jnp.sum(p, axis=-1, keepdims=True),
                                      approx=True)
                hd_outs.append(jnp.dot(p, vh, preferred_element_type=f32))
            heads.append(jnp.concatenate(hd_outs, axis=-1))               # (32, 32)

        attn = heads[0] if bb == 1 else jnp.concatenate(heads, axis=0)    # (bb*32, 32)
        attn = (jnp.dot(attn, aw[:, 3 * D:4 * D], preferred_element_type=f32)
                + vec[r + 5:r + 6])
        x = x + attn

        z = layer_norm(x, vec[r + 6:r + 7], vec[r + 7:r + 8])
        hid = jax.nn.gelu(
            jnp.dot(z, w1_ref[l], preferred_element_type=f32) + b1_ref[l])
        x = x + jnp.dot(hid, w2_ref[l], preferred_element_type=f32) + vec[r + 8:r + 9]

    rf = NUM_LAYERS * VPL
    x = layer_norm(x, vec[rf:rf + 1], vec[rf + 1:rf + 2])

    for b in range(bb):
        o_ref[b] = x[b * L_PAD:(b + 1) * L_PAD]


# ------------------------------ pallas wrapper --------------------------------
def _multi_core_chip():
    """Best-effort detection of 2-TensorCore-per-chip parts (v7x)."""
    try:
        kind = jax.devices()[0].device_kind.lower()
    except Exception:
        return False
    return 'v7' in kind


def _batch_spec(shape, bb):
    nd = len(shape)
    blk = (bb,) + tuple(shape[1:])
    if bb == shape[0]:
        return pl.BlockSpec(blk, lambda i, _nd=nd: (0,) * _nd)
    return pl.BlockSpec(blk, lambda i, _nd=nd: (i,) + (0,) * (_nd - 1))


def _full_spec(arr):
    nd = arr.ndim
    return pl.BlockSpec(tuple(arr.shape), lambda i, _nd=nd: (0,) * _nd)


def run_octo_pallas(lang, primary_flat, wrist_flat, pad_add, packed):
    # v7x: one batch element per TensorCore (parallel grid).
    # v5e/v6e (single TC): fold the batch into one grid step, sublane-stacked.
    bb = 1 if _multi_core_chip() else B
    grid = (B // bb,)

    batch_ops = [lang, primary_flat, wrist_flat, pad_add]
    const_ops = [packed['rule_add'], packed['scatter'], packed['projw'],
                 packed['seq_bias'], packed['attnw'], packed['w1'],
                 packed['b1'], packed['w2'], packed['vecs']]

    in_specs = ([_batch_spec(a.shape, bb) for a in batch_ops]
                + [_full_spec(a) for a in const_ops])

    out = pl.pallas_call(
        partial(octo_kernel, bb=bb),
        out_shape=jax.ShapeDtypeStruct((B, L_PAD, D), jnp.float32),
        grid=grid,
        in_specs=in_specs,
        out_specs=_batch_spec((B, L_PAD, D), bb),
        compiler_params=pltpu.CompilerParams(dimension_semantics=("parallel",)),
    )(*batch_ops, *const_ops)
    return out


# --------------------------- pure-JAX reference -------------------------------
def run_octo_ref(lang, primary, wrist, add_mask, params):
    task = (lang @ params['task_language_projection_w']
            + params['task_language_projection_b']
            + params['task_language_pos_embedding'][None])
    prim = (jnp.einsum('bhnd,de->bhne', primary, params['obs_primary_projection_w'])
            + params['obs_primary_projection_b']
            + params['obs_primary_pos_embedding'][:H][None])
    wr = (jnp.einsum('bhnd,de->bhne', wrist, params['obs_wrist_projection_w'])
          + params['obs_wrist_projection_b']
          + params['obs_wrist_pos_embedding'][:H][None])
    ro = jnp.broadcast_to(params['readout_action_pos_embedding'][:H][None],
                          (B, H, N_READ, D))
    ts = jnp.concatenate([prim, wr, ro], axis=2).reshape(B, H * T_PER_STEP, D)
    seq = jnp.concatenate([task, ts], axis=1)
    seq = jnp.pad(seq, ((0, 0), (0, L_PAD - L), (0, 0)))

    def ln(v, s, b):
        mu = jnp.mean(v, -1, keepdims=True)
        var = jnp.mean((v - mu) ** 2, -1, keepdims=True)
        return (v - mu) * lax.rsqrt(var + LN_EPS) * s + b

    x = seq
    for l in range(NUM_LAYERS):
        y = ln(x, params['ln1_s'][l], params['ln1_b'][l])
        q = y @ params['wq'][l] + params['bq'][l]
        k = y @ params['wk'][l] + params['bk'][l]
        v = y @ params['wv'][l] + params['bv'][l]
        qh = q.reshape(B, L_PAD, NUM_HEADS, HEAD_DIM)
        kh = k.reshape(B, L_PAD, NUM_HEADS, HEAD_DIM)
        vh = v.reshape(B, L_PAD, NUM_HEADS, HEAD_DIM)
        s = (jnp.einsum('bqhd,bkhd->bhqk', qh, kh) / np.sqrt(HEAD_DIM)
             + add_mask[:, None])
        p = jax.nn.softmax(s, axis=-1)
        o = jnp.einsum('bhqk,bkhd->bqhd', p, vh).reshape(B, L_PAD, D)
        x = x + o @ params['wo'][l] + params['bo'][l]
        z = ln(x, params['ln2_s'][l], params['ln2_b'][l])
        x = (x + jax.nn.gelu(z @ params['w1'][l] + params['b1'][l])
             @ params['w2'][l] + params['b2'][l])
    return ln(x, params['lnf_s'], params['lnf_b'])


# ------------------------------ full forward ---------------------------------
def octo_forward(params, packed, observations, tasks, timestep_pad_mask,
                 use_pallas=True):
    B_, H_ = timestep_pad_mask.shape
    assert (B_, H_) == (B, H)

    lang = tasks['language_instruction'].astype(jnp.float32)      # (B, 4, 16)
    primary = observations['image_primary'].astype(jnp.float32)   # (B, H, 8, 24)
    wrist = observations['image_wrist'].astype(jnp.float32)       # (B, H, 4, 24)

    task_mask = jnp.ones((B_, N_LANG), dtype=bool)
    primary_mask = timestep_pad_mask[:, :, None] & jnp.ones((B_, H_, N_PRIM), bool)
    wrist_mask = timestep_pad_mask[:, :, None] & jnp.ones((B_, H_, N_WRIST), bool)
    readout_mask = jnp.ones((B_, H_, N_READ), dtype=bool)

    # key-padding additive vector (B, 1, L_PAD); rule mask is static (packed).
    ts_masks = jnp.concatenate([primary_mask, wrist_mask, readout_mask], axis=2)
    pad_flat = jnp.concatenate(
        [task_mask, ts_masks.reshape(B_, H_ * T_PER_STEP)], axis=1)
    pad_flat = jnp.pad(pad_flat, ((0, 0), (0, L_PAD - L)), constant_values=False)
    pad_add = jnp.where(pad_flat, 0.0, NEG_INF).astype(jnp.float32)[:, None, :]

    if use_pallas:
        out_pad = run_octo_pallas(
            lang,
            primary.reshape(B_, H_ * N_PRIM, OBS_FEAT),
            wrist.reshape(B_, H_ * N_WRIST, OBS_FEAT),
            pad_add, packed)
    else:
        add_mask = packed['rule_add'][None] + pad_add              # (B, 32, 32)
        out_pad = run_octo_ref(lang, primary, wrist, add_mask, params)

    out = out_pad[:, :L]

    # ---- split outputs back into token groups ----
    task_out = out[:, :N_LANG]
    ts_out = out[:, N_LANG:].reshape(B_, H_, T_PER_STEP, D)
    primary_out = ts_out[:, :, :N_PRIM]
    wrist_out = ts_out[:, :, N_PRIM:N_PRIM + N_WRIST]
    readout_out = ts_out[:, :, N_PRIM + N_WRIST:]

    outputs = {
        'task_language': {'tokens': task_out, 'mask': task_mask},
        'obs_primary': {'tokens': primary_out, 'mask': primary_mask},
        'obs_wrist': {'tokens': wrist_out, 'mask': wrist_mask},
        'readout_action': {'tokens': readout_out, 'mask': readout_mask},
        'task': {'tokens': task_out, 'mask': task_mask},
        'obs': {'tokens': jnp.concatenate([primary_out, wrist_out], axis=-2),
                'mask': jnp.concatenate([primary_mask, wrist_mask], axis=-1)},
    }
    return outputs


# ---------------------------------- main -------------------------------------
if __name__ == "__main__":
    key = jax.random.PRNGKey(0)
    kp, k1, k2, k3 = jax.random.split(key, 4)
    params = init_params(kp)
    packed = pack_params(params)          # one-time host-side operand packing

    observations = {
        'image_primary': jax.random.normal(
            k1, (B, H, N_PRIM, OBS_TOK_DIM['primary']), jnp.float32),
        'image_wrist': jax.random.normal(
            k2, (B, H, N_WRIST, OBS_TOK_DIM['wrist']), jnp.float32),
    }
    tasks = {
        'language_instruction': jax.random.normal(
            k3, (B, N_LANG, TASK_TOK_DIM['language']), jnp.float32),
    }
    timestep_pad_mask = jnp.ones((B, H), dtype=bool)

    out = octo_forward(params, packed, observations, tasks, timestep_pad_mask,
                       use_pallas=True)
    out = jax.block_until_ready(out)

    # pure-JAX reference of the same forward for a correctness check
    ref = octo_forward(params, packed, observations, tasks, timestep_pad_mask,
                       use_pallas=False)
    for name in ('task', 'obs', 'readout_action'):
        np.testing.assert_allclose(np.asarray(out[name]['tokens']),
                                   np.asarray(ref[name]['tokens']),
                                   rtol=1e-2, atol=1e-2)

    print("KERNEL_OK")
</pallas_src>

<mosaic_0001>
module attributes {stable_mosaic.version = 11 : i64} {
  func.func @octo_kernel(%arg0: i32, %arg1: memref<2x4x16xf32, #tpu.memory_space<vmem>>, %arg2: memref<2x16x24xf32, #tpu.memory_space<vmem>>, %arg3: memref<2x8x24xf32, #tpu.memory_space<vmem>>, %arg4: memref<2x1x32xf32, #tpu.memory_space<vmem>>, %arg5: memref<32x32xf32, #tpu.memory_space<vmem>>, %arg6: memref<32x28xf32, #tpu.memory_space<vmem>>, %arg7: memref<3x24x32xf32, #tpu.memory_space<vmem>>, %arg8: memref<32x32xf32, #tpu.memory_space<vmem>>, %arg9: memref<2x32x128xf32, #tpu.memory_space<vmem>>, %arg10: memref<2x32x64xf32, #tpu.memory_space<vmem>>, %arg11: memref<2x1x64xf32, #tpu.memory_space<vmem>>, %arg12: memref<2x64x32xf32, #tpu.memory_space<vmem>>, %arg13: memref<20x32xf32, #tpu.memory_space<vmem>>, %arg14: memref<2x32x32xf32, #tpu.memory_space<vmem>>) attributes {dimension_semantics = [#tpu.dimension_semantics<parallel>], iteration_bounds = array<i64: 1>, scalar_prefetch = 0 : i64, scratch_operands = 0 : i64, tpu.core_type = #tpu.core_type<tc>, window_params = [{pipeline_mode = #tpu.pipeline_mode<synchronous>, transform_indices = @transform_0, window_bounds = array<i64: 2, 4, 16>}, {pipeline_mode = #tpu.pipeline_mode<synchronous>, transform_indices = @transform_1, window_bounds = array<i64: 2, 16, 24>}, {pipeline_mode = #tpu.pipeline_mode<synchronous>, transform_indices = @transform_2, window_bounds = array<i64: 2, 8, 24>}, {pipeline_mode = #tpu.pipeline_mode<synchronous>, transform_indices = @transform_3, window_bounds = array<i64: 2, 1, 32>}, {pipeline_mode = #tpu.pipeline_mode<synchronous>, transform_indices = @transform_4, window_bounds = array<i64: 32, 32>}, {pipeline_mode = #tpu.pipeline_mode<synchronous>, transform_indices = @transform_5, window_bounds = array<i64: 32, 28>}, {pipeline_mode = #tpu.pipeline_mode<synchronous>, transform_indices = @transform_6, window_bounds = array<i64: 3, 24, 32>}, {pipeline_mode = #tpu.pipeline_mode<synchronous>, transform_indices = @transform_7, window_bounds = array<i64: 32, 32>}, {pipeline_mode = #tpu.pipeline_mode<synchronous>, transform_indices = @transform_8, window_bounds = array<i64: 2, 32, 128>}, {pipeline_mode = #tpu.pipeline_mode<synchronous>, transform_indices = @transform_9, window_bounds = array<i64: 2, 32, 64>}, {pipeline_mode = #tpu.pipeline_mode<synchronous>, transform_indices = @transform_10, window_bounds = array<i64: 2, 1, 64>}, {pipeline_mode = #tpu.pipeline_mode<synchronous>, transform_indices = @transform_11, window_bounds = array<i64: 2, 64, 32>}, {pipeline_mode = #tpu.pipeline_mode<synchronous>, transform_indices = @transform_12, window_bounds = array<i64: 20, 32>}, {pipeline_mode = #tpu.pipeline_mode<synchronous>, transform_indices = @transform_13, window_bounds = array<i64: 2, 32, 32>}]} {
    %c0 = arith.constant 0 : index
    %c0_0 = arith.constant 0 : index
    %c0_1 = arith.constant 0 : index
    %0 = vector.load %arg7[%c0, %c0_0, %c0_1] : memref<3x24x32xf32, #tpu.memory_space<vmem>>, vector<1x16x32xf32>
    %1 = vector.shape_cast %0 : vector<1x16x32xf32> to vector<16x32xf32>
    %c1 = arith.constant 1 : index
    %c0_2 = arith.constant 0 : index
    %c0_3 = arith.constant 0 : index
    %2 = vector.load %arg7[%c1, %c0_2, %c0_3] : memref<3x24x32xf32, #tpu.memory_space<vmem>>, vector<1x24x32xf32>
    %3 = vector.shape_cast %2 : vector<1x24x32xf32> to vector<24x32xf32>
    %c2 = arith.constant 2 : index
    %c0_4 = arith.constant 0 : index
    %c0_5 = arith.constant 0 : index
    %4 = vector.load %arg7[%c2, %c0_4, %c0_5] : memref<3x24x32xf32, #tpu.memory_space<vmem>>, vector<1x24x32xf32>
    %5 = vector.shape_cast %4 : vector<1x24x32xf32> to vector<24x32xf32>
    %c0_6 = arith.constant 0 : index
    %c0_7 = arith.constant 0 : index
    %6 = vector.load %arg6[%c0_6, %c0_7] : memref<32x28xf32, #tpu.memory_space<vmem>>, vector<32x28xf32>
    %c0_8 = arith.constant 0 : index
    %c0_9 = arith.constant 0 : index
    %7 = vector.load %arg8[%c0_8, %c0_9] : memref<32x32xf32, #tpu.memory_space<vmem>>, vector<32x32xf32>
    %c0_10 = arith.constant 0 : index
    %c0_11 = arith.constant 0 : index
    %8 = vector.load %arg5[%c0_10, %c0_11] : memref<32x32xf32, #tpu.memory_space<vmem>>, vector<32x32xf32>
    %c0_12 = arith.constant 0 : index
    %c0_13 = arith.constant 0 : index
    %9 = vector.load %arg13[%c0_12, %c0_13] : memref<20x32xf32, #tpu.memory_space<vmem>>, vector<20x32xf32>
    %10 = vector.extract_strided_slice %6 {offsets = [0, 0], sizes = [32, 4], strides = [1, 1]} : vector<32x28xf32> to vector<32x4xf32>
    %11 = vector.extract_strided_slice %6 {offsets = [0, 4], sizes = [32, 16], strides = [1, 1]} : vector<32x28xf32> to vector<32x16xf32>
    %12 = vector.extract_strided_slice %6 {offsets = [0, 20], sizes = [32, 8], strides = [1, 1]} : vector<32x28xf32> to vector<32x8xf32>
    %c0_14 = arith.constant 0 : index
    %c0_15 = arith.constant 0 : index
    %c0_16 = arith.constant 0 : index
    %13 = vector.load %arg1[%c0_14, %c0_15, %c0_16] : memref<2x4x16xf32, #tpu.memory_space<vmem>>, vector<1x4x16xf32>
    %14 = vector.shape_cast %13 : vector<1x4x16xf32> to vector<4x16xf32>
    %cst = arith.constant dense<0.000000e+00> : vector<4x32xf32>
    %15 = tpu.matmul %14, %1, %cst {dimension_numbers = #tpu.dot_dimension_numbers<[1], [0], [0], [1], [0, 0, 1, 1], [], []>} : vector<4x16xf32>, vector<16x32xf32>, vector<4x32xf32> -> vector<4x32xf32>
    %c0_17 = arith.constant 0 : index
    %c0_18 = arith.constant 0 : index
    %c0_19 = arith.constant 0 : index
    %16 = vector.load %arg2[%c0_17, %c0_18, %c0_19] : memref<2x16x24xf32, #tpu.memory_space<vmem>>, vector<1x16x24xf32>
    %17 = vector.shape_cast %16 : vector<1x16x24xf32> to vector<16x24xf32>
    %cst_20 = arith.constant dense<0.000000e+00> : vector<16x32xf32>
    %18 = tpu.matmul %17, %3, %cst_20 {dimension_numbers = #tpu.dot_dimension_numbers<[1], [0], [0], [1], [0, 0, 1, 1], [], []>} : vector<16x24xf32>, vector<24x32xf32>, vector<16x32xf32> -> vector<16x32xf32>
    %c0_21 = arith.constant 0 : index
    %c0_22 = arith.constant 0 : index
    %c0_23 = arith.constant 0 : index
    %19 = vector.load %arg3[%c0_21, %c0_22, %c0_23] : memref<2x8x24xf32, #tpu.memory_space<vmem>>, vector<1x8x24xf32>
    %20 = vector.shape_cast %19 : vector<1x8x24xf32> to vector<8x24xf32>
    %cst_24 = arith.constant dense<0.000000e+00> : vector<8x32xf32>
    %21 = tpu.matmul %20, %5, %cst_24 {dimension_numbers = #tpu.dot_dimension_numbers<[1], [0], [0], [1], [0, 0, 1, 1], [], []>} : vector<8x24xf32>, vector<24x32xf32>, vector<8x32xf32> -> vector<8x32xf32>
    %cst_25 = arith.constant dense<0.000000e+00> : vector<32x32xf32>
    %22 = tpu.matmul %10, %15, %cst_25 {dimension_numbers = #tpu.dot_dimension_numbers<[1], [0], [0], [1], [0, 0, 1, 1], [], []>} : vector<32x4xf32>, vector<4x32xf32>, vector<32x32xf32> -> vector<32x32xf32>
    %cst_26 = arith.constant dense<0.000000e+00> : vector<32x32xf32>
    %23 = tpu.matmul %11, %18, %cst_26 {dimension_numbers = #tpu.dot_dimension_numbers<[1], [0], [0], [1], [0, 0, 1, 1], [], []>} : vector<32x16xf32>, vector<16x32xf32>, vector<32x32xf32> -> vector<32x32xf32>
    %24 = arith.addf %22, %23 : vector<32x32xf32>
    %cst_27 = arith.constant dense<0.000000e+00> : vector<32x32xf32>
    %25 = tpu.matmul %12, %21, %cst_27 {dimension_numbers = #tpu.dot_dimension_numbers<[1], [0], [0], [1], [0, 0, 1, 1], [], []>} : vector<32x8xf32>, vector<8x32xf32>, vector<32x32xf32> -> vector<32x32xf32>
    %26 = arith.addf %24, %25 : vector<32x32xf32>
    %27 = arith.addf %26, %7 : vector<32x32xf32>
    %c0_28 = arith.constant 0 : index
    %c0_29 = arith.constant 0 : index
    %c0_30 = arith.constant 0 : index
    %28 = vector.load %arg4[%c0_28, %c0_29, %c0_30] : memref<2x1x32xf32, #tpu.memory_space<vmem>>, vector<1x1x32xf32>
    %29 = vector.shape_cast %28 : vector<1x1x32xf32> to vector<1x32xf32>
    %30 = vector.broadcast %29 : vector<1x32xf32> to vector<32x32xf32>
    %31 = arith.addf %8, %30 : vector<32x32xf32>
    %c1_31 = arith.constant 1 : index
    %c0_32 = arith.constant 0 : index
    %c0_33 = arith.constant 0 : index
    %32 = vector.load %arg1[%c1_31, %c0_32, %c0_33] : memref<2x4x16xf32, #tpu.memory_space<vmem>>, vector<1x4x16xf32>
    %33 = vector.shape_cast %32 : vector<1x4x16xf32> to vector<4x16xf32>
    %cst_34 = arith.constant dense<0.000000e+00> : vector<4x32xf32>
    %34 = tpu.matmul %33, %1, %cst_34 {dimension_numbers = #tpu.dot_dimension_numbers<[1], [0], [0], [1], [0, 0, 1, 1], [], []>} : vector<4x16xf32>, vector<16x32xf32>, vector<4x32xf32> -> vector<4x32xf32>
    %c1_35 = arith.constant 1 : index
    %c0_36 = arith.constant 0 : index
    %c0_37 = arith.constant 0 : index
    %35 = vector.load %arg2[%c1_35, %c0_36, %c0_37] : memref<2x16x24xf32, #tpu.memory_space<vmem>>, vector<1x16x24xf32>
    %36 = vector.shape_cast %35 : vector<1x16x24xf32> to vector<16x24xf32>
    %cst_38 = arith.constant dense<0.000000e+00> : vector<16x32xf32>
    %37 = tpu.matmul %36, %3, %cst_38 {dimension_numbers = #tpu.dot_dimension_numbers<[1], [0], [0], [1], [0, 0, 1, 1], [], []>} : vector<16x24xf32>, vector<24x32xf32>, vector<16x32xf32> -> vector<16x32xf32>
    %c1_39 = arith.constant 1 : index
    %c0_40 = arith.constant 0 : index
    %c0_41 = arith.constant 0 : index
    %38 = vector.load %arg3[%c1_39, %c0_40, %c0_41] : memref<2x8x24xf32, #tpu.memory_space<vmem>>, vector<1x8x24xf32>
    %39 = vector.shape_cast %38 : vector<1x8x24xf32> to vector<8x24xf32>
    %cst_42 = arith.constant dense<0.000000e+00> : vector<8x32xf32>
    %40 = tpu.matmul %39, %5, %cst_42 {dimension_numbers = #tpu.dot_dimension_numbers<[1], [0], [0], [1], [0, 0, 1, 1], [], []>} : vector<8x24xf32>, vector<24x32xf32>, vector<8x32xf32> -> vector<8x32xf32>
    %cst_43 = arith.constant dense<0.000000e+00> : vector<32x32xf32>
    %41 = tpu.matmul %10, %34, %cst_43 {dimension_numbers = #tpu.dot_dimension_numbers<[1], [0], [0], [1], [0, 0, 1, 1], [], []>} : vector<32x4xf32>, vector<4x32xf32>, vector<32x32xf32> -> vector<32x32xf32>
    %cst_44 = arith.constant dense<0.000000e+00> : vector<32x32xf32>
    %42 = tpu.matmul %11, %37, %cst_44 {dimension_numbers = #tpu.dot_dimension_numbers<[1], [0], [0], [1], [0, 0, 1, 1], [], []>} : vector<32x16xf32>, vector<16x32xf32>, vector<32x32xf32> -> vector<32x32xf32>
    %43 = arith.addf %41, %42 : vector<32x32xf32>
    %cst_45 = arith.constant dense<0.000000e+00> : vector<32x32xf32>
    %44 = tpu.matmul %12, %40, %cst_45 {dimension_numbers = #tpu.dot_dimension_numbers<[1], [0], [0], [1], [0, 0, 1, 1], [], []>} : vector<32x8xf32>, vector<8x32xf32>, vector<32x32xf32> -> vector<32x32xf32>
    %45 = arith.addf %43, %44 : vector<32x32xf32>
    %46 = arith.addf %45, %7 : vector<32x32xf32>
    %c1_46 = arith.constant 1 : index
    %c0_47 = arith.constant 0 : index
    %c0_48 = arith.constant 0 : index
    %47 = vector.load %arg4[%c1_46, %c0_47, %c0_48] : memref<2x1x32xf32, #tpu.memory_space<vmem>>, vector<1x1x32xf32>
    %48 = vector.shape_cast %47 : vector<1x1x32xf32> to vector<1x32xf32>
    %49 = vector.broadcast %48 : vector<1x32xf32> to vector<32x32xf32>
    %50 = arith.addf %8, %49 : vector<32x32xf32>
    %51 = tpu.concatenate %27, %46 in 0 : vector<32x32xf32>, vector<32x32xf32> -> vector<64x32xf32>
    %52 = vector.extract_strided_slice %9 {offsets = [0, 0], sizes = [1, 32], strides = [1, 1]} : vector<20x32xf32> to vector<1x32xf32>
    %53 = vector.extract_strided_slice %9 {offsets = [1, 0], sizes = [1, 32], strides = [1, 1]} : vector<20x32xf32> to vector<1x32xf32>
    %cst_49 = arith.constant dense<0.000000e+00> : vector<64xf32>
    %54 = vector.multi_reduction <add>, %51, %cst_49 [1] : vector<64x32xf32> to vector<64xf32>
    %55 = vector.shape_cast %54 : vector<64xf32> to vector<64x1xf32>
    %cst_50 = arith.constant 3.200000e+01 : f32
    %56 = vector.broadcast %cst_50 : f32 to vector<64x1xf32>
    %57 = arith.divf %55, %56 : vector<64x1xf32>
    %58 = vector.broadcast %57 : vector<64x1xf32> to vector<64x32xf32>
    %59 = arith.subf %51, %58 : vector<64x32xf32>
    %60 = arith.mulf %59, %59 : vector<64x32xf32>
    %cst_51 = arith.constant dense<0.000000e+00> : vector<64xf32>
    %61 = vector.multi_reduction <add>, %60, %cst_51 [1] : vector<64x32xf32> to vector<64xf32>
    %62 = vector.shape_cast %61 : vector<64xf32> to vector<64x1xf32>
    %cst_52 = arith.constant 3.200000e+01 : f32
    %63 = vector.broadcast %cst_52 : f32 to vector<64x1xf32>
    %64 = arith.divf %62, %63 : vector<64x1xf32>
    %65 = vector.broadcast %57 : vector<64x1xf32> to vector<64x32xf32>
    %66 = arith.subf %51, %65 : vector<64x32xf32>
    %cst_53 = arith.constant 9.99999997E-7 : f32
    %67 = vector.broadcast %cst_53 : f32 to vector<64x1xf32>
    %68 = arith.addf %64, %67 : vector<64x1xf32>
    %69 = math.rsqrt %68 : vector<64x1xf32>
    %70 = vector.broadcast %69 : vector<64x1xf32> to vector<64x32xf32>
    %71 = arith.mulf %66, %70 : vector<64x32xf32>
    %72 = vector.broadcast %52 : vector<1x32xf32> to vector<64x32xf32>
    %73 = arith.mulf %71, %72 : vector<64x32xf32>
    %74 = vector.broadcast %53 : vector<1x32xf32> to vector<64x32xf32>
    %75 = arith.addf %73, %74 : vector<64x32xf32>
    %c0_54 = arith.constant 0 : index
    %c0_55 = arith.constant 0 : index
    %c0_56 = arith.constant 0 : index
    %76 = vector.load %arg9[%c0_54, %c0_55, %c0_56] : memref<2x32x128xf32, #tpu.memory_space<vmem>>, vector<1x32x128xf32>
    %77 = vector.shape_cast %76 : vector<1x32x128xf32> to vector<32x128xf32>
    %78 = vector.extract_strided_slice %9 {offsets = [2, 0], sizes = [1, 32], strides = [1, 1]} : vector<20x32xf32> to vector<1x32xf32>
    %79 = vector.extract_strided_slice %9 {offsets = [3, 0], sizes = [1, 32], strides = [1, 1]} : vector<20x32xf32> to vector<1x32xf32>
    %80 = vector.extract_strided_slice %9 {offsets = [4, 0], sizes = [1, 32], strides = [1, 1]} : vector<20x32xf32> to vector<1x32xf32>
    %81 = tpu.concatenate %78, %79, %80 in 1 : vector<1x32xf32>, vector<1x32xf32>, vector<1x32xf32> -> vector<1x96xf32>
    %82 = vector.extract_strided_slice %77 {offsets = [0, 0], sizes = [32, 96], strides = [1, 1]} : vector<32x128xf32> to vector<32x96xf32>
    %cst_57 = arith.constant dense<0.000000e+00> : vector<64x96xf32>
    %83 = tpu.matmul %75, %82, %cst_57 {dimension_numbers = #tpu.dot_dimension_numbers<[1], [0], [0], [1], [0, 0, 1, 1], [], []>} : vector<64x32xf32>, vector<32x96xf32>, vector<64x96xf32> -> vector<64x96xf32>
    %84 = vector.broadcast %81 : vector<1x96xf32> to vector<64x96xf32>
    %85 = arith.addf %83, %84 : vector<64x96xf32>
    %86 = vector.extract_strided_slice %85 {offsets = [0, 0], sizes = [32, 96], strides = [1, 1]} : vector<64x96xf32> to vector<32x96xf32>
    %87 = vector.extract_strided_slice %86 {offsets = [0, 0], sizes = [32, 16], strides = [1, 1]} : vector<32x96xf32> to vector<32x16xf32>
    %88 = vector.extract_strided_slice %86 {offsets = [0, 32], sizes = [32, 32], strides = [1, 1]} : vector<32x96xf32> to vector<32x32xf32>
    %89 = vector.extract_strided_slice %88 {offsets = [0, 0], sizes = [32, 16], strides = [1, 1]} : vector<32x32xf32> to vector<32x16xf32>
    %90 = vector.extract_strided_slice %86 {offsets = [0, 64], sizes = [32, 32], strides = [1, 1]} : vector<32x96xf32> to vector<32x32xf32>
    %91 = vector.extract_strided_slice %90 {offsets = [0, 0], sizes = [32, 16], strides = [1, 1]} : vector<32x32xf32> to vector<32x16xf32>
    %cst_58 = arith.constant dense<0.000000e+00> : vector<32x32xf32>
    %92 = tpu.matmul %87, %89, %cst_58 {dimension_numbers = #tpu.dot_dimension_numbers<[1], [1], [0], [0], [0, 0, 1, 0], [], []>} : vector<32x16xf32>, vector<32x16xf32>, vector<32x32xf32> -> vector<32x32xf32>
    %cst_59 = arith.constant 2.500000e-01 : f32
    %93 = vector.broadcast %cst_59 : f32 to vector<32x32xf32>
    %94 = arith.mulf %92, %93 : vector<32x32xf32>
    %95 = arith.addf %94, %31 : vector<32x32xf32>
    %cst_60 = arith.constant dense<0xFF800000> : vector<32xf32>
    %96 = vector.multi_reduction <maximumf>, %95, %cst_60 [1] : vector<32x32xf32> to vector<32xf32>
    %97 = vector.shape_cast %96 : vector<32xf32> to vector<32x1xf32>
    %98 = vector.broadcast %97 : vector<32x1xf32> to vector<32x32xf32>
    %99 = arith.subf %95, %98 : vector<32x32xf32>
    %100 = math.exp %99 : vector<32x32xf32>
    %cst_61 = arith.constant dense<0.000000e+00> : vector<32xf32>
    %101 = vector.multi_reduction <add>, %100, %cst_61 [1] : vector<32x32xf32> to vector<32xf32>
    %102 = vector.shape_cast %101 : vector<32xf32> to vector<32x1xf32>
    %103 = tpu.reciprocal %102 {approx = true} : vector<32x1xf32> -> vector<32x1xf32>
    %104 = vector.broadcast %103 : vector<32x1xf32> to vector<32x32xf32>
    %105 = arith.mulf %100, %104 : vector<32x32xf32>
    %cst_62 = arith.constant dense<0.000000e+00> : vector<32x16xf32>
    %106 = tpu.matmul %105, %91, %cst_62 {dimension_numbers = #tpu.dot_dimension_numbers<[1], [0], [0], [1], [0, 0, 1, 1], [], []>} : vector<32x32xf32>, vector<32x16xf32>, vector<32x16xf32> -> vector<32x16xf32>
    %107 = vector.extract_strided_slice %86 {offsets = [0, 16], sizes = [32, 16], strides = [1, 1]} : vector<32x96xf32> to vector<32x16xf32>
    %108 = vector.extract_strided_slice %86 {offsets = [0, 32], sizes = [32, 32], strides = [1, 1]} : vector<32x96xf32> to vector<32x32xf32>
    %109 = vector.extract_strided_slice %108 {offsets = [0, 16], sizes = [32, 16], strides = [1, 1]} : vector<32x32xf32> to vector<32x16xf32>
    %110 = vector.extract_strided_slice %86 {offsets = [0, 64], sizes = [32, 32], strides = [1, 1]} : vector<32x96xf32> to vector<32x32xf32>
    %111 = vector.extract_strided_slice %110 {offsets = [0, 16], sizes = [32, 16], strides = [1, 1]} : vector<32x32xf32> to vector<32x16xf32>
    %cst_63 = arith.constant dense<0.000000e+00> : vector<32x32xf32>
    %112 = tpu.matmul %107, %109, %cst_63 {dimension_numbers = #tpu.dot_dimension_numbers<[1], [1], [0], [0], [0, 0, 1, 0], [], []>} : vector<32x16xf32>, vector<32x16xf32>, vector<32x32xf32> -> vector<32x32xf32>
    %cst_64 = arith.constant 2.500000e-01 : f32
    %113 = vector.broadcast %cst_64 : f32 to vector<32x32xf32>
    %114 = arith.mulf %112, %113 : vector<32x32xf32>
    %115 = arith.addf %114, %31 : vector<32x32xf32>
    %cst_65 = arith.constant dense<0xFF800000> : vector<32xf32>
    %116 = vector.multi_reduction <maximumf>, %115, %cst_65 [1] : vector<32x32xf32> to vector<32xf32>
    %117 = vector.shape_cast %116 : vector<32xf32> to vector<32x1xf32>
    %118 = vector.broadcast %117 : vector<32x1xf32> to vector<32x32xf32>
    %119 = arith.subf %115, %118 : vector<32x32xf32>
    %120 = math.exp %119 : vector<32x32xf32>
    %cst_66 = arith.constant dense<0.000000e+00> : vector<32xf32>
    %121 = vector.multi_reduction <add>, %120, %cst_66 [1] : vector<32x32xf32> to vector<32xf32>
    %122 = vector.shape_cast %121 : vector<32xf32> to vector<32x1xf32>
    %123 = tpu.reciprocal %122 {approx = true} : vector<32x1xf32> -> vector<32x1xf32>
    %124 = vector.broadcast %123 : vector<32x1xf32> to vector<32x32xf32>
    %125 = arith.mulf %120, %124 : vector<32x32xf32>
    %cst_67 = arith.constant dense<0.000000e+00> : vector<32x16xf32>
    %126 = tpu.matmul %125, %111, %cst_67 {dimension_numbers = #tpu.dot_dimension_numbers<[1], [0], [0], [1], [0, 0, 1, 1], [], []>} : vector<32x32xf32>, vector<32x16xf32>, vector<32x16xf32> -> vector<32x16xf32>
    %127 = tpu.concatenate %106, %126 in 1 : vector<32x16xf32>, vector<32x16xf32> -> vector<32x32xf32>
    %128 = vector.extract_strided_slice %85 {offsets = [32, 0], sizes = [32, 96], strides = [1, 1]} : vector<64x96xf32> to vector<32x96xf32>
    %129 = vector.extract_strided_slice %128 {offsets = [0, 0], sizes = [32, 16], strides = [1, 1]} : vector<32x96xf32> to vector<32x16xf32>
    %130 = vector.extract_strided_slice %128 {offsets = [0, 32], sizes = [32, 32], strides = [1, 1]} : vector<32x96xf32> to vector<32x32xf32>
    %131 = vector.extract_strided_slice %130 {offsets = [0, 0], sizes = [32, 16], strides = [1, 1]} : vector<32x32xf32> to vector<32x16xf32>
    %132 = vector.extract_strided_slice %128 {offsets = [0, 64], sizes = [32, 32], strides = [1, 1]} : vector<32x96xf32> to vector<32x32xf32>
    %133 = vector.extract_strided_slice %132 {offsets = [0, 0], sizes = [32, 16], strides = [1, 1]} : vector<32x32xf32> to vector<32x16xf32>
    %cst_68 = arith.constant dense<0.000000e+00> : vector<32x32xf32>
    %134 = tpu.matmul %129, %131, %cst_68 {dimension_numbers = #tpu.dot_dimension_numbers<[1], [1], [0], [0], [0, 0, 1, 0], [], []>} : vector<32x16xf32>, vector<32x16xf32>, vector<32x32xf32> -> vector<32x32xf32>
    %cst_69 = arith.constant 2.500000e-01 : f32
    %135 = vector.broadcast %cst_69 : f32 to vector<32x32xf32>
    %136 = arith.mulf %134, %135 : vector<32x32xf32>
    %137 = arith.addf %136, %50 : vector<32x32xf32>
    %cst_70 = arith.constant dense<0xFF800000> : vector<32xf32>
    %138 = vector.multi_reduction <maximumf>, %137, %cst_70 [1] : vector<32x32xf32> to vector<32xf32>
    %139 = vector.shape_cast %138 : vector<32xf32> to vector<32x1xf32>
    %140 = vector.broadcast %139 : vector<32x1xf32> to vector<32x32xf32>
    %141 = arith.subf %137, %140 : vector<32x32xf32>
    %142 = math.exp %141 : vector<32x32xf32>
    %cst_71 = arith.constant dense<0.000000e+00> : vector<32xf32>
    %143 = vector.multi_reduction <add>, %142, %cst_71 [1] : vector<32x32xf32> to vector<32xf32>
    %144 = vector.shape_cast %143 : vector<32xf32> to vector<32x1xf32>
    %145 = tpu.reciprocal %144 {approx = true} : vector<32x1xf32> -> vector<32x1xf32>
    %146 = vector.broadcast %145 : vector<32x1xf32> to vector<32x32xf32>
    %147 = arith.mulf %142, %146 : vector<32x32xf32>
    %cst_72 = arith.constant dense<0.000000e+00> : vector<32x16xf32>
    %148 = tpu.matmul %147, %133, %cst_72 {dimension_numbers = #tpu.dot_dimension_numbers<[1], [0], [0], [1], [0, 0, 1, 1], [], []>} : vector<32x32xf32>, vector<32x16xf32>, vector<32x16xf32> -> vector<32x16xf32>
    %149 = vector.extract_strided_slice %128 {offsets = [0, 16], sizes = [32, 16], strides = [1, 1]} : vector<32x96xf32> to vector<32x16xf32>
    %150 = vector.extract_strided_slice %128 {offsets = [0, 32], sizes = [32, 32], strides = [1, 1]} : vector<32x96xf32> to vector<32x32xf32>
    %151 = vector.extract_strided_slice %150 {offsets = [0, 16], sizes = [32, 16], strides = [1, 1]} : vector<32x32xf32> to vector<32x16xf32>
    %152 = vector.extract_strided_slice %128 {offsets = [0, 64], sizes = [32, 32], strides = [1, 1]} : vector<32x96xf32> to vector<32x32xf32>
    %153 = vector.extract_strided_slice %152 {offsets = [0, 16], sizes = [32, 16], strides = [1, 1]} : vector<32x32xf32> to vector<32x16xf32>
    %cst_73 = arith.constant dense<0.000000e+00> : vector<32x32xf32>
    %154 = tpu.matmul %149, %151, %cst_73 {dimension_numbers = #tpu.dot_dimension_numbers<[1], [1], [0], [0], [0, 0, 1, 0], [], []>} : vector<32x16xf32>, vector<32x16xf32>, vector<32x32xf32> -> vector<32x32xf32>
    %cst_74 = arith.constant 2.500000e-01 : f32
    %155 = vector.broadcast %cst_74 : f32 to vector<32x32xf32>
    %156 = arith.mulf %154, %155 : vector<32x32xf32>
    %157 = arith.addf %156, %50 : vector<32x32xf32>
    %cst_75 = arith.constant dense<0xFF800000> : vector<32xf32>
    %158 = vector.multi_reduction <maximumf>, %157, %cst_75 [1] : vector<32x32xf32> to vector<32xf32>
    %159 = vector.shape_cast %158 : vector<32xf32> to vector<32x1xf32>
    %160 = vector.broadcast %159 : vector<32x1xf32> to vector<32x32xf32>
    %161 = arith.subf %157, %160 : vector<32x32xf32>
    %162 = math.exp %161 : vector<32x32xf32>
    %cst_76 = arith.constant dense<0.000000e+00> : vector<32xf32>
    %163 = vector.multi_reduction <add>, %162, %cst_76 [1] : vector<32x32xf32> to vector<32xf32>
    %164 = vector.shape_cast %163 : vector<32xf32> to vector<32x1xf32>
    %165 = tpu.reciprocal %164 {approx = true} : vector<32x1xf32> -> vector<32x1xf32>
    %166 = vector.broadcast %165 : vector<32x1xf32> to vector<32x32xf32>
    %167 = arith.mulf %162, %166 : vector<32x32xf32>
    %cst_77 = arith.constant dense<0.000000e+00> : vector<32x16xf32>
    %168 = tpu.matmul %167, %153, %cst_77 {dimension_numbers = #tpu.dot_dimension_numbers<[1], [0], [0], [1], [0, 0, 1, 1], [], []>} : vector<32x32xf32>, vector<32x16xf32>, vector<32x16xf32> -> vector<32x16xf32>
    %169 = tpu.concatenate %148, %168 in 1 : vector<32x16xf32>, vector<32x16xf32> -> vector<32x32xf32>
    %170 = tpu.concatenate %127, %169 in 0 : vector<32x32xf32>, vector<32x32xf32> -> vector<64x32xf32>
    %171 = vector.extract_strided_slice %77 {offsets = [0, 96], sizes = [32, 32], strides = [1, 1]} : vector<32x128xf32> to vector<32x32xf32>
    %cst_78 = arith.constant dense<0.000000e+00> : vector<64x32xf32>
    %172 = tpu.matmul %170, %171, %cst_78 {dimension_numbers = #tpu.dot_dimension_numbers<[1], [0], [0], [1], [0, 0, 1, 1], [], []>} : vector<64x32xf32>, vector<32x32xf32>, vector<64x32xf32> -> vector<64x32xf32>
    %173 = vector.extract_strided_slice %9 {offsets = [5, 0], sizes = [1, 32], strides = [1, 1]} : vector<20x32xf32> to vector<1x32xf32>
    %174 = vector.broadcast %173 : vector<1x32xf32> to vector<64x32xf32>
    %175 = arith.addf %172, %174 : vector<64x32xf32>
    %176 = arith.addf %51, %175 : vector<64x32xf32>
    %177 = vector.extract_strided_slice %9 {offsets = [6, 0], sizes = [1, 32], strides = [1, 1]} : vector<20x32xf32> to vector<1x32xf32>
    %178 = vector.extract_strided_slice %9 {offsets = [7, 0], sizes = [1, 32], strides = [1, 1]} : vector<20x32xf32> to vector<1x32xf32>
    %cst_79 = arith.constant dense<0.000000e+00> : vector<64xf32>
    %179 = vector.multi_reduction <add>, %176, %cst_79 [1] : vector<64x32xf32> to vector<64xf32>
    %180 = vector.shape_cast %179 : vector<64xf32> to vector<64x1xf32>
    %cst_80 = arith.constant 3.200000e+01 : f32
    %181 = vector.broadcast %cst_80 : f32 to vector<64x1xf32>
    %182 = arith.divf %180, %181 : vector<64x1xf32>
    %183 = vector.broadcast %182 : vector<64x1xf32> to vector<64x32xf32>
    %184 = arith.subf %176, %183 : vector<64x32xf32>
    %185 = arith.mulf %184, %184 : vector<64x32xf32>
    %cst_81 = arith.constant dense<0.000000e+00> : vector<64xf32>
    %186 = vector.multi_reduction <add>, %185, %cst_81 [1] : vector<64x32xf32> to vector<64xf32>
    %187 = vector.shape_cast %186 : vector<64xf32> to vector<64x1xf32>
    %cst_82 = arith.constant 3.200000e+01 : f32
    %188 = vector.broadcast %cst_82 : f32 to vector<64x1xf32>
    %189 = arith.divf %187, %188 : vector<64x1xf32>
    %190 = vector.broadcast %182 : vector<64x1xf32> to vector<64x32xf32>
    %191 = arith.subf %176, %190 : vector<64x32xf32>
    %cst_83 = arith.constant 9.99999997E-7 : f32
    %192 = vector.broadcast %cst_83 : f32 to vector<64x1xf32>
    %193 = arith.addf %189, %192 : vector<64x1xf32>
    %194 = math.rsqrt %193 : vector<64x1xf32>
    %195 = vector.broadcast %194 : vector<64x1xf32> to vector<64x32xf32>
    %196 = arith.mulf %191, %195 : vector<64x32xf32>
    %197 = vector.broadcast %177 : vector<1x32xf32> to vector<64x32xf32>
    %198 = arith.mulf %196, %197 : vector<64x32xf32>
    %199 = vector.broadcast %178 : vector<1x32xf32> to vector<64x32xf32>
    %200 = arith.addf %198, %199 : vector<64x32xf32>
    %c0_84 = arith.constant 0 : index
    %c0_85 = arith.constant 0 : index
    %c0_86 = arith.constant 0 : index
    %201 = vector.load %arg10[%c0_84, %c0_85, %c0_86] : memref<2x32x64xf32, #tpu.memory_space<vmem>>, vector<1x32x64xf32>
    %202 = vector.shape_cast %201 : vector<1x32x64xf32> to vector<32x64xf32>
    %cst_87 = arith.constant dense<0.000000e+00> : vector<64x64xf32>
    %203 = tpu.matmul %200, %202, %cst_87 {dimension_numbers = #tpu.dot_dimension_numbers<[1], [0], [0], [1], [0, 0, 1, 1], [], []>} : vector<64x32xf32>, vector<32x64xf32>, vector<64x64xf32> -> vector<64x64xf32>
    %c0_88 = arith.constant 0 : index
    %c0_89 = arith.constant 0 : index
    %c0_90 = arith.constant 0 : index
    %204 = vector.load %arg11[%c0_88, %c0_89, %c0_90] : memref<2x1x64xf32, #tpu.memory_space<vmem>>, vector<1x1x64xf32>
    %205 = vector.shape_cast %204 : vector<1x1x64xf32> to vector<1x64xf32>
    %206 = vector.broadcast %205 : vector<1x64xf32> to vector<64x64xf32>
    %207 = arith.addf %203, %206 : vector<64x64xf32>
    %208 = arith.mulf %207, %207 : vector<64x64xf32>
    %209 = arith.mulf %207, %208 : vector<64x64xf32>
    %cst_91 = arith.constant 4.471500e-02 : f32
    %210 = vector.broadcast %cst_91 : f32 to vector<64x64xf32>
    %211 = arith.mulf %210, %209 : vector<64x64xf32>
    %212 = arith.addf %207, %211 : vector<64x64xf32>
    %cst_92 = arith.constant 0.797884583 : f32
    %213 = vector.broadcast %cst_92 : f32 to vector<64x64xf32>
    %214 = arith.mulf %213, %212 : vector<64x64xf32>
    %215 = math.tanh %214 : vector<64x64xf32>
    %cst_93 = arith.constant 1.000000e+00 : f32
    %216 = vector.broadcast %cst_93 : f32 to vector<64x64xf32>
    %217 = arith.addf %216, %215 : vector<64x64xf32>
    %cst_94 = arith.constant 5.000000e-01 : f32
    %218 = vector.broadcast %cst_94 : f32 to vector<64x64xf32>
    %219 = arith.mulf %218, %217 : vector<64x64xf32>
    %220 = arith.mulf %207, %219 : vector<64x64xf32>
    %c0_95 = arith.constant 0 : index
    %c0_96 = arith.constant 0 : index
    %c0_97 = arith.constant 0 : index
    %221 = vector.load %arg12[%c0_95, %c0_96, %c0_97] : memref<2x64x32xf32, #tpu.memory_space<vmem>>, vector<1x64x32xf32>
    %222 = vector.shape_cast %221 : vector<1x64x32xf32> to vector<64x32xf32>
    %cst_98 = arith.constant dense<0.000000e+00> : vector<64x32xf32>
    %223 = tpu.matmul %220, %222, %cst_98 {dimension_numbers = #tpu.dot_dimension_numbers<[1], [0], [0], [1], [0, 0, 1, 1], [], []>} : vector<64x64xf32>, vector<64x32xf32>, vector<64x32xf32> -> vector<64x32xf32>
    %224 = arith.addf %176, %223 : vector<64x32xf32>
    %225 = vector.extract_strided_slice %9 {offsets = [8, 0], sizes = [1, 32], strides = [1, 1]} : vector<20x32xf32> to vector<1x32xf32>
    %226 = vector.broadcast %225 : vector<1x32xf32> to vector<64x32xf32>
    %227 = arith.addf %224, %226 : vector<64x32xf32>
    %228 = vector.extract_strided_slice %9 {offsets = [9, 0], sizes = [1, 32], strides = [1, 1]} : vector<20x32xf32> to vector<1x32xf32>
    %229 = vector.extract_strided_slice %9 {offsets = [10, 0], sizes = [1, 32], strides = [1, 1]} : vector<20x32xf32> to vector<1x32xf32>
    %cst_99 = arith.constant dense<0.000000e+00> : vector<64xf32>
    %230 = vector.multi_reduction <add>, %227, %cst_99 [1] : vector<64x32xf32> to vector<64xf32>
    %231 = vector.shape_cast %230 : vector<64xf32> to vector<64x1xf32>
    %cst_100 = arith.constant 3.200000e+01 : f32
    %232 = vector.broadcast %cst_100 : f32 to vector<64x1xf32>
    %233 = arith.divf %231, %232 : vector<64x1xf32>
    %234 = vector.broadcast %233 : vector<64x1xf32> to vector<64x32xf32>
    %235 = arith.subf %227, %234 : vector<64x32xf32>
    %236 = arith.mulf %235, %235 : vector<64x32xf32>
    %cst_101 = arith.constant dense<0.000000e+00> : vector<64xf32>
    %237 = vector.multi_reduction <add>, %236, %cst_101 [1] : vector<64x32xf32> to vector<64xf32>
    %238 = vector.shape_cast %237 : vector<64xf32> to vector<64x1xf32>
    %cst_102 = arith.constant 3.200000e+01 : f32
    %239 = vector.broadcast %cst_102 : f32 to vector<64x1xf32>
    %240 = arith.divf %238, %239 : vector<64x1xf32>
    %241 = vector.broadcast %233 : vector<64x1xf32> to vector<64x32xf32>
    %242 = arith.subf %227, %241 : vector<64x32xf32>
    %cst_103 = arith.constant 9.99999997E-7 : f32
    %243 = vector.broadcast %cst_103 : f32 to vector<64x1xf32>
    %244 = arith.addf %240, %243 : vector<64x1xf32>
    %245 = math.rsqrt %244 : vector<64x1xf32>
    %246 = vector.broadcast %245 : vector<64x1xf32> to vector<64x32xf32>
    %247 = arith.mulf %242, %246 : vector<64x32xf32>
    %248 = vector.broadcast %228 : vector<1x32xf32> to vector<64x32xf32>
    %249 = arith.mulf %247, %248 : vector<64x32xf32>
    %250 = vector.broadcast %229 : vector<1x32xf32> to vector<64x32xf32>
    %251 = arith.addf %249, %250 : vector<64x32xf32>
    %c1_104 = arith.constant 1 : index
    %c0_105 = arith.constant 0 : index
    %c0_106 = arith.constant 0 : index
    %252 = vector.load %arg9[%c1_104, %c0_105, %c0_106] : memref<2x32x128xf32, #tpu.memory_space<vmem>>, vector<1x32x128xf32>
    %253 = vector.shape_cast %252 : vector<1x32x128xf32> to vector<32x128xf32>
    %254 = vector.extract_strided_slice %9 {offsets = [11, 0], sizes = [1, 32], strides = [1, 1]} : vector<20x32xf32> to vector<1x32xf32>
    %255 = vector.extract_strided_slice %9 {offsets = [12, 0], sizes = [1, 32], strides = [1, 1]} : vector<20x32xf32> to vector<1x32xf32>
    %256 = vector.extract_strided_slice %9 {offsets = [13, 0], sizes = [1, 32], strides = [1, 1]} : vector<20x32xf32> to vector<1x32xf32>
    %257 = tpu.concatenate %254, %255, %256 in 1 : vector<1x32xf32>, vector<1x32xf32>, vector<1x32xf32> -> vector<1x96xf32>
    %258 = vector.extract_strided_slice %253 {offsets = [0, 0], sizes = [32, 96], strides = [1, 1]} : vector<32x128xf32> to vector<32x96xf32>
    %cst_107 = arith.constant dense<0.000000e+00> : vector<64x96xf32>
    %259 = tpu.matmul %251, %258, %cst_107 {dimension_numbers = #tpu.dot_dimension_numbers<[1], [0], [0], [1], [0, 0, 1, 1], [], []>} : vector<64x32xf32>, vector<32x96xf32>, vector<64x96xf32> -> vector<64x96xf32>
    %260 = vector.broadcast %257 : vector<1x96xf32> to vector<64x96xf32>
    %261 = arith.addf %259, %260 : vector<64x96xf32>
    %262 = vector.extract_strided_slice %261 {offsets = [0, 0], sizes = [32, 96], strides = [1, 1]} : vector<64x96xf32> to vector<32x96xf32>
    %263 = vector.extract_strided_slice %262 {offsets = [0, 0], sizes = [32, 16], strides = [1, 1]} : vector<32x96xf32> to vector<32x16xf32>
    %264 = vector.extract_strided_slice %262 {offsets = [0, 32], sizes = [32, 32], strides = [1, 1]} : vector<32x96xf32> to vector<32x32xf32>
    %265 = vector.extract_strided_slice %264 {offsets = [0, 0], sizes = [32, 16], strides = [1, 1]} : vector<32x32xf32> to vector<32x16xf32>
    %266 = vector.extract_strided_slice %262 {offsets = [0, 64], sizes = [32, 32], strides = [1, 1]} : vector<32x96xf32> to vector<32x32xf32>
    %267 = vector.extract_strided_slice %266 {offsets = [0, 0], sizes = [32, 16], strides = [1, 1]} : vector<32x32xf32> to vector<32x16xf32>
    %cst_108 = arith.constant dense<0.000000e+00> : vector<32x32xf32>
    %268 = tpu.matmul %263, %265, %cst_108 {dimension_numbers = #tpu.dot_dimension_numbers<[1], [1], [0], [0], [0, 0, 1, 0], [], []>} : vector<32x16xf32>, vector<32x16xf32>, vector<32x32xf32> -> vector<32x32xf32>
    %cst_109 = arith.constant 2.500000e-01 : f32
    %269 = vector.broadcast %cst_109 : f32 to vector<32x32xf32>
    %270 = arith.mulf %268, %269 : vector<32x32xf32>
    %271 = arith.addf %270, %31 : vector<32x32xf32>
    %cst_110 = arith.constant dense<0xFF800000> : vector<32xf32>
    %272 = vector.multi_reduction <maximumf>, %271, %cst_110 [1] : vector<32x32xf32> to vector<32xf32>
    %273 = vector.shape_cast %272 : vector<32xf32> to vector<32x1xf32>
    %274 = vector.broadcast %273 : vector<32x1xf32> to vector<32x32xf32>
    %275 = arith.subf %271, %274 : vector<32x32xf32>
    %276 = math.exp %275 : vector<32x32xf32>
    %cst_111 = arith.constant dense<0.000000e+00> : vector<32xf32>
    %277 = vector.multi_reduction <add>, %276, %cst_111 [1] : vector<32x32xf32> to vector<32xf32>
    %278 = vector.shape_cast %277 : vector<32xf32> to vector<32x1xf32>
    %279 = tpu.reciprocal %278 {approx = true} : vector<32x1xf32> -> vector<32x1xf32>
    %280 = vector.broadcast %279 : vector<32x1xf32> to vector<32x32xf32>
    %281 = arith.mulf %276, %280 : vector<32x32xf32>
    %cst_112 = arith.constant dense<0.000000e+00> : vector<32x16xf32>
    %282 = tpu.matmul %281, %267, %cst_112 {dimension_numbers = #tpu.dot_dimension_numbers<[1], [0], [0], [1], [0, 0, 1, 1], [], []>} : vector<32x32xf32>, vector<32x16xf32>, vector<32x16xf32> -> vector<32x16xf32>
    %283 = vector.extract_strided_slice %262 {offsets = [0, 16], sizes = [32, 16], strides = [1, 1]} : vector<32x96xf32> to vector<32x16xf32>
    %284 = vector.extract_strided_slice %262 {offsets = [0, 32], sizes = [32, 32], strides = [1, 1]} : vector<32x96xf32> to vector<32x32xf32>
    %285 = vector.extract_strided_slice %284 {offsets = [0, 16], sizes = [32, 16], strides = [1, 1]} : vector<32x32xf32> to vector<32x16xf32>
    %286 = vector.extract_strided_slice %262 {offsets = [0, 64], sizes = [32, 32], strides = [1, 1]} : vector<32x96xf32> to vector<32x32xf32>
    %287 = vector.extract_strided_slice %286 {offsets = [0, 16], sizes = [32, 16], strides = [1, 1]} : vector<32x32xf32> to vector<32x16xf32>
    %cst_113 = arith.constant dense<0.000000e+00> : vector<32x32xf32>
    %288 = tpu.matmul %283, %285, %cst_113 {dimension_numbers = #tpu.dot_dimension_numbers<[1], [1], [0], [0], [0, 0, 1, 0], [], []>} : vector<32x16xf32>, vector<32x16xf32>, vector<32x32xf32> -> vector<32x32xf32>
    %cst_114 = arith.constant 2.500000e-01 : f32
    %289 = vector.broadcast %cst_114 : f32 to vector<32x32xf32>
    %290 = arith.mulf %288, %289 : vector<32x32xf32>
    %291 = arith.addf %290, %31 : vector<32x32xf32>
    %cst_115 = arith.constant dense<0xFF800000> : vector<32xf32>
    %292 = vector.multi_reduction <maximumf>, %291, %cst_115 [1] : vector<32x32xf32> to vector<32xf32>
    %293 = vector.shape_cast %292 : vector<32xf32> to vector<32x1xf32>
    %294 = vector.broadcast %293 : vector<32x1xf32> to vector<32x32xf32>
    %295 = arith.subf %291, %294 : vector<32x32xf32>
    %296 = math.exp %295 : vector<32x32xf32>
    %cst_116 = arith.constant dense<0.000000e+00> : vector<32xf32>
    %297 = vector.multi_reduction <add>, %296, %cst_116 [1] : vector<32x32xf32> to vector<32xf32>
    %298 = vector.shape_cast %297 : vector<32xf32> to vector<32x1xf32>
    %299 = tpu.reciprocal %298 {approx = true} : vector<32x1xf32> -> vector<32x1xf32>
    %300 = vector.broadcast %299 : vector<32x1xf32> to vector<32x32xf32>
    %301 = arith.mulf %296, %300 : vector<32x32xf32>
    %cst_117 = arith.constant dense<0.000000e+00> : vector<32x16xf32>
    %302 = tpu.matmul %301, %287, %cst_117 {dimension_numbers = #tpu.dot_dimension_numbers<[1], [0], [0], [1], [0, 0, 1, 1], [], []>} : vector<32x32xf32>, vector<32x16xf32>, vector<32x16xf32> -> vector<32x16xf32>
    %303 = tpu.concatenate %282, %302 in 1 : vector<32x16xf32>, vector<32x16xf32> -> vector<32x32xf32>
    %304 = vector.extract_strided_slice %261 {offsets = [32, 0], sizes = [32, 96], strides = [1, 1]} : vector<64x96xf32> to vector<32x96xf32>
    %305 = vector.extract_strided_slice %304 {offsets = [0, 0], sizes = [32, 16], strides = [1, 1]} : vector<32x96xf32> to vector<32x16xf32>
    %306 = vector.extract_strided_slice %304 {offsets = [0, 32], sizes = [32, 32], strides = [1, 1]} : vector<32x96xf32> to vector<32x32xf32>
    %307 = vector.extract_strided_slice %306 {offsets = [0, 0], sizes = [32, 16], strides = [1, 1]} : vector<32x32xf32> to vector<32x16xf32>
    %308 = vector.extract_strided_slice %304 {offsets = [0, 64], sizes = [32, 32], strides = [1, 1]} : vector<32x96xf32> to vector<32x32xf32>
    %309 = vector.extract_strided_slice %308 {offsets = [0, 0], sizes = [32, 16], strides = [1, 1]} : vector<32x32xf32> to vector<32x16xf32>
    %cst_118 = arith.constant dense<0.000000e+00> : vector<32x32xf32>
    %310 = tpu.matmul %305, %307, %cst_118 {dimension_numbers = #tpu.dot_dimension_numbers<[1], [1], [0], [0], [0, 0, 1, 0], [], []>} : vector<32x16xf32>, vector<32x16xf32>, vector<32x32xf32> -> vector<32x32xf32>
    %cst_119 = arith.constant 2.500000e-01 : f32
    %311 = vector.broadcast %cst_119 : f32 to vector<32x32xf32>
    %312 = arith.mulf %310, %311 : vector<32x32xf32>
    %313 = arith.addf %312, %50 : vector<32x32xf32>
    %cst_120 = arith.constant dense<0xFF800000> : vector<32xf32>
    %314 = vector.multi_reduction <maximumf>, %313, %cst_120 [1] : vector<32x32xf32> to vector<32xf32>
    %315 = vector.shape_cast %314 : vector<32xf32> to vector<32x1xf32>
    %316 = vector.broadcast %315 : vector<32x1xf32> to vector<32x32xf32>
    %317 = arith.subf %313, %316 : vector<32x32xf32>
    %318 = math.exp %317 : vector<32x32xf32>
    %cst_121 = arith.constant dense<0.000000e+00> : vector<32xf32>
    %319 = vector.multi_reduction <add>, %318, %cst_121 [1] : vector<32x32xf32> to vector<32xf32>
    %320 = vector.shape_cast %319 : vector<32xf32> to vector<32x1xf32>
    %321 = tpu.reciprocal %320 {approx = true} : vector<32x1xf32> -> vector<32x1xf32>
    %322 = vector.broadcast %321 : vector<32x1xf32> to vector<32x32xf32>
    %323 = arith.mulf %318, %322 : vector<32x32xf32>
    %cst_122 = arith.constant dense<0.000000e+00> : vector<32x16xf32>
    %324 = tpu.matmul %323, %309, %cst_122 {dimension_numbers = #tpu.dot_dimension_numbers<[1], [0], [0], [1], [0, 0, 1, 1], [], []>} : vector<32x32xf32>, vector<32x16xf32>, vector<32x16xf32> -> vector<32x16xf32>
    %325 = vector.extract_strided_slice %304 {offsets = [0, 16], sizes = [32, 16], strides = [1, 1]} : vector<32x96xf32> to vector<32x16xf32>
    %326 = vector.extract_strided_slice %304 {offsets = [0, 32], sizes = [32, 32], strides = [1, 1]} : vector<32x96xf32> to vector<32x32xf32>
    %327 = vector.extract_strided_slice %326 {offsets = [0, 16], sizes = [32, 16], strides = [1, 1]} : vector<32x32xf32> to vector<32x16xf32>
    %328 = vector.extract_strided_slice %304 {offsets = [0, 64], sizes = [32, 32], strides = [1, 1]} : vector<32x96xf32> to vector<32x32xf32>
    %329 = vector.extract_strided_slice %328 {offsets = [0, 16], sizes = [32, 16], strides = [1, 1]} : vector<32x32xf32> to vector<32x16xf32>
    %cst_123 = arith.constant dense<0.000000e+00> : vector<32x32xf32>
    %330 = tpu.matmul %325, %327, %cst_123 {dimension_numbers = #tpu.dot_dimension_numbers<[1], [1], [0], [0], [0, 0, 1, 0], [], []>} : vector<32x16xf32>, vector<32x16xf32>, vector<32x32xf32> -> vector<32x32xf32>
    %cst_124 = arith.constant 2.500000e-01 : f32
    %331 = vector.broadcast %cst_124 : f32 to vector<32x32xf32>
    %332 = arith.mulf %330, %331 : vector<32x32xf32>
    %333 = arith.addf %332, %50 : vector<32x32xf32>
    %cst_125 = arith.constant dense<0xFF800000> : vector<32xf32>
    %334 = vector.multi_reduction <maximumf>, %333, %cst_125 [1] : vector<32x32xf32> to vector<32xf32>
    %335 = vector.shape_cast %334 : vector<32xf32> to vector<32x1xf32>
    %336 = vector.broadcast %335 : vector<32x1xf32> to vector<32x32xf32>
    %337 = arith.subf %333, %336 : vector<32x32xf32>
    %338 = math.exp %337 : vector<32x32xf32>
    %cst_126 = arith.constant dense<0.000000e+00> : vector<32xf32>
    %339 = vector.multi_reduction <add>, %338, %cst_126 [1] : vector<32x32xf32> to vector<32xf32>
    %340 = vector.shape_cast %339 : vector<32xf32> to vector<32x1xf32>
    %341 = tpu.reciprocal %340 {approx = true} : vector<32x1xf32> -> vector<32x1xf32>
    %342 = vector.broadcast %341 : vector<32x1xf32> to vector<32x32xf32>
    %343 = arith.mulf %338, %342 : vector<32x32xf32>
    %cst_127 = arith.constant dense<0.000000e+00> : vector<32x16xf32>
    %344 = tpu.matmul %343, %329, %cst_127 {dimension_numbers = #tpu.dot_dimension_numbers<[1], [0], [0], [1], [0, 0, 1, 1], [], []>} : vector<32x32xf32>, vector<32x16xf32>, vector<32x16xf32> -> vector<32x16xf32>
    %345 = tpu.concatenate %324, %344 in 1 : vector<32x16xf32>, vector<32x16xf32> -> vector<32x32xf32>
    %346 = tpu.concatenate %303, %345 in 0 : vector<32x32xf32>, vector<32x32xf32> -> vector<64x32xf32>
    %347 = vector.extract_strided_slice %253 {offsets = [0, 96], sizes = [32, 32], strides = [1, 1]} : vector<32x128xf32> to vector<32x32xf32>
    %cst_128 = arith.constant dense<0.000000e+00> : vector<64x32xf32>
    %348 = tpu.matmul %346, %347, %cst_128 {dimension_numbers = #tpu.dot_dimension_numbers<[1], [0], [0], [1], [0, 0, 1, 1], [], []>} : vector<64x32xf32>, vector<32x32xf32>, vector<64x32xf32> -> vector<64x32xf32>
    %349 = vector.extract_strided_slice %9 {offsets = [14, 0], sizes = [1, 32], strides = [1, 1]} : vector<20x32xf32> to vector<1x32xf32>
    %350 = vector.broadcast %349 : vector<1x32xf32> to vector<64x32xf32>
    %351 = arith.addf %348, %350 : vector<64x32xf32>
    %352 = arith.addf %227, %351 : vector<64x32xf32>
    %353 = vector.extract_strided_slice %9 {offsets = [15, 0], sizes = [1, 32], strides = [1, 1]} : vector<20x32xf32> to vector<1x32xf32>
    %354 = vector.extract_strided_slice %9 {offsets = [16, 0], sizes = [1, 32], strides = [1, 1]} : vector<20x32xf32> to vector<1x32xf32>
    %cst_129 = arith.constant dense<0.000000e+00> : vector<64xf32>
    %355 = vector.multi_reduction <add>, %352, %cst_129 [1] : vector<64x32xf32> to vector<64xf32>
    %356 = vector.shape_cast %355 : vector<64xf32> to vector<64x1xf32>
    %cst_130 = arith.constant 3.200000e+01 : f32
    %357 = vector.broadcast %cst_130 : f32 to vector<64x1xf32>
    %358 = arith.divf %356, %357 : vector<64x1xf32>
    %359 = vector.broadcast %358 : vector<64x1xf32> to vector<64x32xf32>
    %360 = arith.subf %352, %359 : vector<64x32xf32>
    %361 = arith.mulf %360, %360 : vector<64x32xf32>
    %cst_131 = arith.constant dense<0.000000e+00> : vector<64xf32>
    %362 = vector.multi_reduction <add>, %361, %cst_131 [1] : vector<64x32xf32> to vector<64xf32>
    %363 = vector.shape_cast %362 : vector<64xf32> to vector<64x1xf32>
    %cst_132 = arith.constant 3.200000e+01 : f32
    %364 = vector.broadcast %cst_132 : f32 to vector<64x1xf32>
    %365 = arith.divf %363, %364 : vector<64x1xf32>
    %366 = vector.broadcast %358 : vector<64x1xf32> to vector<64x32xf32>
    %367 = arith.subf %352, %366 : vector<64x32xf32>
    %cst_133 = arith.constant 9.99999997E-7 : f32
    %368 = vector.broadcast %cst_133 : f32 to vector<64x1xf32>
    %369 = arith.addf %365, %368 : vector<64x1xf32>
    %370 = math.rsqrt %369 : vector<64x1xf32>
    %371 = vector.broadcast %370 : vector<64x1xf32> to vector<64x32xf32>
    %372 = arith.mulf %367, %371 : vector<64x32xf32>
    %373 = vector.broadcast %353 : vector<1x32xf32> to vector<64x32xf32>
    %374 = arith.mulf %372, %373 : vector<64x32xf32>
    %375 = vector.broadcast %354 : vector<1x32xf32> to vector<64x32xf32>
    %376 = arith.addf %374, %375 : vector<64x32xf32>
    %c1_134 = arith.constant 1 : index
    %c0_135 = arith.constant 0 : index
    %c0_136 = arith.constant 0 : index
    %377 = vector.load %arg10[%c1_134, %c0_135, %c0_136] : memref<2x32x64xf32, #tpu.memory_space<vmem>>, vector<1x32x64xf32>
    %378 = vector.shape_cast %377 : vector<1x32x64xf32> to vector<32x64xf32>
    %cst_137 = arith.constant dense<0.000000e+00> : vector<64x64xf32>
    %379 = tpu.matmul %376, %378, %cst_137 {dimension_numbers = #tpu.dot_dimension_numbers<[1], [0], [0], [1], [0, 0, 1, 1], [], []>} : vector<64x32xf32>, vector<32x64xf32>, vector<64x64xf32> -> vector<64x64xf32>
    %c1_138 = arith.constant 1 : index
    %c0_139 = arith.constant 0 : index
    %c0_140 = arith.constant 0 : index
    %380 = vector.load %arg11[%c1_138, %c0_139, %c0_140] : memref<2x1x64xf32, #tpu.memory_space<vmem>>, vector<1x1x64xf32>
    %381 = vector.shape_cast %380 : vector<1x1x64xf32> to vector<1x64xf32>
    %382 = vector.broadcast %381 : vector<1x64xf32> to vector<64x64xf32>
    %383 = arith.addf %379, %382 : vector<64x64xf32>
    %384 = arith.mulf %383, %383 : vector<64x64xf32>
    %385 = arith.mulf %383, %384 : vector<64x64xf32>
    %cst_141 = arith.constant 4.471500e-02 : f32
    %386 = vector.broadcast %cst_141 : f32 to vector<64x64xf32>
    %387 = arith.mulf %386, %385 : vector<64x64xf32>
    %388 = arith.addf %383, %387 : vector<64x64xf32>
    %cst_142 = arith.constant 0.797884583 : f32
    %389 = vector.broadcast %cst_142 : f32 to vector<64x64xf32>
    %390 = arith.mulf %389, %388 : vector<64x64xf32>
    %391 = math.tanh %390 : vector<64x64xf32>
    %cst_143 = arith.constant 1.000000e+00 : f32
    %392 = vector.broadcast %cst_143 : f32 to vector<64x64xf32>
    %393 = arith.addf %392, %391 : vector<64x64xf32>
    %cst_144 = arith.constant 5.000000e-01 : f32
    %394 = vector.broadcast %cst_144 : f32 to vector<64x64xf32>
    %395 = arith.mulf %394, %393 : vector<64x64xf32>
    %396 = arith.mulf %383, %395 : vector<64x64xf32>
    %c1_145 = arith.constant 1 : index
    %c0_146 = arith.constant 0 : index
    %c0_147 = arith.constant 0 : index
    %397 = vector.load %arg12[%c1_145, %c0_146, %c0_147] : memref<2x64x32xf32, #tpu.memory_space<vmem>>, vector<1x64x32xf32>
    %398 = vector.shape_cast %397 : vector<1x64x32xf32> to vector<64x32xf32>
    %cst_148 = arith.constant dense<0.000000e+00> : vector<64x32xf32>
    %399 = tpu.matmul %396, %398, %cst_148 {dimension_numbers = #tpu.dot_dimension_numbers<[1], [0], [0], [1], [0, 0, 1, 1], [], []>} : vector<64x64xf32>, vector<64x32xf32>, vector<64x32xf32> -> vector<64x32xf32>
    %400 = arith.addf %352, %399 : vector<64x32xf32>
    %401 = vector.extract_strided_slice %9 {offsets = [17, 0], sizes = [1, 32], strides = [1, 1]} : vector<20x32xf32> to vector<1x32xf32>
    %402 = vector.broadcast %401 : vector<1x32xf32> to vector<64x32xf32>
    %403 = arith.addf %400, %402 : vector<64x32xf32>
    %404 = vector.extract_strided_slice %9 {offsets = [18, 0], sizes = [1, 32], strides = [1, 1]} : vector<20x32xf32> to vector<1x32xf32>
    %405 = vector.extract_strided_slice %9 {offsets = [19, 0], sizes = [1, 32], strides = [1, 1]} : vector<20x32xf32> to vector<1x32xf32>
    %cst_149 = arith.constant dense<0.000000e+00> : vector<64xf32>
    %406 = vector.multi_reduction <add>, %403, %cst_149 [1] : vector<64x32xf32> to vector<64xf32>
    %407 = vector.shape_cast %406 : vector<64xf32> to vector<64x1xf32>
    %cst_150 = arith.constant 3.200000e+01 : f32
    %408 = vector.broadcast %cst_150 : f32 to vector<64x1xf32>
    %409 = arith.divf %407, %408 : vector<64x1xf32>
    %410 = vector.broadcast %409 : vector<64x1xf32> to vector<64x32xf32>
    %411 = arith.subf %403, %410 : vector<64x32xf32>
    %412 = arith.mulf %411, %411 : vector<64x32xf32>
    %cst_151 = arith.constant dense<0.000000e+00> : vector<64xf32>
    %413 = vector.multi_reduction <add>, %412, %cst_151 [1] : vector<64x32xf32> to vector<64xf32>
    %414 = vector.shape_cast %413 : vector<64xf32> to vector<64x1xf32>
    %cst_152 = arith.constant 3.200000e+01 : f32
    %415 = vector.broadcast %cst_152 : f32 to vector<64x1xf32>
    %416 = arith.divf %414, %415 : vector<64x1xf32>
    %417 = vector.broadcast %409 : vector<64x1xf32> to vector<64x32xf32>
    %418 = arith.subf %403, %417 : vector<64x32xf32>
    %cst_153 = arith.constant 9.99999997E-7 : f32
    %419 = vector.broadcast %cst_153 : f32 to vector<64x1xf32>
    %420 = arith.addf %416, %419 : vector<64x1xf32>
    %421 = math.rsqrt %420 : vector<64x1xf32>
    %422 = vector.broadcast %421 : vector<64x1xf32> to vector<64x32xf32>
    %423 = arith.mulf %418, %422 : vector<64x32xf32>
    %424 = vector.broadcast %404 : vector<1x32xf32> to vector<64x32xf32>
    %425 = arith.mulf %423, %424 : vector<64x32xf32>
    %426 = vector.broadcast %405 : vector<1x32xf32> to vector<64x32xf32>
    %427 = arith.addf %425, %426 : vector<64x32xf32>
    %428 = vector.extract_strided_slice %427 {offsets = [0, 0], sizes = [32, 32], strides = [1, 1]} : vector<64x32xf32> to vector<32x32xf32>
    %c0_154 = arith.constant 0 : index
    %c0_155 = arith.constant 0 : index
    %c0_156 = arith.constant 0 : index
    %429 = vector.load %arg14[%c0_154, %c0_155, %c0_156] : memref<2x32x32xf32, #tpu.memory_space<vmem>>, vector<1x32x32xf32>
    %430 = vector.shape_cast %429 : vector<1x32x32xf32> to vector<32x32xf32>
    %431 = vector.shape_cast %428 : vector<32x32xf32> to vector<1x32x32xf32>
    tpu.vector_store %arg14[%c0_154, %c0_155, %c0_156], %431 {strides = array<i32>} : memref<2x32x32xf32, #tpu.memory_space<vmem>>, vector<1x32x32xf32>,
    %432 = vector.extract_strided_slice %427 {offsets = [32, 0], sizes = [32, 32], strides = [1, 1]} : vector<64x32xf32> to vector<32x32xf32>
    %c1_157 = arith.constant 1 : index
    %c0_158 = arith.constant 0 : index
    %c0_159 = arith.constant 0 : index
    %433 = vector.load %arg14[%c1_157, %c0_158, %c0_159] : memref<2x32x32xf32, #tpu.memory_space<vmem>>, vector<1x32x32xf32>
    %434 = vector.shape_cast %433 : vector<1x32x32xf32> to vector<32x32xf32>
    %435 = vector.shape_cast %432 : vector<32x32xf32> to vector<1x32x32xf32>
    tpu.vector_store %arg14[%c1_157, %c0_158, %c0_159], %435 {strides = array<i32>} : memref<2x32x32xf32, #tpu.memory_space<vmem>>, vector<1x32x32xf32>,
    return
  }
  func.func @transform_0(%arg0: i32) -> (i32, i32, i32) {
    %c0_i32 = arith.constant 0 : i32
    %c0_i32_0 = arith.constant 0 : i32
    %c0_i32_1 = arith.constant 0 : i32
    %c0_i32_2 = arith.constant 0 : i32
    return %c0_i32, %c0_i32_0, %c0_i32_1 : i32, i32, i32
  }
  func.func @transform_1(%arg0: i32) -> (i32, i32, i32) {
    %c0_i32 = arith.constant 0 : i32
    %c0_i32_0 = arith.constant 0 : i32
    %c0_i32_1 = arith.constant 0 : i32
    %c0_i32_2 = arith.constant 0 : i32
    return %c0_i32, %c0_i32_0, %c0_i32_1 : i32, i32, i32
  }
  func.func @transform_2(%arg0: i32) -> (i32, i32, i32) {
    %c0_i32 = arith.constant 0 : i32
    %c0_i32_0 = arith.constant 0 : i32
    %c0_i32_1 = arith.constant 0 : i32
    %c0_i32_2 = arith.constant 0 : i32
    return %c0_i32, %c0_i32_0, %c0_i32_1 : i32, i32, i32
  }
  func.func @transform_3(%arg0: i32) -> (i32, i32, i32) {
    %c0_i32 = arith.constant 0 : i32
    %c0_i32_0 = arith.constant 0 : i32
    %c0_i32_1 = arith.constant 0 : i32
    %c0_i32_2 = arith.constant 0 : i32
    return %c0_i32, %c0_i32_0, %c0_i32_1 : i32, i32, i32
  }
  func.func @transform_4(%arg0: i32) -> (i32, i32) {
    %c0_i32 = arith.constant 0 : i32
    %c0_i32_0 = arith.constant 0 : i32
    %c0_i32_1 = arith.constant 0 : i32
    return %c0_i32, %c0_i32_0 : i32, i32
  }
  func.func @transform_5(%arg0: i32) -> (i32, i32) {
    %c0_i32 = arith.constant 0 : i32
    %c0_i32_0 = arith.constant 0 : i32
    %c0_i32_1 = arith.constant 0 : i32
    return %c0_i32, %c0_i32_0 : i32, i32
  }
  func.func @transform_6(%arg0: i32) -> (i32, i32, i32) {
    %c0_i32 = arith.constant 0 : i32
    %c0_i32_0 = arith.constant 0 : i32
    %c0_i32_1 = arith.constant 0 : i32
    %c0_i32_2 = arith.constant 0 : i32
    return %c0_i32, %c0_i32_0, %c0_i32_1 : i32, i32, i32
  }
  func.func @transform_7(%arg0: i32) -> (i32, i32) {
    %c0_i32 = arith.constant 0 : i32
    %c0_i32_0 = arith.constant 0 : i32
    %c0_i32_1 = arith.constant 0 : i32
    return %c0_i32, %c0_i32_0 : i32, i32
  }
  func.func @transform_8(%arg0: i32) -> (i32, i32, i32) {
    %c0_i32 = arith.constant 0 : i32
    %c0_i32_0 = arith.constant 0 : i32
    %c0_i32_1 = arith.constant 0 : i32
    %c0_i32_2 = arith.constant 0 : i32
    return %c0_i32, %c0_i32_0, %c0_i32_1 : i32, i32, i32
  }
  func.func @transform_9(%arg0: i32) -> (i32, i32, i32) {
    %c0_i32 = arith.constant 0 : i32
    %c0_i32_0 = arith.constant 0 : i32
    %c0_i32_1 = arith.constant 0 : i32
    %c0_i32_2 = arith.constant 0 : i32
    return %c0_i32, %c0_i32_0, %c0_i32_1 : i32, i32, i32
  }
  func.func @transform_10(%arg0: i32) -> (i32, i32, i32) {
    %c0_i32 = arith.constant 0 : i32
    %c0_i32_0 = arith.constant 0 : i32
    %c0_i32_1 = arith.constant 0 : i32
    %c0_i32_2 = arith.constant 0 : i32
    return %c0_i32, %c0_i32_0, %c0_i32_1 : i32, i32, i32
  }
  func.func @transform_11(%arg0: i32) -> (i32, i32, i32) {
    %c0_i32 = arith.constant 0 : i32
    %c0_i32_0 = arith.constant 0 : i32
    %c0_i32_1 = arith.constant 0 : i32
    %c0_i32_2 = arith.constant 0 : i32
    return %c0_i32, %c0_i32_0, %c0_i32_1 : i32, i32, i32
  }
  func.func @transform_12(%arg0: i32) -> (i32, i32) {
    %c0_i32 = arith.constant 0 : i32
    %c0_i32_0 = arith.constant 0 : i32
    %c0_i32_1 = arith.constant 0 : i32
    return %c0_i32, %c0_i32_0 : i32, i32
  }
  func.func @transform_13(%arg0: i32) -> (i32, i32, i32) {
    %c0_i32 = arith.constant 0 : i32
    %c0_i32_0 = arith.constant 0 : i32
    %c0_i32_1 = arith.constant 0 : i32
    %c0_i32_2 = arith.constant 0 : i32
    return %c0_i32, %c0_i32_0, %c0_i32_1 : i32, i32, i32
  }
}

</mosaic_0001>

<bundles_post_ra>
// kernel: tpu_custom_call.1
= control target key start
LH: loop header
LB: loop body
LE: loop exit
PB: predicated region body
PF: predicated region fallthrough
CT: control target
= control target key end

     0   :  { %18 = vsyncpa [#allocation3], 0  ;;  %s8838_s0 = inlined_call_operand.hbm [shape: f32[2,4,16], index: 0, kind: input, shape index: {}]   ;;  %s8839_s1 = inlined_call_operand.hbm [shape: f32[2,16,24], index: 1, kind: input, shape index: {}]   ;;  %s8840_s2 = inlined_call_operand.hbm [shape: f32[2,8,24], index: 2, kind: input, shape index: {}]   ;;  %s8841_s3 = inlined_call_operand.vmem [shape: f32[2,1,32], index: 3, kind: input, shape index: {}]   ;;  %s8842_s4 = inlined_call_operand.hbm [shape: f32[32,32], index: 4, kind: input, shape index: {}]   ;;  %s8843_s5 = inlined_call_operand.hbm [shape: f32[32,28], index: 5, kind: input, shape index: {}]   ;;  %s8844_s6 = inlined_call_operand.vmem [shape: f32[3,24,32], index: 6, kind: input, shape index: {}]   ;;  %s8845_s7 = inlined_call_operand.hbm [shape: f32[32,32], index: 7, kind: input, shape index: {}]   ;;  %s8846_s8 = inlined_call_operand.vmem [shape: f32[2,32,128], index: 8, kind: input, shape index: {}]   ;;  %s8847_s9 = inlined_call_operand.vmem [shape: f32[2,32,64], index: 9, kind: input, shape index: {}]   ;;  %s8848_s10 = inlined_call_operand.vmem [shape: f32[2,1,64], index: 10, kind: input, shape index: {}]   ;;  %s8849_s11 = inlined_call_operand.vmem [shape: f32[2,64,32], index: 11, kind: input, shape index: {}]   ;;  %s8850_s12 = inlined_call_operand.hbm [shape: f32[20,32], index: 12, kind: input, shape index: {}]   ;;  %s8851_s13 = inlined_call_operand.hbm [shape: f32[2,32,32], index: 13, kind: output, shape index: {}]  }
   0x1   :  { %19 = vsyncpa [#allocation6], 0 }
   0x2   :  { %20 = vsyncpa [#allocation9], 0 }
   0x3   :  { %21 = vsyncpa [#allocation12], 0 }
   0x4   :  { %22 = vsyncpa [#allocation4], 0  ;;  %s7001_s25 = smov [#allocation5]  }
   0x5   :  { %s40_s26 = sshll.u32 %s7001_s25, 4  ;;  %s41_s26 = int_to_ptr.vmem [resolvable:$true] %s40_s26 }
   0x6   :  { %s6839_s27 = scalar_lea.vmem %s41_s26, 512  ;;  %p6844_p1 = scmp.lt.s32.totalorder %s41_s26, %s41_s26 }
   0x7   :  { %p6840_p0 = scmp.ne.s32.totalorder %s41_s26, %s6839_s27  ;;  %p6845_p2 = scmp.lt.s32.totalorder %s6839_s27, %s6839_s27 }
   0x9   :  { %p6846_p3 = por %p6845_p2, %p6844_p1 }
   0xb   :  { %p6847_p4 = pnand %p6846_p3, %p6840_p0 }
   0xd   :  { %6850 = shalt.err (!%p6847_p4)
}
   0xe   :  { %s7002_s28 = smov 128   ;;  %s7003_s29 = smov 8  }
   0xf   :  { %46 = dma.hbm_to_vmem [thread:$0]  %s8839_s1, 512, %s41_s26, [#allocation6], %s7002_s28, %s7002_s28, %s7003_s29  }
  0x10   :  { %s7004_s15 = smov [#allocation8]   ;;  %s7005_s17 = smov [#allocation11]  }
  0x11   :  { %s66_s16 = sshll.u32 %s7004_s15, 4  ;;  %s92_s18 = sshll.u32 %s7005_s17, 4  ;;  %s67_s16 = int_to_ptr.vmem [resolvable:$true] %s66_s16  ;;  %s93_s18 = int_to_ptr.vmem [resolvable:$true] %s92_s18 }
  0x12   :  { %s6859_s19 = scalar_lea.vmem %s67_s16, 512  ;;  %p6864_p6 = scmp.lt.s32.totalorder %s67_s16, %s67_s16 }
  0x13   :  { %p6860_p5 = scmp.ne.s32.totalorder %s67_s16, %s6859_s19  ;;  %p6865_p7 = scmp.lt.s32.totalorder %s6859_s19, %s6859_s19 }
  0x15   :  { %p6866_p8 = por %p6865_p7, %p6864_p6 }
  0x17   :  { %p6867_p9 = pnand %p6866_p8, %p6860_p5 }
  0x19   :  { %6870 = shalt.err (!%p6867_p9)
}
  0x1a   :  { %72 = dma.hbm_to_vmem [thread:$0]  %s8842_s4, 512, %s67_s16, [#allocation9], %s7002_s28, %s7002_s28, %s7003_s29  }
  0x1b   :  { %s6879_s1 = scalar_lea.vmem %s93_s18, 512  ;;  %p6884_p11 = scmp.lt.s32.totalorder %s93_s18, %s93_s18 }
  0x1c   :  { %p6880_p10 = scmp.ne.s32.totalorder %s93_s18, %s6879_s1  ;;  %p6885_p12 = scmp.lt.s32.totalorder %s6879_s1, %s6879_s1 }
  0x1e   :  { %p6886_p13 = por %p6885_p12, %p6884_p11 }
  0x20   :  { %p6887_p0 = pnand %p6886_p13, %p6880_p10 }
  0x22   :  { %6890 = shalt.err (!%p6887_p0)
}
  0x23   :  { %98 = dma.hbm_to_vmem [thread:$0]  %s8845_s7, 512, %s93_s18, [#allocation12], %s7002_s28, %s7002_s28, %s7003_s29  }
  0x24   :  { %s7006_s24 = smov [#allocation2]  }
  0x25   :  { %s28_s25 = sshll.u32 %s7006_s24, 4  ;;  %s29_s25 = int_to_ptr.vmem [resolvable:$true] %s28_s25 }
  0x26   :  { %s6899_s26 = scalar_lea.vmem %s29_s25, 128  ;;  %p6904_p2 = scmp.lt.s32.totalorder %s29_s25, %s29_s25 }
  0x27   :  { %p6900_p1 = scmp.ne.s32.totalorder %s29_s25, %s6899_s26  ;;  %p6905_p3 = scmp.lt.s32.totalorder %s6899_s26, %s6899_s26 }
  0x29   :  { %p6906_p4 = por %p6905_p3, %p6904_p2 }
  0x2b   :  { %p6907_p5 = pnand %p6906_p4, %p6900_p1 }
  0x2d   :  { %6910 = shalt.err (!%p6907_p5)
}
  0x2e   :  { %s7007_s4 = smov 64   ;;  %s7008_s27 = smov 4  }
  0x2f   :  { %34 = dma.hbm_to_vmem [thread:$0]  %s8838_s0, 128, %s29_s25, [#allocation3], %s7007_s4, %s7007_s4, %s7008_s27  }
  0x30   :  { %s7009_s15 = smov [#allocation7]   ;;  %s7010_s16 = smov [#allocation10]  }
  0x31   :  { %s52_s7 = sshll.u32 %s7009_s15, 4  ;;  %s78_s17 = sshll.u32 %s7010_s16, 4  ;;  %s53_s7 = int_to_ptr.vmem [resolvable:$true] %s52_s7  ;;  %s79_s17 = int_to_ptr.vmem [resolvable:$true] %s78_s17 }
  0x32   :  { %s6919_s18 = scalar_lea.vmem %s53_s7, 256  ;;  %p6924_p7 = scmp.lt.s32.totalorder %s53_s7, %s53_s7 }
  0x33   :  { %p6920_p6 = scmp.ne.s32.totalorder %s53_s7, %s6919_s18  ;;  %p6925_p8 = scmp.lt.s32.totalorder %s6919_s18, %s6919_s18 }
  0x35   :  { %p6926_p9 = por %p6925_p8, %p6924_p7 }
  0x37   :  { %p6927_p10 = pnand %p6926_p9, %p6920_p6 }
  0x39   :  { %6930 = shalt.err (!%p6927_p10)
}
  0x3a   :  { %58 = dma.hbm_to_vmem [thread:$0]  %s8840_s2, 256, %s53_s7, [#allocation6], %s7002_s28, %s7002_s28, %s7003_s29  }
  0x3b   :  { %s6939_s0 = scalar_lea.vmem %s79_s17, 512  ;;  %p6944_p12 = scmp.lt.s32.totalorder %s79_s17, %s79_s17 }
  0x3c   :  { %p6940_p11 = scmp.ne.s32.totalorder %s79_s17, %s6939_s0  ;;  %p6945_p13 = scmp.lt.s32.totalorder %s6939_s0, %s6939_s0 }
  0x3e   :  { %p6946_p0 = por %p6945_p13, %p6944_p12 }
  0x40   :  { %p6947_p1 = pnand %p6946_p0, %p6940_p11 }
  0x42   :  { %6950 = shalt.err (!%p6947_p1)
}
  0x43   :  { %84 = dma.hbm_to_vmem [thread:$0]  %s8843_s5, 512, %s79_s17, [#allocation9], %s7002_s28, %s7002_s28, %s7003_s29  }
  0x44   :  { %s7011_s22 = smov [#allocation13]  }
  0x45   :  { %s112_s23 = sshll.u32 %s7011_s22, 4  ;;  %s113_s23 = int_to_ptr.vmem [resolvable:$true] %s112_s23 }
  0x46   :  { %s6959_s24 = scalar_lea.vmem %s113_s23, 384  ;;  %p6964_p3 = scmp.lt.s32.totalorder %s113_s23, %s113_s23 }
  0x47   :  { %p6960_p2 = scmp.ne.s32.totalorder %s113_s23, %s6959_s24  ;;  %p6965_p4 = scmp.lt.s32.totalorder %s6959_s24, %s6959_s24 }
  0x49   :  { %p6966_p5 = por %p6965_p4, %p6964_p3 }
  0x4b   :  { %p6967_p6 = pnand %p6966_p5, %p6960_p2 }
  0x4d   :  { %6970 = shalt.err (!%p6967_p6)
}
  0x4e   :  { %118 = dma.hbm_to_vmem [thread:$0]  %s8850_s12, 384, %s113_s23, [#allocation12], %s7002_s28, %s7002_s28, %s7003_s29  }
  0x4f   :  { %6991 = dma.done.wait [#allocation3], 128  }
  0x50   :  { %6992 = vsyncadd [#allocation3], 4294967168 }
  0x51   :  { %6993 = dma.done.wait [#allocation6], 768  }
  0x52   :  { %6994 = vsyncadd [#allocation6], 4294966528 }
  0x53   :  { %6995 = dma.done.wait [#allocation9], 1024  }
  0x54   :  { %6996 = vsyncadd [#allocation9], 4294966272 }
  0x55   :  { %6997 = dma.done.wait [#allocation12], 896  }
  0x56   :  { %6998 = vsyncadd [#allocation12], 4294966400  ;;  %v7012_v0 = vmov 0.0   ;;  %vm7013_vm0 = vmmov 0   ;;  %v141_v1 = vld [vmem:[%s8844_s6 + $0x8] sm:$0xff]  ;;  %v140_v2 = vld [vmem:[%s8844_s6] sm:$0xff] }
  0x57   :  { %6056 = vmatprep.subr.mxu0 %v7012_v0  ;;  %6060 = vmatprep.mubr.msk.f32.mxu0 %vm7013_vm0, %v7012_v0  ;;  %v165_v3 = vld [vmem:[#allocation2] sm:$0xf]  ;;  %vm166_vm1 = vcmask 130048   ;;  %v7146_v4 = vld [vmem:[%s8844_s6 + $0x28] sm:$0xff]  ;;  %vm242_vm2 = vcmask 195584   ;;  %v7156_v7 = vld [vmem:[#allocation10] sm:$0xff] }
  0x58   :  { %6057 = vmatpush3.msra.mxu0 %v141_v1  ;;  %v240_v5 = vld [vmem:[#allocation5] sm:$0xff]  ;;  %v7152_v6 = vld [vmem:[%s8844_s6 + $0x20] sm:$0xff]  ;;  %v7164_v9 = vld [vmem:[%s8844_s6 + $0x18] sm:$0xff]  ;;  %s7014_s18 = smov 124   ;;  %s7015_s23 = smov 108   ;;  %vm503_vm3 = vcmask 31744  }
  0x59   :  { %6058 = vmatprep.subr.mxu0 %v7012_v0  ;;  %v7158_v8 = vld [vmem:[#allocation10 + $0x10] sm:$0xff]  ;;  %402 = vrot.lane.b32.xlu0 %v7156_v7, %s7014_s18  ;;  %v241_v10 = vld [vmem:[#allocation5 + $0x8] sm:$0xff]  ;;  %v5551_v11 = vld [vmem:[%s8844_s6 + $0x40] sm:$0xff]  ;;  %vm512_vm4 = vcmask 1043456   ;;  %vm609_vm5 = vcmask 64512   ;;  %vm1234_vm6 = vcmask 261120  }
  0x5a   :  { %6059 = vmatpush3.msra.mxu0 %v140_v2  ;;  %406 = vrot.lane.b32.xlu1 %v7158_v8, %s7014_s18  ;;  %v7176_v12 = vld [vmem:[#allocation10 + $0x8] sm:$0xff]  ;;  %v5550_v13 = vld [vmem:[%s8844_s6 + $0x38] sm:$0xff]  ;;  %v7183_v14 = vld [vmem:[#allocation10 + $0x18] sm:$0xff]  ;;  %s7016_s30 = smov 32   ;;  %vm1378_vm7 = vcmask 523264   ;;  %s7017_s14 = smov 112  }
  0x5b   :  { %6061 = vmatmul.mubr.msk.f32.vlgmr.msra.gmra.mxu0 %vm166_vm1, %v165_v3  ;;  %6063 = vmatprep.subr.mxu0 %v7146_v4  ;;  %v5549_v15 = vld [vmem:[%s8844_s6 + $0x30] sm:$0xff]  ;;  %v324_v16 = vld [vmem:[#allocation7] sm:$0xff]  ;;  %v723_v25 = vld [vmem:[#allocation2 + $0x4] sm:$0xf]  ;;  %s7018_s15 = smov 96   ;;  %s7019_s7 = smov 80  }
  0x5c   :  { %6064 = vmatpush3.msra.mxu0 %v7146_v4  ;;  %6069 = vmatprep.mubr.msk.f32.mxu0 %vm242_vm2, %v240_v5  ;;  %v882_v30 = vld [vmem:[#allocation7 + $0x8] sm:$0xff]  ;;  %v798_v33 = vld [vmem:[#allocation5 + $0x10] sm:$0xff]  ;;  %v799_v34 = vld [vmem:[#allocation5 + $0x18] sm:$0xff]  ;;  %s7021_s21 = smov 16  }
  0x5d   :  { %6065 = vmatprep.subr.mxu0 %v7152_v6  ;;  %404 = vrot.lane.b32.xlu0 %v7176_v12, %s7014_s18  ;;  %v7268_v47 = vld [vmem:[#allocation11 + $0x8] sm:$0xff]  ;;  %v7270_v52 = vld [vmem:[#allocation11] sm:$0xff]  ;;  %v7280_v61 = vld [vmem:[#allocation11 + $0x10] sm:$0xff] }
  0x5e   :  { %6066 = vmatpush3.msra.mxu0 %v7152_v6  ;;  %408 = vrot.lane.b32.xlu1 %v7183_v14, %s7014_s18  ;;  %s7020_s18 = smov 48  }
  0x5f   :  { %6067 = vmatprep.subr.mxu0 %v7164_v9 }
  0x60   :  { %6068 = vmatpush3.msra.mxu0 %v7164_v9 }
  0x61   :  { %6070 = vmatmul.mubr.msk.f32.vlgmr.msra.gmra.mxu0 %vm242_vm2, %v241_v10  ;;  %6072 = vmatprep.subr.mxu0 %v7012_v0 }
  0x62   :  { %6073 = vmatpush3.msra.mxu0 %v5551_v11  ;;  %6078 = vmatprep.mubr.msk.f32.mxu0 %vm7013_vm0, %v7012_v0 }
  0x63   :  { %6074 = vmatprep.subr.mxu0 %v7012_v0  ;;  %601 = vrot.lane.b32.xlu0 %v7156_v7, %s7015_s23 }
  0x64   :  { %6075 = vmatpush3.msra.mxu0 %v5550_v13  ;;  %603 = vrot.lane.b32.xlu1 %v7176_v12, %s7015_s23 }
  0x65   :  { %6076 = vmatprep.subr.mxu0 %v7012_v0 }
  0x66   :  { %6077 = vmatpush3.msra.mxu0 %v5549_v15 }
  0x67   :  { %6079 = vmatmul.mubr.msk.f32.vlgmr.msra.gmra.mxu0 %vm242_vm2, %v324_v16  ;;  %605 = vrot.lane.b32.xlu0 %v7158_v8, %s7015_s23 }
  0x68   :  { %607 = vrot.lane.b32.xlu1 %v7183_v14, %s7015_s23  ;;  %6093 = vmatprep.mubr.msk.f32.mxu0 %vm503_vm3, %v7156_v7 }
  0xcb   :  { %v403_v17 = vpop.permute.xlu0 %402 }
  0xcc   :  { %6085 = vmatprep.mubr.msk.f32.mxu1 %vm166_vm1, %v403_v17  ;;  %v7204_v20 = vpop.permute.xlu1 %406 }
  0xcf   :  { %v7212_v22 = vpop.permute.xlu0 %404 }
  0xd0   :  { %v7216_v24 = vpop.permute.xlu1 %408 }
  0xd5   :  { %v7223_v26 = vpop.permute.xlu0 %601 }
  0xd6   :  { %v7229_v29 = vpop.permute.xlu1 %603 }
  0xd9   :  { %v7237_v31 = vpop.permute.xlu0 %605 }
  0xda   :  { %v7246_v32 = vpop.permute.xlu1 %607 }
 0x11b   :  { %v236_v18 = vpop.f32.mrf.mxu0 }
 0x11c   :  { %6091 = vmatprep.subr.msk.mxu0 %vm512_vm4, %v236_v18 }
 0x11d   :  { %v6062_v19 = vpop.f32.mrf.mxu0  ;;  %6092 = vmatpush3.msk.msra.mxu0 %vm512_vm4, %v236_v18 }
 0x11e   :  { %6094 = vmatmul.mubr.msk.f32.vlgmr.msra.gmra.mxu0 %vm503_vm3, %v7176_v12  ;;  %6107 = vmatprep.subr.mxu0 %v7012_v0 }
 0x11f   :  { %6096 = vmatprep.mubr.msk.f32.mxu0 %vm503_vm3, %v7158_v8  ;;  %6108 = vmatpush3.msra.mxu0 %v141_v1 }
 0x120   :  { %6109 = vmatprep.subr.mxu0 %v7012_v0 }
 0x121   :  { %v6071_v21 = vpop.f32.mrf.mxu0  ;;  %6110 = vmatpush3.msra.mxu0 %v140_v2  ;;  %v7284_v2 = vld [vmem:[#allocation11 + $0x18] sm:$0xff] }
 0x122   :  { %6081 = vmatprep.subr.mxu1 %v6071_v21  ;;  %6097 = vmatmul.mubr.msk.f32.gmra.mxu0 %vm503_vm3, %v7183_v14 }
 0x123   :  { %v315_v23 = vpop.f32.mrf.mxu0  ;;  %6082 = vmatpush3.msra.mxu1 %v6071_v21  ;;  %6111 = vmatprep.mubr.msk.f32.mxu0 %vm7013_vm0, %v7012_v0 }
 0x124   :  { %6083 = vmatprep.subr.mxu1 %v315_v23  ;;  %6123 = vmatprep.subr.mxu0 %v7012_v0 }
 0x125   :  { %6084 = vmatpush3.msra.mxu1 %v315_v23 }
 0x126   :  { %6086 = vmatmul.mubr.msk.f32.vlgmr.msra.gmra.mxu1 %vm166_vm1, %v7212_v22  ;;  %6112 = vmatmul.mubr.msk.f32.vlgmr.msra.gmra.mxu0 %vm166_vm1, %v723_v25 }
 0x127   :  { %v394_v27 = vpop.f32.mrf.mxu0  ;;  %6088 = vmatprep.mubr.msk.f32.mxu1 %vm166_vm1, %v7204_v20  ;;  %6124 = vmatpush3.msra.mxu0 %v5551_v11 }
 0x128   :  { %6099 = vmatprep.subr.mxu1 %v394_v27  ;;  %6125 = vmatprep.subr.mxu0 %v7012_v0 }
 0x129   :  { %v6080_v28 = vpop.f32.mrf.mxu0  ;;  %6100 = vmatpush3.msra.mxu1 %v394_v27  ;;  %6126 = vmatpush3.msra.mxu0 %v5550_v13 }
 0x12a   :  { %6089 = vmatmul.mubr.msk.f32.gmra.mxu1 %vm166_vm1, %v7216_v24  ;;  %6114 = vmatprep.subr.mxu1 %v7146_v4 }
 0x12b   :  { %6101 = vmatprep.mubr.msk.f32.mxu1 %vm609_vm5, %v7223_v26  ;;  %6127 = vmatprep.subr.mxu0 %v7012_v0 }
 0x12c   :  { %6128 = vmatpush3.msra.mxu0 %v5549_v15  ;;  %6129 = vmatprep.mubr.msk.f32.mxu0 %vm7013_vm0, %v7012_v0 }
 0x12d   :  { %6130 = vmatmul.mubr.msk.f32.vlgmr.msra.gmra.mxu0 %vm242_vm2, %v882_v30 }
 0x12e   :  { %6102 = vmatmul.mubr.msk.f32.vlgmr.msra.gmra.mxu1 %vm609_vm5, %v7229_v29  ;;  %6144 = vmatprep.mubr.msk.f32.mxu0 %vm503_vm3, %v7156_v7 }
 0x12f   :  { %6104 = vmatprep.mubr.msk.f32.mxu1 %vm609_vm5, %v7237_v31  ;;  %6115 = vmatpush3.msra.mxu1 %v7146_v4 }
 0x130   :  { %6116 = vmatprep.subr.mxu1 %v7152_v6 }
 0x131   :  { %6117 = vmatpush3.msra.mxu1 %v7152_v6 }
 0x132   :  { %6105 = vmatmul.mubr.msk.f32.gmra.mxu1 %vm609_vm5, %v7246_v32  ;;  %6118 = vmatprep.subr.mxu1 %v7164_v9 }
 0x133   :  { %6119 = vmatpush3.msra.mxu1 %v7164_v9  ;;  %6120 = vmatprep.mubr.msk.f32.mxu1 %vm242_vm2, %v798_v33  ;;  %v1365_v33 = vld [vmem:[%s8846_s8 + $0x8] sm:$0xff] }
 0x136   :  { %6121 = vmatmul.mubr.msk.f32.vlgmr.msra.gmra.mxu1 %vm242_vm2, %v799_v34  ;;  %v1364_v34 = vld [vmem:[%s8846_s8] sm:$0xff] }
 0x137   :  { %6136 = vmatprep.mubr.msk.f32.mxu1 %vm166_vm1, %v403_v17 }
 0x1de   :  { %v6095_v35 = vpop.f32.mrf.mxu0 }
 0x1e0   :  { %v582_v36 = vpop.f32.mrf.mxu0 }
 0x1e2   :  { %v6098_v37 = vpop.f32.mrf.mxu0 }
 0x1e4   :  { %v592_v38 = vpop.f32.mrf.mxu0 }
 0x1e6   :  { %v6087_v39 = vpop.f32.mrf.mxu1  ;;  %v793_v40 = vpop.f32.mrf.mxu0 }
 0x1e7   :  { %6142 = vmatprep.subr.msk.mxu0 %vm512_vm4, %v793_v40  ;;  %v588_v45 = vadd.f32 %v6095_v35, %v6087_v39 }
 0x1e8   :  { %v484_v41 = vpop.f32.mrf.mxu1  ;;  %6143 = vmatpush3.msk.msra.mxu0 %vm512_vm4, %v793_v40  ;;  %v6113_v42 = vpop.f32.mrf.mxu0 }
 0x1e9   :  { %6145 = vmatmul.mubr.msk.f32.vlgmr.msra.gmra.mxu0 %vm503_vm3, %v7176_v12  ;;  %v583_v49 = vadd.f32 %v582_v36, %v484_v41 }
 0x1ea   :  { %v6090_v43 = vpop.f32.mrf.mxu1  ;;  %6147 = vmatprep.mubr.msk.f32.mxu0 %vm503_vm3, %v7158_v8 }
 0x1eb   :  { %v598_v57 = vadd.f32 %v6098_v37, %v6090_v43 }
 0x1ec   :  { %v494_v44 = vpop.f32.mrf.mxu1 }
 0x1ed   :  { %6148 = vmatmul.mubr.msk.f32.gmra.mxu0 %vm503_vm3, %v7183_v14  ;;  %v952_v46 = vpop.f32.mrf.mxu0  ;;  %v593_v58 = vadd.f32 %v592_v38, %v494_v44 }
 0x1ee   :  { %v6103_v48 = vpop.f32.mrf.mxu1 }
 0x1ef   :  { %v704_v50 = vadd.f32 %v6103_v48, %v588_v45  ;;  %v6131_v51 = vpop.f32.mrf.mxu0 }
 0x1f0   :  { %v684_v53 = vpop.f32.mrf.mxu1 }
 0x1f1   :  { %v7273_v54 = vadd.f32 %v704_v50, %v7268_v47  ;;  %v703_v55 = vadd.f32 %v684_v53, %v583_v49 }
 0x1f2   :  { %v6106_v56 = vpop.f32.mrf.mxu1 }
 0x1f3   :  { %v7276_v59 = vadd.f32 %v703_v55, %v7270_v52  ;;  %v1238_v60 = vsel %vm1234_vm6, %v7273_v54, 0.0  ;;  %v706_v63 = vadd.f32 %v6106_v56, %v598_v57 }
 0x1f4   :  { %v694_v62 = vpop.f32.mrf.mxu1  ;;  %1239 = vadd.xlane.f32.xlu1 %v1238_v60  ;;  %v1340_v60 = vlaneseq }
 0x1f5   :  { %v705_v0 = vadd.f32 %v694_v62, %v593_v58  ;;  %v1235_v1 = vsel %vm1234_vm6, %v7276_v59, 0.0  ;;  %v7290_v6 = vadd.f32 %v706_v63, %v7284_v2 }
 0x1f6   :  { %v6122_v3 = vpop.f32.mrf.mxu1  ;;  %1236 = vadd.xlane.f32.xlu0 %v1235_v1 }
 0x1f7   :  { %v7287_v4 = vadd.f32 %v705_v0, %v7280_v61  ;;  %6132 = vmatprep.subr.mxu1 %v6122_v3  ;;  %v1244_v8 = vsel %vm1234_vm6, %v7290_v6, 0.0  ;;  %v7363_v0 = vshrl.u32 %v1340_v60, 7 }
 0x1f8   :  { %v872_v5 = vpop.f32.mrf.mxu1  ;;  %6133 = vmatpush3.msra.mxu1 %v6122_v3 }
 0x1f9   :  { %6134 = vmatprep.subr.mxu1 %v872_v5  ;;  %v1241_v7 = vsel %vm1234_vm6, %v7287_v4, 0.0 }
 0x1fa   :  { %6135 = vmatpush3.msra.mxu1 %v872_v5  ;;  %1242 = vadd.xlane.f32.xlu0 %v1241_v7  ;;  %v7366_v7 = vsub.s32 0, %v7363_v0 }
 0x1fb   :  { %6137 = vmatmul.mubr.msk.f32.vlgmr.msra.gmra.mxu1 %vm166_vm1, %v7212_v22  ;;  %6150 = vmatprep.subr.mxu1 %v952_v46 }
 0x1fc   :  { %6139 = vmatprep.mubr.msk.f32.mxu1 %vm166_vm1, %v7204_v20  ;;  %6151 = vmatpush3.msra.mxu1 %v952_v46 }
 0x1fe   :  { %1245 = vadd.xlane.f32.xlu0 %v1244_v8 }
 0x1ff   :  { %6140 = vmatmul.mubr.msk.f32.gmra.mxu1 %vm166_vm1, %v7216_v24 }
 0x200   :  { %6152 = vmatprep.mubr.msk.f32.mxu1 %vm609_vm5, %v7223_v26 }
 0x203   :  { %6153 = vmatmul.mubr.msk.f32.vlgmr.msra.gmra.mxu1 %vm609_vm5, %v7229_v29  ;;  %v7334_v29 = vld [vmem:[#allocation13] sm:$0xff] }
 0x204   :  { %6155 = vmatprep.mubr.msk.f32.mxu1 %vm609_vm5, %v7237_v31  ;;  %v1373_v30 = vrot.slane %v7334_v29, 2  ;;  %v1367_v31 = vld [vmem:[%s8846_s8 + $0x18] sm:$0xff]  ;;  %v1369_v50 = vrot.slane %v7334_v29, 1 }
 0x205   :  { %6158 = vmatprep.subr.mxu0 %v1367_v31 }
 0x206   :  { %6159 = vmatpush3.msra.mxu0 %v1367_v31 }
 0x207   :  { %6156 = vmatmul.mubr.msk.f32.gmra.mxu1 %vm609_vm5, %v7246_v32  ;;  %v1366_v32 = vld [vmem:[%s8846_s8 + $0x10] sm:$0xff] }
 0x208   :  { %6160 = vmatprep.subr.mxu0 %v1366_v32 }
 0x209   :  { %6161 = vmatpush3.msra.mxu0 %v1366_v32  ;;  %v7398_v32 = vsub.s32 2, %v7363_v0 }
 0x20a   :  { %6162 = vmatprep.subr.mxu0 %v1365_v33 }
 0x20b   :  { %6163 = vmatpush3.msra.mxu0 %v1365_v33 }
 0x20c   :  { %6164 = vmatprep.subr.mxu0 %v1364_v34 }
 0x20d   :  { %6165 = vmatpush3.msra.mxu0 %v1364_v34 }
 0x27d   :  { %v1240_v9 = vpop.xlane.xlu1 %1239 }
 0x27e   :  { %v1261_v10 = vmul.f32 0.03125, %v1240_v9  ;;  %v7370_v9 = vrot.slane %v7334_v29, %v7366_v7 }
 0x27f   :  { %v1237_v11 = vpop.xlane.xlu0 %1236 }
 0x280   :  { %v7311_v12 = vsub.f32 %v7273_v54, %v1261_v10  ;;  %v1260_v13 = vmul.f32 0.03125, %v1237_v11  ;;  %v7373_v10 = vsub.s32 1, %v7363_v0 }
 0x282   :  { %v7314_v14 = vsub.f32 %v7276_v59, %v1260_v13  ;;  %v1277_v15 = vmul.f32 %v7311_v12, %v7311_v12 }
 0x283   :  { %v1243_v16 = vpop.xlane.xlu0 %1242 }
 0x284   :  { %v1262_v17 = vmul.f32 0.03125, %v1243_v16  ;;  %v1287_v18 = vsel %vm1234_vm6, %v1277_v15, 0.0  ;;  %v1276_v19 = vmul.f32 %v7314_v14, %v7314_v14  ;;  %v7379_v16 = vrot.slane %v7334_v29, %v7373_v10 }
 0x285   :  { %1288 = vadd.xlane.f32.xlu0 %v1287_v18 }
 0x286   :  { %v7322_v20 = vsub.f32 %v7287_v4, %v1262_v17  ;;  %v1284_v21 = vsel %vm1234_vm6, %v1276_v19, 0.0 }
 0x287   :  { %1285 = vadd.xlane.f32.xlu1 %v1284_v21  ;;  %v1246_v22 = vpop.xlane.xlu0 %1245 }
 0x288   :  { %v1263_v23 = vmul.f32 0.03125, %v1246_v22  ;;  %v1278_v24 = vmul.f32 %v7322_v20, %v7322_v20 }
 0x28a   :  { %v7328_v25 = vsub.f32 %v7290_v6, %v1263_v23  ;;  %v1290_v26 = vsel %vm1234_vm6, %v1278_v24, 0.0 }
 0x28b   :  { %1291 = vadd.xlane.f32.xlu1 %v1290_v26 }
 0x28c   :  { %v1279_v27 = vmul.f32 %v7328_v25, %v7328_v25 }
 0x28e   :  { %v1293_v28 = vsel %vm1234_vm6, %v1279_v27, 0.0 }
 0x28f   :  { %1294 = vadd.xlane.f32.xlu0 %v1293_v28 }
 0x29c   :  { %1370 = vrot.lane.b32.xlu1 %v1369_v50, %s7016_s30 }
 0x2a5   :  { %1374 = vrot.lane.b32.xlu0 %v1373_v30, %s7007_s4 }
 0x2a9   :  { %v6146_v35 = vpop.f32.mrf.mxu0 }
 0x2ab   :  { %v1110_v40 = vpop.f32.mrf.mxu0 }
 0x2ad   :  { %v6149_v33 = vpop.f32.mrf.mxu0 }
 0x2bb   :  { %v6138_v36 = vpop.f32.mrf.mxu1 }
 0x2bc   :  { %v1116_v37 = vadd.f32 %v6146_v35, %v6138_v36  ;;  %v1120_v35 = vpop.f32.mrf.mxu0 }
 0x2bd   :  { %v1022_v38 = vpop.f32.mrf.mxu1 }
 0x2be   :  { %v1111_v43 = vadd.f32 %v1110_v40, %v1022_v38 }
 0x2bf   :  { %v7350_v39 = vpop.f32.mrf.mxu1 }
 0x2c1   :  { %v7352_v41 = vpop.f32.mrf.mxu1 }
 0x2c2   :  { %v1121_v50 = vadd.f32 %v1120_v35, %v7352_v41 }
 0x2c3   :  { %v6154_v42 = vpop.f32.mrf.mxu1 }
 0x2c4   :  { %v7354_v44 = vadd.f32 %v6154_v42, %v1116_v37 }
 0x2c5   :  { %v1195_v45 = vpop.f32.mrf.mxu1 }
 0x2c6   :  { %v1214_v46 = vadd.f32 %v1195_v45, %v1111_v43  ;;  %v7452_v41 = vadd.f32 %v7354_v44, %v7268_v47 }
 0x2c8   :  { %v7357_v48 = vadd.f32 %v1214_v46, %v7270_v52  ;;  %v6157_v46 = vpop.f32.mrf.mxu1 }
 0x2ca   :  { %v1247_v49 = vsel %vm1234_vm6, %v7357_v48, 0.0 }
 0x2cb   :  { %1248 = vadd.xlane.f32.xlu0 %v1247_v49  ;;  %v1205_v49 = vpop.f32.mrf.mxu1 }
 0x30e   :  { %v1289_v51 = vpop.xlane.xlu0 %1288 }
 0x30f   :  { %v1309_v53 = vmul.f32 0.03125, %v1289_v51  ;;  %v1216_v51 = vadd.f32 %v1205_v49, %v1121_v50 }
 0x310   :  { %v1286_v55 = vpop.xlane.xlu1 %1285 }
 0x311   :  { %v1317_v56 = vadd.f32 1e-06, %v1309_v53  ;;  %v1308_v57 = vmul.f32 0.03125, %v1286_v55  ;;  %v1126_v53 = vadd.f32 %v6149_v33, %v7350_v39  ;;  %v1250_v39 = vsel %vm1234_vm6, %v7452_v41, 0.0 }
 0x313   :  { %6580 = vrsqrt.f32 %v1317_v56  ;;  %v1316_v58 = vadd.f32 1e-06, %v1308_v57  ;;  %v1217_v55 = vadd.f32 %v6157_v46, %v1126_v53  ;;  %v7441_v56 = vadd.f32 %v1216_v51, %v7280_v61 }
 0x314   :  { %v1292_v62 = vpop.xlane.xlu1 %1291 }
 0x315   :  { %6582 = vrsqrt.f32 %v1316_v58  ;;  %v1310_v52 = vmul.f32 0.03125, %v1292_v62  ;;  %v7444_v57 = vadd.f32 %v1217_v55, %v7284_v2  ;;  %v1253_v58 = vsel %vm1234_vm6, %v7441_v56, 0.0  ;;  %v7509_v55 = vld [vmem:[#allocation8 + $0x8] sm:$0xff] }
 0x317   :  { %v1318_v63 = vadd.f32 1e-06, %v1310_v52  ;;  %v1256_v60 = vsel %vm1234_vm6, %v7444_v57, 0.0 }
 0x318   :  { %v1295_v1 = vpop.xlane.xlu0 %1294 }
 0x319   :  { %6584 = vrsqrt.f32 %v1318_v63  ;;  %v1311_v3 = vmul.f32 0.03125, %v1295_v1 }
 0x31b   :  { %v1319_v5 = vadd.f32 1e-06, %v1311_v3 }
 0x31c   :  { %v1375_v31 = vpop.permute.xlu0 %1374 }
 0x31d   :  { %6586 = vrsqrt.f32 %v1319_v5 }
 0x320   :  { %v6581_v8 = vpop.eup %6580 }
 0x321   :  { %v1333_v11 = vmul.f32 %v6581_v8, %v7311_v12 }
 0x322   :  { %v6583_v13 = vpop.eup %6582 }
 0x323   :  { %v1332_v15 = vmul.f32 %v6583_v13, %v7314_v14  ;;  %v1345_v17 = vmul.f32 %v7370_v9, %v1333_v11 }
 0x325   :  { %v1344_v18 = vmul.f32 %v7370_v9, %v1332_v15  ;;  %v1357_v23 = vadd.f32 %v7379_v16, %v1345_v17 }
 0x326   :  { %v6585_v19 = vpop.eup %6584 }
 0x327   :  { %v1356_v21 = vadd.f32 %v7379_v16, %v1344_v18  ;;  %v1334_v22 = vmul.f32 %v6585_v19, %v7322_v20  ;;  %v1371_v20 = vpop.permute.xlu1 %1370 }
 0x328   :  { %v1377_v30 = vsel %vm1234_vm6, %v7334_v29, %v1371_v20 }
 0x329   :  { %6166 = vmatprep.mubr.msk.f32.mxu0 %vm1234_vm6, %v1356_v21  ;;  %v1346_v12 = vmul.f32 %v7370_v9, %v1334_v22 }
 0x32a   :  { %v6587_v14 = vpop.eup %6586  ;;  %6167 = vmatmul.mubr.msk.f32.vlgmr.msra.gmra.mxu0 %vm1234_vm6, %v1357_v23 }
 0x32b   :  { %v1358_v24 = vadd.f32 %v7379_v16, %v1346_v12  ;;  %v1335_v26 = vmul.f32 %v6587_v14, %v7328_v25  ;;  %v1379_v25 = vsel %vm1378_vm7, %v1377_v30, %v1375_v31 }
 0x32c   :  { %v7402_v34 = vrot.slane %v1379_v25, %v7398_v32 }
 0x32d   :  { %6169 = vmatprep.mubr.msk.f32.mxu0 %vm1234_vm6, %v1358_v24  ;;  %v1347_v27 = vmul.f32 %v7370_v9, %v1335_v26 }
 0x32f   :  { %v1359_v28 = vadd.f32 %v7379_v16, %v1347_v27 }
 0x331   :  { %6170 = vmatmul.mubr.msk.f32.gmra.mxu0 %vm1234_vm6, %v1359_v28 }
 0x354   :  { %v1249_v61 = vpop.xlane.xlu0 %1248 }
 0x355   :  { %v1264_v2 = vmul.f32 0.03125, %v1249_v61 }
 0x357   :  { %v1272_v62 = vsub.f32 %v7357_v48, %v1264_v2 }
 0x359   :  { %v1280_v52 = vmul.f32 %v1272_v62, %v1272_v62 }
 0x35b   :  { %v1296_v63 = vsel %vm1234_vm6, %v1280_v52, 0.0 }
 0x3ea   :  { %v6168_v36 = vpop.f32.mrf.mxu0 }
 0x3eb   :  { %v7405_v37 = vadd.f32 %v6168_v36, %v7402_v34 }
 0x3ec   :  { %v1474_v38 = vpop.f32.mrf.mxu0 }
 0x3ed   :  { %v7408_v40 = vadd.f32 %v1474_v38, %v7402_v34  ;;  %1789 = vrot.lane.b32.xlu1 %v7405_v37, %s7017_s14  ;;  %1519 = vrot.lane.b32.xlu0 %v7405_v37, %s7018_s15 }
 0x3ef   :  { %6186 = vmatprep.mubr.msk.f32.mxu1 %vm166_vm1, %v7408_v40 }
 0x3f1   :  { %1797 = vrot.lane.b32.xlu0 %v7405_v37, %s7019_s7  ;;  %1517 = vrot.lane.b32.xlu1 %v7408_v40, %s7018_s15  ;;  %v6171_v29 = vpop.f32.mrf.mxu0 }
 0x3f2   :  { %v7425_v42 = vadd.f32 %v6171_v29, %v7402_v34 }
 0x3f3   :  { %v1484_v43 = vpop.f32.mrf.mxu0 }
 0x3f4   :  { %v7432_v45 = vadd.f32 %v1484_v43, %v7402_v34 }
 0x3f5   :  { %1787 = vrot.lane.b32.xlu0 %v7408_v40, %s7017_s14  ;;  %1795 = vrot.lane.b32.xlu1 %v7408_v40, %s7019_s7 }
 0x3f9   :  { %1801 = vrot.lane.b32.xlu0 %v7425_v42, %s7019_s7  ;;  %1523 = vrot.lane.b32.xlu1 %v7425_v42, %s7018_s15 }
 0x3fd   :  { %1521 = vrot.lane.b32.xlu1 %v7432_v45, %s7018_s15 }
 0x401   :  { %1799 = vrot.lane.b32.xlu1 %v7432_v45, %s7019_s7 }
 0x418   :  { %1254 = vadd.xlane.f32.xlu0 %v1253_v58  ;;  %v5569_v58 = vld [vmem:[%s8841_s3] ss:$0 sm:$0xff] }
 0x419   :  { %v7517_v61 = vadd.f32 %v5569_v58, %v7509_v55 }
 0x41c   :  { %1257 = vadd.xlane.f32.xlu0 %v1256_v60  ;;  %v7514_v60 = vld [vmem:[#allocation8] sm:$0xff] }
 0x425   :  { %1251 = vadd.xlane.f32.xlu1 %v1250_v39 }
 0x432   :  { %1793 = vrot.lane.b32.xlu0 %v7425_v42, %s7017_s14 }
 0x436   :  { %1791 = vrot.lane.b32.xlu1 %v7432_v45, %s7017_s14 }
 0x45a   :  { %1297 = vadd.xlane.f32.xlu1 %v1296_v63  ;;  %v7522_v63 = vadd.f32 %v5569_v58, %v7514_v60 }
 0x45f   :  { %v1790_v47 = vpop.permute.xlu1 %1789  ;;  %v1520_v1 = vpop.permute.xlu0 %1519 }
 0x463   :  { %v1518_v44 = vpop.permute.xlu1 %1517  ;;  %v1798_v8 = vpop.permute.xlu0 %1797 }
 0x467   :  { %v1796_v3 = vpop.permute.xlu1 %1795  ;;  %v1788_v13 = vpop.permute.xlu0 %1787 }
 0x46b   :  { %v1524_v5 = vpop.permute.xlu1 %1523  ;;  %v1802_v15 = vpop.permute.xlu0 %1801 }
 0x46c   :  { %6178 = vmatprep.subr.msk.mxu1 %vm166_vm1, %v1524_v5 }
 0x46d   :  { %6179 = vmatpush3.xpose.msk.msra.mxu1 %vm166_vm1, %v1524_v5 }
 0x46f   :  { %v1522_v11 = vpop.permute.xlu1 %1521 }
 0x470   :  { %6180 = vmatprep.subr.msk.mxu1 %vm166_vm1, %v1522_v11 }
 0x471   :  { %6181 = vmatpush3.xpose.msk.msra.mxu1 %vm166_vm1, %v1522_v11 }
 0x472   :  { %6182 = vmatprep.subr.msk.mxu1 %vm166_vm1, %v1520_v1 }
 0x473   :  { %v1800_v17 = vpop.permute.xlu1 %1799 }
 0x475   :  { %6183 = vmatpush3.xpose.msk.msra.mxu1 %vm166_vm1, %v1520_v1 }
 0x476   :  { %6184 = vmatprep.subr.msk.mxu1 %vm166_vm1, %v1518_v44 }
 0x479   :  { %6185 = vmatpush3.xpose.msk.msra.mxu1 %vm166_vm1, %v1518_v44  ;;  %v7524_v44 = vld [vmem:[#allocation8 + $0x10] sm:$0xff] }
 0x47a   :  { %6206 = vmatprep.subr.msk.mxu1 %vm166_vm1, %v1802_v15 }
 0x47c   :  { %6187 = vmatmul.mubr.msk.f32.vlgmr.msra.gmra.mxu1 %vm166_vm1, %v7405_v37 }
 0x47d   :  { %6189 = vmatprep.mubr.msk.f32.mxu1 %vm166_vm1, %v7432_v45  ;;  %6207 = vmatpush3.xpose.msk.msra.mxu1 %vm166_vm1, %v1802_v15 }
 0x47e   :  { %6208 = vmatprep.subr.msk.mxu1 %vm166_vm1, %v1800_v17 }
 0x480   :  { %6190 = vmatmul.mubr.msk.f32.gmra.mxu1 %vm166_vm1, %v7425_v42 }
 0x481   :  { %6209 = vmatpush3.xpose.msk.msra.mxu1 %vm166_vm1, %v1800_v17  ;;  %6214 = vmatprep.mubr.msk.f32.mxu1 %vm166_vm1, %v1788_v13 }
 0x482   :  { %6210 = vmatprep.subr.msk.mxu1 %vm166_vm1, %v1798_v8 }
 0x485   :  { %6211 = vmatpush3.xpose.msk.msra.mxu1 %vm166_vm1, %v1798_v8 }
 0x486   :  { %6212 = vmatprep.subr.msk.mxu1 %vm166_vm1, %v1796_v3 }
 0x489   :  { %6213 = vmatpush3.xpose.msk.msra.mxu1 %vm166_vm1, %v1796_v3 }
 0x48c   :  { %6215 = vmatmul.mubr.msk.f32.vlgmr.msra.gmra.mxu1 %vm166_vm1, %v1790_v47 }
 0x4a1   :  { %v1255_v18 = vpop.xlane.xlu0 %1254 }
 0x4a2   :  { %v1266_v19 = vmul.f32 0.03125, %v1255_v18 }
 0x4a4   :  { %v7487_v21 = vsub.f32 %v7441_v56, %v1266_v19  ;;  %v7538_v19 = vadd.f32 %v5569_v58, %v7524_v44 }
 0x4a5   :  { %v1258_v12 = vpop.xlane.xlu0 %1257 }
 0x4a6   :  { %v1282_v22 = vmul.f32 %v7487_v21, %v7487_v21  ;;  %v1267_v14 = vmul.f32 0.03125, %v1258_v12 }
 0x4a8   :  { %v1302_v23 = vsel %vm1234_vm6, %v1282_v22, 0.0  ;;  %v7493_v27 = vsub.f32 %v7444_v57, %v1267_v14 }
 0x4a9   :  { %1303 = vadd.xlane.f32.xlu1 %v1302_v23  ;;  %v1794_v30 = vpop.permute.xlu0 %1793 }
 0x4aa   :  { %v1283_v25 = vmul.f32 %v7493_v27, %v7493_v27 }
 0x4ac   :  { %v1305_v35 = vsel %vm1234_vm6, %v1283_v25, 0.0 }
 0x4ae   :  { %v1252_v24 = vpop.xlane.xlu1 %1251 }
 0x4af   :  { %v1265_v26 = vmul.f32 0.03125, %v1252_v24 }
 0x4b1   :  { %v7496_v28 = vsub.f32 %v7452_v41, %v1265_v26 }
 0x4b2   :  { %v1792_v20 = vpop.permute.xlu1 %1791 }
 0x4b3   :  { %6217 = vmatprep.mubr.msk.f32.mxu1 %vm166_vm1, %v1792_v20  ;;  %v1281_v31 = vmul.f32 %v7496_v28, %v7496_v28 }
 0x4b4   :  { %6218 = vmatmul.mubr.msk.f32.gmra.mxu1 %vm166_vm1, %v1794_v30 }
 0x4b5   :  { %v1299_v33 = vsel %vm1234_vm6, %v1281_v31, 0.0 }
 0x4b6   :  { %1300 = vadd.xlane.f32.xlu0 %v1299_v33 }
 0x4ba   :  { %1306 = vadd.xlane.f32.xlu0 %v1305_v35 }
 0x4e3   :  { %v1298_v36 = vpop.xlane.xlu1 %1297 }
 0x4e4   :  { %v1312_v38 = vmul.f32 0.03125, %v1298_v36 }
 0x4e6   :  { %v1320_v29 = vadd.f32 1e-06, %v1312_v38 }
 0x4e8   :  { %6588 = vrsqrt.f32 %v1320_v29 }
 0x4f5   :  { %v6589_v43 = vpop.eup %6588 }
 0x4f6   :  { %v1336_v46 = vmul.f32 %v6589_v43, %v1272_v62  ;;  %v7519_v62 = vld [vmem:[#allocation8 + $0x18] sm:$0xff] }
 0x4f7   :  { %v7530_v8 = vadd.f32 %v5569_v58, %v7519_v62 }
 0x4f8   :  { %v1348_v49 = vmul.f32 %v7370_v9, %v1336_v46 }
 0x4fa   :  { %v1360_v50 = vadd.f32 %v7379_v16, %v1348_v49 }
 0x4fc   :  { %6172 = vmatprep.mubr.msk.f32.mxu0 %vm1234_vm6, %v1360_v50 }
 0x532   :  { %v1304_v51 = vpop.xlane.xlu1 %1303 }
 0x533   :  { %v1314_v53 = vmul.f32 0.03125, %v1304_v51 }
 0x535   :  { %v1322_v39 = vadd.f32 1e-06, %v1314_v53 }
 0x537   :  { %6590 = vrsqrt.f32 %v1322_v39 }
 0x53c   :  { %v6188_v2 = vpop.f32.mrf.mxu1 }
 0x53d   :  { %v1627_v52 = vmul.f32 0.25, %v6188_v2 }
 0x53e   :  { %v1607_v47 = vpop.f32.mrf.mxu1 }
 0x53f   :  { %v1626_v1 = vmul.f32 0.25, %v1607_v47  ;;  %v1301_v3 = vpop.xlane.xlu0 %1300  ;;  %v7527_v5 = vadd.f32 %v1627_v52, %v7517_v61 }
 0x540   :  { %v1313_v11 = vmul.f32 0.03125, %v1301_v3  ;;  %v6191_v13 = vpop.f32.mrf.mxu1 }
 0x541   :  { %v1629_v15 = vmul.f32 0.25, %v6191_v13  ;;  %v1637_v17 = vsel %vm1234_vm6, %v7527_v5, -inf  ;;  %v7535_v18 = vadd.f32 %v1626_v1, %v7522_v63 }
 0x542   :  { %v1321_v22 = vadd.f32 1e-06, %v1313_v11  ;;  %v1617_v23 = vpop.f32.mrf.mxu1  ;;  %1638 = vmax.xlane.f32.xlu0 %v1637_v17 }
 0x543   :  { %v1628_v12 = vmul.f32 0.25, %v1617_v23  ;;  %v1307_v14 = vpop.xlane.xlu0 %1306  ;;  %v1634_v24 = vsel %vm1234_vm6, %v7535_v18, -inf  ;;  %v7543_v26 = vadd.f32 %v1629_v15, %v7530_v8 }
 0x544   :  { %6592 = vrsqrt.f32 %v1321_v22  ;;  %v1315_v20 = vmul.f32 0.03125, %v1307_v14  ;;  %1635 = vmax.xlane.f32.xlu1 %v1634_v24  ;;  %v6591_v35 = vpop.eup %6590 }
 0x545   :  { %v1643_v30 = vsel %vm1234_vm6, %v7543_v26, -inf  ;;  %v7548_v31 = vadd.f32 %v1628_v12, %v7538_v19  ;;  %v1338_v49 = vmul.f32 %v6591_v35, %v7487_v21 }
 0x546   :  { %v1323_v33 = vadd.f32 1e-06, %v1315_v20  ;;  %1644 = vmax.xlane.f32.xlu0 %v1643_v30 }
 0x547   :  { %v1640_v25 = vsel %vm1234_vm6, %v7548_v31, -inf  ;;  %v1350_v2 = vmul.f32 %v7370_v9, %v1338_v49 }
 0x548   :  { %6594 = vrsqrt.f32 %v1323_v33  ;;  %1641 = vmax.xlane.f32.xlu1 %v1640_v25 }
 0x549   :  { %v1362_v3 = vadd.f32 %v7379_v16, %v1350_v2 }
 0x54c   :  { %v6216_v36 = vpop.f32.mrf.mxu1 }
 0x54d   :  { %v1905_v38 = vmul.f32 0.25, %v6216_v36 }
 0x54e   :  { %v1885_v29 = vpop.f32.mrf.mxu1 }
 0x54f   :  { %v1904_v43 = vmul.f32 0.25, %v1885_v29  ;;  %v1909_v46 = vadd.f32 %v1905_v38, %v7517_v61 }
 0x551   :  { %v6593_v50 = vpop.eup %6592  ;;  %v1915_v51 = vsel %vm1234_vm6, %v1909_v46, -inf  ;;  %v7556_v53 = vadd.f32 %v1904_v43, %v7522_v63 }
 0x552   :  { %1916 = vmax.xlane.f32.xlu0 %v1915_v51  ;;  %v1337_v58 = vmul.f32 %v6593_v50, %v7496_v28 }
 0x553   :  { %v1912_v39 = vsel %vm1234_vm6, %v7556_v53, -inf }
 0x554   :  { %1913 = vmax.xlane.f32.xlu1 %v1912_v39  ;;  %v1349_v52 = vmul.f32 %v7370_v9, %v1337_v58 }
 0x555   :  { %v6595_v47 = vpop.eup %6594 }
 0x556   :  { %v1361_v21 = vadd.f32 %v7379_v16, %v1349_v52  ;;  %v1339_v1 = vmul.f32 %v6595_v47, %v7493_v27 }
 0x558   :  { %6173 = vmatmul.mubr.msk.f32.gmra.mxu0 %vm1234_vm6, %v1361_v21  ;;  %v1351_v11 = vmul.f32 %v7370_v9, %v1339_v1 }
 0x559   :  { %6175 = vmatprep.mubr.msk.f32.mxu0 %vm1234_vm6, %v1362_v3 }
 0x55a   :  { %v1363_v28 = vadd.f32 %v7379_v16, %v1351_v11 }
 0x55c   :  { %6176 = vmatmul.mubr.msk.f32.gmra.mxu0 %vm1234_vm6, %v1363_v28 }
 0x565   :  { %1682 = vrot.lane.b32.xlu1 %v7432_v45, %s7007_s4 }
 0x569   :  { %1678 = vrot.lane.b32.xlu1 %v7408_v40, %s7007_s4 }
 0x56d   :  { %1960 = vrot.lane.b32.xlu1 %v7432_v45, %s7020_s18 }
 0x574   :  { %v6219_v27 = vpop.f32.mrf.mxu1 }
 0x575   :  { %v1907_v13 = vmul.f32 0.25, %v6219_v27 }
 0x576   :  { %v1895_v15 = vpop.f32.mrf.mxu1 }
 0x577   :  { %v7578_v9 = vadd.f32 %v1907_v13, %v7530_v8  ;;  %v1906_v17 = vmul.f32 0.25, %v1895_v15 }
 0x579   :  { %v1921_v16 = vsel %vm1234_vm6, %v7578_v9, -inf  ;;  %v7583_v22 = vadd.f32 %v1906_v17, %v7538_v19 }
 0x57a   :  { %1922 = vmax.xlane.f32.xlu0 %v1921_v16 }
 0x57b   :  { %v1918_v45 = vsel %vm1234_vm6, %v7583_v22, -inf }
 0x590   :  { %1684 = vrot.lane.b32.xlu0 %v7425_v42, %s7007_s4 }
 0x591   :  { %1919 = vmax.xlane.f32.xlu1 %v1918_v45 }
 0x594   :  { %1680 = vrot.lane.b32.xlu0 %v7405_v37, %s7007_s4 }
 0x598   :  { %1962 = vrot.lane.b32.xlu0 %v7425_v42, %s7020_s18 }
 0x59c   :  { %1958 = vrot.lane.b32.xlu0 %v7405_v37, %s7020_s18 }
 0x5a2   :  { %1956 = vrot.lane.b32.xlu1 %v7408_v40, %s7020_s18 }
 0x5cb   :  { %v1639_v23 = vpop.xlane.xlu0 %1638 }
 0x5cc   :  { %v1647_v12 = vsub.f32 %v7527_v5, %v1639_v23 }
 0x5cd   :  { %v1636_v14 = vpop.xlane.xlu1 %1635 }
 0x5ce   :  { %v1652_v24 = vmul.f32 1.442695, %v1647_v12  ;;  %v1646_v20 = vsub.f32 %v7535_v18, %v1636_v14 }
 0x5cf   :  { %v1645_v30 = vpop.xlane.xlu0 %1644 }
 0x5d0   :  { %6596 = vpow2.f32 %v1652_v24  ;;  %v1650_v33 = vmul.f32 1.442695, %v1646_v20  ;;  %v1649_v25 = vsub.f32 %v7543_v26, %v1645_v30 }
 0x5d1   :  { %v1642_v35 = vpop.xlane.xlu1 %1641 }
 0x5d2   :  { %6598 = vpow2.f32 %v1650_v33  ;;  %v1656_v42 = vmul.f32 1.442695, %v1649_v25  ;;  %v1648_v37 = vsub.f32 %v7548_v31, %v1642_v35 }
 0x5d4   :  { %6600 = vpow2.f32 %v1656_v42  ;;  %v1654_v36 = vmul.f32 1.442695, %v1648_v37 }
 0x5d6   :  { %6602 = vpow2.f32 %v1654_v36 }
 0x5db   :  { %v1917_v40 = vpop.xlane.xlu0 %1916 }
 0x5dc   :  { %v1925_v38 = vsub.f32 %v1909_v46, %v1917_v40 }
 0x5dd   :  { %v7601_v5 = vpop.eup %6596  ;;  %v1914_v39 = vpop.xlane.xlu1 %1913 }
 0x5de   :  { %v1930_v29 = vmul.f32 1.442695, %v1925_v38  ;;  %v1661_v18 = vsel %vm1234_vm6, %v7601_v5, 0.0  ;;  %v1924_v45 = vsub.f32 %v7556_v53, %v1914_v39 }
 0x5df   :  { %v7605_v43 = vpop.eup %6598  ;;  %1662 = vadd.xlane.f32.xlu0 %v1661_v18 }
 0x5e0   :  { %6604 = vpow2.f32 %v1930_v29  ;;  %v1658_v26 = vsel %vm1234_vm6, %v7605_v43, 0.0  ;;  %v1928_v12 = vmul.f32 1.442695, %v1924_v45 }
 0x5e1   :  { %v7609_v49 = vpop.eup %6600  ;;  %1659 = vadd.xlane.f32.xlu1 %v1658_v26  ;;  %v1683_v52 = vpop.permute.xlu1 %1682 }
 0x5e2   :  { %v1667_v31 = vsel %vm1234_vm6, %v7609_v49, 0.0  ;;  %6606 = vpow2.f32 %v1928_v12 }
 0x5e3   :  { %v7613_v46 = vpop.eup %6602  ;;  %1668 = vadd.xlane.f32.xlu0 %v1667_v31 }
 0x5e4   :  { %v1664_v50 = vsel %vm1234_vm6, %v7613_v46, 0.0 }
 0x5e5   :  { %1665 = vadd.xlane.f32.xlu1 %v1664_v50  ;;  %v1679_v1 = vpop.permute.xlu1 %1678 }
 0x5e9   :  { %v1961_v23 = vpop.permute.xlu1 %1960 }
 0x5ed   :  { %v7617_v51 = vpop.eup %6604 }
 0x5ee   :  { %v1939_v58 = vsel %vm1234_vm6, %v7617_v51, 0.0 }
 0x5ef   :  { %1940 = vadd.xlane.f32.xlu0 %v1939_v58  ;;  %v6607_v25 = vpop.eup %6606 }
 0x5f0   :  { %v1936_v35 = vsel %vm1234_vm6, %v6607_v25, 0.0 }
 0x603   :  { %v1923_v2 = vpop.xlane.xlu0 %1922 }
 0x604   :  { %v1927_v14 = vsub.f32 %v7578_v9, %v1923_v2 }
 0x606   :  { %v1934_v20 = vmul.f32 1.442695, %v1927_v14 }
 0x607   :  { %v1685_v47 = vpop.permute.xlu0 %1684 }
 0x608   :  { %6192 = vmatprep.subr.mxu0 %v1685_v47  ;;  %6608 = vpow2.f32 %v1934_v20 }
 0x609   :  { %6193 = vmatpush3.msra.mxu0 %v1685_v47 }
 0x60a   :  { %6194 = vmatprep.subr.mxu0 %v1683_v52 }
 0x60b   :  { %6195 = vmatpush3.msra.mxu0 %v1683_v52  ;;  %v1681_v21 = vpop.permute.xlu0 %1680 }
 0x60c   :  { %6196 = vmatprep.subr.mxu0 %v1681_v21 }
 0x60d   :  { %6197 = vmatpush3.msra.mxu0 %v1681_v21 }
 0x60e   :  { %6198 = vmatprep.subr.mxu0 %v1679_v1 }
 0x60f   :  { %6199 = vmatpush3.msra.mxu0 %v1679_v1  ;;  %v1963_v3 = vpop.permute.xlu0 %1962 }
 0x610   :  { %6220 = vmatprep.subr.mxu0 %v1963_v3 }
 0x613   :  { %v1959_v36 = vpop.permute.xlu0 %1958 }
 0x615   :  { %v7642_v42 = vpop.eup %6608 }
 0x616   :  { %v1945_v53 = vsel %vm1234_vm6, %v7642_v42, 0.0 }
 0x618   :  { %v6174_v11 = vpop.f32.mrf.mxu0 }
 0x619   :  { %v7630_v17 = vadd.f32 %v6174_v11, %v7402_v34 }
 0x61a   :  { %v1494_v28 = vpop.f32.mrf.mxu0  ;;  %v1920_v24 = vpop.xlane.xlu1 %1919 }
 0x61b   :  { %v1926_v30 = vsub.f32 %v7583_v22, %v1920_v24  ;;  %v7651_v22 = vadd.f32 %v1494_v28, %v7402_v34 }
 0x61c   :  { %v6177_v27 = vpop.f32.mrf.mxu0 }
 0x61d   :  { %v7622_v13 = vadd.f32 %v6177_v27, %v7402_v34  ;;  %v1932_v33 = vmul.f32 1.442695, %v1926_v30 }
 0x61e   :  { %v1504_v16 = vpop.f32.mrf.mxu0  ;;  %v1957_v40 = vpop.permute.xlu1 %1956 }
 0x61f   :  { %v7625_v15 = vadd.f32 %v1504_v16, %v7402_v34  ;;  %2095 = vrot.lane.b32.xlu0 %v7622_v13, %s7018_s15  ;;  %6610 = vpow2.f32 %v1932_v33 }
 0x621   :  { %2093 = vrot.lane.b32.xlu1 %v7625_v15, %s7018_s15 }
 0x623   :  { %2091 = vrot.lane.b32.xlu0 %v7630_v17, %s7018_s15 }
 0x627   :  { %2254 = vrot.lane.b32.xlu0 %v7625_v15, %s7007_s4 }
 0x62c   :  { %v7646_v37 = vpop.eup %6610 }
 0x62d   :  { %v1942_v9 = vsel %vm1234_vm6, %v7646_v37, 0.0 }
 0x645   :  { %1937 = vadd.xlane.f32.xlu1 %v1936_v35 }
 0x649   :  { %1946 = vadd.xlane.f32.xlu1 %v1945_v53 }
 0x64d   :  { %1943 = vadd.xlane.f32.xlu1 %v1942_v9 }
 0x65e   :  { %2089 = vrot.lane.b32.xlu1 %v7651_v22, %s7018_s15 }
 0x662   :  { %2256 = vrot.lane.b32.xlu1 %v7622_v13, %s7007_s4 }
 0x666   :  { %2252 = vrot.lane.b32.xlu1 %v7630_v17, %s7007_s4 }
 0x668   :  { %v1663_v38 = vpop.xlane.xlu0 %1662 }
 0x669   :  { %6612 = vrcp.f32 %v1663_v38 }
 0x66a   :  { %v1660_v29 = vpop.xlane.xlu1 %1659  ;;  %2250 = vrot.lane.b32.xlu1 %v7651_v22, %s7007_s4 }
 0x66b   :  { %6614 = vrcp.f32 %v1660_v29 }
 0x66c   :  { %v1669_v34 = vpop.xlane.xlu0 %1668 }
 0x66d   :  { %6616 = vrcp.f32 %v1669_v34 }
 0x66e   :  { %v1666_v18 = vpop.xlane.xlu1 %1665 }
 0x66f   :  { %6618 = vrcp.f32 %v1666_v18 }
 0x676   :  { %v6613_v26 = vpop.eup %6612 }
 0x677   :  { %v1675_v58 = vmul.f32 %v6613_v26, %v7601_v5 }
 0x678   :  { %v6615_v31 = vpop.eup %6614  ;;  %v1941_v5 = vpop.xlane.xlu0 %1940 }
 0x679   :  { %v1674_v50 = vmul.f32 %v6615_v31, %v7605_v43  ;;  %6620 = vrcp.f32 %v1941_v5 }
 0x67a   :  { %v6617_v39 = vpop.eup %6616 }
 0x67b   :  { %6200 = vmatprep.mubr.msk.f32.mxu0 %vm1234_vm6, %v1674_v50  ;;  %v1677_v47 = vmul.f32 %v6617_v39, %v7609_v49 }
 0x67c   :  { %v6619_v2 = vpop.eup %6618  ;;  %6201 = vmatmul.mubr.msk.f32.vlgmr.msra.gmra.mxu0 %vm1234_vm6, %v1675_v58 }
 0x67d   :  { %6221 = vmatpush3.msra.mxu0 %v1963_v3  ;;  %v1676_v52 = vmul.f32 %v6619_v2, %v7613_v46 }
 0x67e   :  { %6222 = vmatprep.subr.mxu0 %v1961_v23 }
 0x67f   :  { %6223 = vmatpush3.msra.mxu0 %v1961_v23  ;;  %6203 = vmatprep.mubr.msk.f32.mxu0 %vm1234_vm6, %v1676_v52 }
 0x680   :  { %6224 = vmatprep.subr.mxu0 %v1959_v36  ;;  %6204 = vmatmul.mubr.msk.f32.gmra.mxu0 %vm1234_vm6, %v1677_v47 }
 0x681   :  { %6225 = vmatpush3.msra.mxu0 %v1959_v36 }
 0x682   :  { %6226 = vmatprep.subr.mxu0 %v1957_v40 }
 0x683   :  { %6227 = vmatpush3.msra.mxu0 %v1957_v40  ;;  %v5588_v40 = vld [vmem:[%s8841_s3 + $0x1] ss:$0 sm:$0xff] }
 0x684   :  { %v7712_v29 = vadd.f32 %v5588_v40, %v7509_v55  ;;  %v7715_v26 = vadd.f32 %v5588_v40, %v7514_v60  ;;  %v7719_v39 = vadd.f32 %v5588_v40, %v7519_v62 }
 0x686   :  { %v6621_v28 = vpop.eup %6620 }
 0x687   :  { %v1953_v45 = vmul.f32 %v6621_v28, %v7617_v51 }
 0x691   :  { %v2096_v43 = vpop.permute.xlu0 %2095 }
 0x692   :  { %6234 = vmatprep.subr.msk.mxu0 %vm166_vm1, %v2096_v43 }
 0x693   :  { %v2094_v21 = vpop.permute.xlu1 %2093 }
 0x695   :  { %v2092_v3 = vpop.permute.xlu0 %2091 }
 0x699   :  { %v2255_v12 = vpop.permute.xlu0 %2254 }
 0x6ce   :  { %v1938_v1 = vpop.xlane.xlu1 %1937 }
 0x6cf   :  { %6622 = vrcp.f32 %v1938_v1  ;;  %v7726_v1 = vadd.f32 %v5588_v40, %v7524_v44 }
 0x6d2   :  { %v1947_v46 = vpop.xlane.xlu1 %1946 }
 0x6d3   :  { %6624 = vrcp.f32 %v1947_v46 }
 0x6d6   :  { %v1944_v49 = vpop.xlane.xlu1 %1943 }
 0x6d7   :  { %6626 = vrcp.f32 %v1944_v49 }
 0x6da   :  { %v2090_v11 = vpop.permute.xlu1 %2089 }
 0x6dc   :  { %v6623_v27 = vpop.eup %6622 }
 0x6dd   :  { %v1952_v16 = vmul.f32 %v6623_v27, %v6607_v25 }
 0x6de   :  { %v2257_v23 = vpop.permute.xlu1 %2256 }
 0x6df   :  { %6228 = vmatprep.mubr.msk.f32.mxu0 %vm1234_vm6, %v1952_v16  ;;  %6248 = vmatprep.subr.mxu1 %v2257_v23 }
 0x6e0   :  { %6229 = vmatmul.mubr.msk.f32.vlgmr.msra.gmra.mxu0 %vm1234_vm6, %v1953_v45  ;;  %6249 = vmatpush3.msra.mxu1 %v2257_v23  ;;  %v6625_v24 = vpop.eup %6624 }
 0x6e1   :  { %6235 = vmatpush3.xpose.msk.msra.mxu0 %vm166_vm1, %v2096_v43  ;;  %6250 = vmatprep.subr.mxu1 %v2255_v12  ;;  %v1955_v33 = vmul.f32 %v6625_v24, %v7642_v42 }
 0x6e2   :  { %6236 = vmatprep.subr.msk.mxu0 %vm166_vm1, %v2094_v21  ;;  %v2253_v14 = vpop.permute.xlu1 %2252  ;;  %6251 = vmatpush3.msra.mxu1 %v2255_v12 }
 0x6e3   :  { %6252 = vmatprep.subr.mxu1 %v2253_v14 }
 0x6e4   :  { %v6627_v20 = vpop.eup %6626  ;;  %6253 = vmatpush3.msra.mxu1 %v2253_v14 }
 0x6e5   :  { %6237 = vmatpush3.xpose.msk.msra.mxu0 %vm166_vm1, %v2094_v21  ;;  %v1954_v51 = vmul.f32 %v6627_v20, %v7646_v37 }
 0x6e6   :  { %6238 = vmatprep.subr.msk.mxu0 %vm166_vm1, %v2092_v3  ;;  %v2251_v30 = vpop.permute.xlu1 %2250 }
 0x6e7   :  { %6231 = vmatprep.mubr.msk.f32.mxu0 %vm1234_vm6, %v1954_v51  ;;  %6254 = vmatprep.subr.mxu1 %v2251_v30 }
 0x6e8   :  { %6232 = vmatmul.mubr.msk.f32.gmra.mxu0 %vm1234_vm6, %v1955_v33  ;;  %6255 = vmatpush3.msra.mxu1 %v2251_v30 }
 0x6e9   :  { %6239 = vmatpush3.xpose.msk.msra.mxu0 %vm166_vm1, %v2092_v3  ;;  %6242 = vmatprep.mubr.msk.f32.mxu0 %vm166_vm1, %v7651_v22 }
 0x6ea   :  { %6240 = vmatprep.subr.msk.mxu0 %vm166_vm1, %v2090_v11 }
 0x6ed   :  { %6241 = vmatpush3.xpose.msk.msra.mxu0 %vm166_vm1, %v2090_v11 }
 0x6f0   :  { %6243 = vmatmul.mubr.msk.f32.vlgmr.msra.gmra.mxu0 %vm166_vm1, %v7630_v17 }
 0x6f1   :  { %6245 = vmatprep.mubr.msk.f32.mxu0 %vm166_vm1, %v7625_v15 }
 0x6f4   :  { %6246 = vmatmul.mubr.msk.f32.gmra.mxu0 %vm166_vm1, %v7622_v13 }
 0x73c   :  { %v7692_v25 = vpop.f32.mrf.mxu0 }
 0x73e   :  { %v7694_v35 = vpop.f32.mrf.mxu0 }
 0x740   :  { %v7696_v42 = vpop.f32.mrf.mxu0 }
 0x742   :  { %v7698_v53 = vpop.f32.mrf.mxu0 }
 0x7a0   :  { %v7700_v37 = vpop.f32.mrf.mxu0 }
 0x7a2   :  { %v7702_v9 = vpop.f32.mrf.mxu0 }
 0x7a8   :  { %v7704_v36 = vpop.f32.mrf.mxu0 }
 0x7aa   :  { %v7709_v38 = vpop.f32.mrf.mxu0 }
 0x7b0   :  { %v6244_v34 = vpop.f32.mrf.mxu0 }
 0x7b1   :  { %v2199_v18 = vmul.f32 0.25, %v6244_v34 }
 0x7b2   :  { %v2179_v31 = vpop.f32.mrf.mxu0 }
 0x7b3   :  { %v2198_v50 = vmul.f32 0.25, %v2179_v31  ;;  %v2203_v58 = vadd.f32 %v2199_v18, %v7712_v29 }
 0x7b4   :  { %v6247_v2 = vpop.f32.mrf.mxu0 }
 0x7b5   :  { %v2201_v52 = vmul.f32 0.25, %v6247_v2  ;;  %v2209_v47 = vsel %vm1234_vm6, %v2203_v58, -inf  ;;  %v2202_v5 = vadd.f32 %v2198_v50, %v7715_v26 }
 0x7b6   :  { %2210 = vmax.xlane.f32.xlu1 %v2209_v47  ;;  %v2189_v55 = vpop.f32.mrf.mxu0 }
 0x7b7   :  { %v2200_v43 = vmul.f32 0.25, %v2189_v55  ;;  %v2206_v21 = vsel %vm1234_vm6, %v2202_v5, -inf  ;;  %v2205_v60 = vadd.f32 %v2201_v52, %v7719_v39 }
 0x7b8   :  { %2207 = vmax.xlane.f32.xlu0 %v2206_v21 }
 0x7b9   :  { %v2215_v62 = vsel %vm1234_vm6, %v2205_v60, -inf  ;;  %v2204_v46 = vadd.f32 %v2200_v43, %v7726_v1 }
 0x7bb   :  { %v2212_v49 = vsel %vm1234_vm6, %v2204_v46, -inf }
 0x7bc   :  { %2216 = vmax.xlane.f32.xlu0 %v2215_v62 }
 0x7c0   :  { %2213 = vmax.xlane.f32.xlu0 %v2212_v49 }
 0x7c7   :  { %2371 = vrot.lane.b32.xlu1 %v7625_v15, %s7019_s7 }
 0x7d6   :  { %2373 = vrot.lane.b32.xlu0 %v7622_v13, %s7019_s7 }
 0x83f   :  { %v2211_v3 = vpop.xlane.xlu1 %2210 }
 0x840   :  { %v2219_v11 = vsub.f32 %v2203_v58, %v2211_v3 }
 0x841   :  { %v2208_v28 = vpop.xlane.xlu0 %2207 }
 0x842   :  { %v2224_v44 = vmul.f32 1.442695, %v2219_v11  ;;  %v2218_v27 = vsub.f32 %v2202_v5, %v2208_v28 }
 0x843   :  { %v2372_v2 = vpop.permute.xlu1 %2371 }
 0x844   :  { %6628 = vpow2.f32 %v2224_v44  ;;  %v2222_v16 = vmul.f32 1.442695, %v2218_v27 }
 0x845   :  { %v2217_v45 = vpop.xlane.xlu0 %2216 }
 0x846   :  { %6630 = vpow2.f32 %v2222_v16  ;;  %v2221_v30 = vsub.f32 %v2205_v60, %v2217_v45 }
 0x848   :  { %v2228_v40 = vmul.f32 1.442695, %v2221_v30 }
 0x849   :  { %v2214_v23 = vpop.xlane.xlu0 %2213 }
 0x84a   :  { %v2220_v33 = vsub.f32 %v2204_v46, %v2214_v23  ;;  %6632 = vpow2.f32 %v2228_v40 }
 0x84c   :  { %v2226_v34 = vmul.f32 1.442695, %v2220_v33 }
 0x84d   :  { %v2374_v12 = vpop.permute.xlu0 %2373 }
 0x84e   :  { %6262 = vmatprep.subr.msk.mxu1 %vm166_vm1, %v2374_v12  ;;  %6634 = vpow2.f32 %v2226_v34 }
 0x851   :  { %v6629_v14 = vpop.eup %6628 }
 0x852   :  { %v2233_v24 = vsel %vm1234_vm6, %v6629_v14, 0.0 }
 0x853   :  { %v6631_v20 = vpop.eup %6630  ;;  %2234 = vadd.xlane.f32.xlu0 %v2233_v24 }
 0x854   :  { %v2230_v51 = vsel %vm1234_vm6, %v6631_v20, 0.0 }
 0x855   :  { %2231 = vadd.xlane.f32.xlu1 %v2230_v51 }
 0x857   :  { %v6633_v18 = vpop.eup %6632 }
 0x858   :  { %v2239_v50 = vsel %vm1234_vm6, %v6633_v18, 0.0 }
 0x85b   :  { %v6635_v31 = vpop.eup %6634 }
 0x85c   :  { %v2236_v58 = vsel %vm1234_vm6, %v6635_v31, 0.0 }
 0x866   :  { %2367 = vrot.lane.b32.xlu1 %v7651_v22, %s7019_s7 }
 0x869   :  { %2369 = vrot.lane.b32.xlu0 %v7630_v17, %s7019_s7 }
 0x888   :  { %2240 = vadd.xlane.f32.xlu0 %v2239_v50 }
 0x88a   :  { %2237 = vadd.xlane.f32.xlu1 %v2236_v58 }
 0x89b   :  { %2361 = vrot.lane.b32.xlu1 %v7630_v17, %s7017_s14 }
 0x89e   :  { %2359 = vrot.lane.b32.xlu0 %v7651_v22, %s7017_s14 }
 0x89f   :  { %2365 = vrot.lane.b32.xlu1 %v7622_v13, %s7017_s14 }
 0x8a2   :  { %2363 = vrot.lane.b32.xlu0 %v7625_v15, %s7017_s14 }
 0x8dc   :  { %v2235_v52 = vpop.xlane.xlu0 %2234 }
 0x8dd   :  { %6636 = vrcp.f32 %v2235_v52 }
 0x8de   :  { %v2232_v47 = vpop.xlane.xlu1 %2231 }
 0x8df   :  { %6638 = vrcp.f32 %v2232_v47 }
 0x8e0   :  { %v2370_v60 = vpop.permute.xlu0 %2369 }
 0x8e2   :  { %v2368_v62 = vpop.permute.xlu1 %2367 }
 0x8ea   :  { %v6637_v5 = vpop.eup %6636 }
 0x8eb   :  { %v2247_v21 = vmul.f32 %v6637_v5, %v6629_v14 }
 0x8ec   :  { %v6639_v55 = vpop.eup %6638 }
 0x8ed   :  { %v2246_v43 = vmul.f32 %v6639_v55, %v6631_v20 }
 0x8ef   :  { %6256 = vmatprep.mubr.msk.f32.mxu1 %vm1234_vm6, %v2246_v43 }
 0x8f0   :  { %6257 = vmatmul.mubr.msk.f32.vlgmr.msra.gmra.mxu1 %vm1234_vm6, %v2247_v21 }
 0x8f1   :  { %6263 = vmatpush3.xpose.msk.msra.mxu1 %vm166_vm1, %v2374_v12 }
 0x8f2   :  { %6264 = vmatprep.subr.msk.mxu1 %vm166_vm1, %v2372_v2 }
 0x8f5   :  { %6265 = vmatpush3.xpose.msk.msra.mxu1 %vm166_vm1, %v2372_v2 }
 0x8f6   :  { %6266 = vmatprep.subr.msk.mxu1 %vm166_vm1, %v2370_v60 }
 0x8f9   :  { %6267 = vmatpush3.xpose.msk.msra.mxu1 %vm166_vm1, %v2370_v60  ;;  %v6820_v60 = vld [vmem:[%s8846_s8 + $0x10] sm:$0xff] }
 0x8fa   :  { %6268 = vmatprep.subr.msk.mxu1 %vm166_vm1, %v2368_v62 }
 0x8fd   :  { %6269 = vmatpush3.xpose.msk.msra.mxu1 %vm166_vm1, %v2368_v62 }
 0x911   :  { %v2241_v46 = vpop.xlane.xlu0 %2240 }
 0x912   :  { %6640 = vrcp.f32 %v2241_v46 }
 0x913   :  { %v2238_v49 = vpop.xlane.xlu1 %2237 }
 0x914   :  { %6642 = vrcp.f32 %v2238_v49 }
 0x915   :  { %v2360_v44 = vpop.permute.xlu0 %2359 }
 0x917   :  { %v2362_v16 = vpop.permute.xlu1 %2361 }
 0x919   :  { %v2364_v45 = vpop.permute.xlu0 %2363 }
 0x91b   :  { %v2366_v23 = vpop.permute.xlu1 %2365 }
 0x91f   :  { %v6641_v3 = vpop.eup %6640 }
 0x920   :  { %v2249_v27 = vmul.f32 %v6641_v3, %v6633_v18 }
 0x921   :  { %v6643_v11 = vpop.eup %6642 }
 0x922   :  { %v2248_v28 = vmul.f32 %v6643_v11, %v6635_v31 }
 0x924   :  { %6259 = vmatprep.mubr.msk.f32.mxu1 %vm1234_vm6, %v2248_v28 }
 0x925   :  { %6260 = vmatmul.mubr.msk.f32.gmra.mxu1 %vm1234_vm6, %v2249_v27 }
 0x926   :  { %6270 = vmatprep.mubr.msk.f32.mxu1 %vm166_vm1, %v2360_v44 }
 0x929   :  { %6271 = vmatmul.mubr.msk.f32.vlgmr.msra.gmra.mxu1 %vm166_vm1, %v2362_v16 }
 0x92a   :  { %6273 = vmatprep.mubr.msk.f32.mxu1 %vm166_vm1, %v2364_v45 }
 0x92d   :  { %6274 = vmatmul.mubr.msk.f32.gmra.mxu1 %vm166_vm1, %v2366_v23 }
 0x9b0   :  { %v7767_v12 = vpop.f32.mrf.mxu1 }
 0x9b2   :  { %v7769_v14 = vpop.f32.mrf.mxu1 }
 0x9e5   :  { %v7771_v24 = vpop.f32.mrf.mxu1 }
 0x9e7   :  { %v7773_v20 = vpop.f32.mrf.mxu1 }
 0x9e9   :  { %v6272_v51 = vpop.f32.mrf.mxu1 }
 0x9ea   :  { %v2477_v30 = vmul.f32 0.25, %v6272_v51 }
 0x9eb   :  { %v2457_v33 = vpop.f32.mrf.mxu1 }
 0x9ec   :  { %v2476_v40 = vmul.f32 0.25, %v2457_v33  ;;  %v2481_v34 = vadd.f32 %v2477_v30, %v7712_v29 }
 0x9ed   :  { %v6275_v18 = vpop.f32.mrf.mxu1 }
 0x9ee   :  { %v2487_v31 = vsel %vm1234_vm6, %v2481_v34, -inf  ;;  %v2480_v50 = vadd.f32 %v2476_v40, %v7715_v26  ;;  %v2479_v2 = vmul.f32 0.25, %v6275_v18 }
 0x9ef   :  { %2488 = vmax.xlane.f32.xlu1 %v2487_v31  ;;  %v2467_v58 = vpop.f32.mrf.mxu1 }
 0x9f0   :  { %v2478_v52 = vmul.f32 0.25, %v2467_v58  ;;  %v2484_v47 = vsel %vm1234_vm6, %v2480_v50, -inf  ;;  %v2483_v43 = vadd.f32 %v2479_v2, %v7719_v39  ;;  %v6823_v58 = vld [vmem:[%s8846_s8] sm:$0xff] }
 0x9f1   :  { %2485 = vmax.xlane.f32.xlu0 %v2484_v47 }
 0x9f2   :  { %v2482_v5 = vadd.f32 %v2478_v52, %v7726_v1  ;;  %v2493_v21 = vsel %vm1234_vm6, %v2483_v43, -inf }
 0x9f4   :  { %v2490_v55 = vsel %vm1234_vm6, %v2482_v5, -inf }
 0x9f5   :  { %2491 = vmax.xlane.f32.xlu0 %v2490_v55 }
 0x9f9   :  { %2494 = vmax.xlane.f32.xlu0 %v2493_v21 }
 0xa00   :  { %2534 = vrot.lane.b32.xlu1 %v7622_v13, %s7020_s18  ;;  %v6821_v13 = vld [vmem:[%s8846_s8 + $0x18] sm:$0xff] }
 0xa04   :  { %2530 = vrot.lane.b32.xlu1 %v7630_v17, %s7020_s18  ;;  %v6822_v17 = vld [vmem:[%s8846_s8 + $0x8] sm:$0xff] }
 0xa08   :  { %2528 = vrot.lane.b32.xlu1 %v7651_v22, %s7020_s18 }
 0xa0c   :  { %2669 = vrot.lane.b32.xlu1 %v6820_v60, %s7016_s30 }
 0xa0f   :  { %2532 = vrot.lane.b32.xlu0 %v7625_v15, %s7020_s18 }
 0xa10   :  { %2069 = vrot.lane.b32.xlu1 %v7702_v9, %s7021_s21 }
 0xa13   :  { %2671 = vrot.lane.b32.xlu0 %v6821_v13, %s7016_s30 }
 0xa17   :  { %2667 = vrot.lane.b32.xlu0 %v6822_v17, %s7016_s30 }
 0xa78   :  { %v2489_v22 = vpop.xlane.xlu1 %2488 }
 0xa79   :  { %v2497_v62 = vsub.f32 %v2481_v34, %v2489_v22 }
 0xa7a   :  { %v2486_v46 = vpop.xlane.xlu0 %2485 }
 0xa7b   :  { %v2502_v15 = vmul.f32 1.442695, %v2497_v62  ;;  %v2496_v49 = vsub.f32 %v2480_v50, %v2486_v46 }
 0xa7c   :  { %v2535_v3 = vpop.permute.xlu1 %2534 }
 0xa7d   :  { %6644 = vpow2.f32 %v2502_v15  ;;  %v2500_v9 = vmul.f32 1.442695, %v2496_v49  ;;  %6276 = vmatprep.subr.mxu0 %v2535_v3 }
 0xa7e   :  { %6277 = vmatpush3.msra.mxu0 %v2535_v3  ;;  %v2492_v11 = vpop.xlane.xlu0 %2491 }
 0xa7f   :  { %6646 = vpow2.f32 %v2500_v9  ;;  %v2498_v50 = vsub.f32 %v2482_v5, %v2492_v11 }
 0xa80   :  { %v2531_v27 = vpop.permute.xlu1 %2530 }
 0xa81   :  { %v2504_v2 = vmul.f32 1.442695, %v2498_v50 }
 0xa82   :  { %v2495_v28 = vpop.xlane.xlu0 %2494 }
 0xa83   :  { %v2499_v44 = vsub.f32 %v2483_v43, %v2495_v28 }
 0xa84   :  { %v2529_v51 = vpop.permute.xlu1 %2528 }
 0xa85   :  { %v2506_v16 = vmul.f32 1.442695, %v2499_v44 }
 0xa86   :  { %v2533_v45 = vpop.permute.xlu0 %2532 }
 0xa87   :  { %6648 = vpow2.f32 %v2506_v16  ;;  %6278 = vmatprep.subr.mxu0 %v2533_v45 }
 0xa88   :  { %6279 = vmatpush3.msra.mxu0 %v2533_v45  ;;  %6650 = vpow2.f32 %v2504_v2 }
 0xa89   :  { %6280 = vmatprep.subr.mxu0 %v2531_v27 }
 0xa8a   :  { %v6645_v23 = vpop.eup %6644  ;;  %6281 = vmatpush3.msra.mxu0 %v2531_v27  ;;  %v2672_v40 = vpop.permute.xlu0 %2671 }
 0xa8b   :  { %6282 = vmatprep.subr.mxu0 %v2529_v51  ;;  %v2511_v30 = vsel %vm1234_vm6, %v6645_v23, 0.0 }
 0xa8c   :  { %v6647_v33 = vpop.eup %6646  ;;  %2512 = vadd.xlane.f32.xlu0 %v2511_v30  ;;  %6283 = vmatpush3.msra.mxu0 %v2529_v51 }
 0xa8d   :  { %v2508_v34 = vsel %vm1234_vm6, %v6647_v33, 0.0  ;;  %6290 = vmatprep.subr.mxu0 %v2672_v40 }
 0xa8e   :  { %2509 = vadd.xlane.f32.xlu1 %v2508_v34  ;;  %v2668_v5 = vpop.permute.xlu0 %2667 }
 0xa94   :  { %v6649_v18 = vpop.eup %6648 }
 0xa95   :  { %v2517_v31 = vsel %vm1234_vm6, %v6649_v18, 0.0  ;;  %v6651_v52 = vpop.eup %6650 }
 0xa96   :  { %2518 = vadd.xlane.f32.xlu0 %v2517_v31  ;;  %v2514_v47 = vsel %vm1234_vm6, %v6651_v52, 0.0 }
 0xa9f   :  { %2071 = vrot.lane.b32.xlu1 %v7700_v37, %s7021_s21  ;;  %v2670_v37 = vpop.permute.xlu1 %2669 }
 0xaa3   :  { %v2070_v55 = vpop.permute.xlu1 %2069 }
 0xaa4   :  { %v2081_v11 = vsel %vm166_vm1, %v7694_v35, %v2070_v55 }
 0xaac   :  { %2665 = vrot.lane.b32.xlu0 %v6823_v58, %s7016_s30 }
 0xab0   :  { %2073 = vrot.lane.b32.xlu0 %v7709_v38, %s7021_s21 }
 0xac3   :  { %2515 = vadd.xlane.f32.xlu1 %v2514_v47 }
 0xad4   :  { %2075 = vrot.lane.b32.xlu1 %v7704_v36, %s7021_s21 }
 0xb15   :  { %v2513_v43 = vpop.xlane.xlu0 %2512 }
 0xb16   :  { %6652 = vrcp.f32 %v2513_v43 }
 0xb17   :  { %v2510_v21 = vpop.xlane.xlu1 %2509 }
 0xb18   :  { %6654 = vrcp.f32 %v2510_v21 }
 0xb1b   :  { %v2072_v62 = vpop.permute.xlu1 %2071 }
 0xb1c   :  { %v2082_v44 = vsel %vm166_vm1, %v7692_v25, %v2072_v62 }
 0xb1f   :  { %v2519_v38 = vpop.xlane.xlu0 %2518 }
 0xb20   :  { %6656 = vrcp.f32 %v2519_v38 }
 0xb23   :  { %v6653_v60 = vpop.eup %6652  ;;  %v2666_v36 = vpop.permute.xlu0 %2665 }
 0xb24   :  { %v2525_v22 = vmul.f32 %v6653_v60, %v6645_v23  ;;  %v2659_v23 = vsub.s32 5, %v7363_v0 }
 0xb25   :  { %v6655_v13 = vpop.eup %6654 }
 0xb26   :  { %v2524_v17 = vmul.f32 %v6655_v13, %v6647_v33  ;;  %v7836_v33 = vld [vmem:[#allocation13] sm:$0xff] }
 0xb27   :  { %v2074_v28 = vpop.permute.xlu0 %2073  ;;  %v7839_v25 = vrot.slane %v7836_v33, %v2659_v23  ;;  %v2944_v23 = vld [vmem:[%s8847_s9 + $0x10] sm:$0xff] }
 0xb28   :  { %6284 = vmatprep.mubr.msk.f32.mxu0 %vm1234_vm6, %v2524_v17  ;;  %v2083_v27 = vsel %vm166_vm1, %v7698_v53, %v2074_v28 }
 0xb29   :  { %6285 = vmatmul.mubr.msk.f32.vlgmr.msra.gmra.mxu0 %vm1234_vm6, %v2525_v22 }
 0xb2a   :  { %6291 = vmatpush3.msra.mxu0 %v2672_v40 }
 0xb2b   :  { %6292 = vmatprep.subr.mxu0 %v2670_v37 }
 0xb2c   :  { %6293 = vmatpush3.msra.mxu0 %v2670_v37 }
 0xb2d   :  { %6294 = vmatprep.subr.mxu0 %v2668_v5  ;;  %v6657_v15 = vpop.eup %6656 }
 0xb2e   :  { %6295 = vmatpush3.msra.mxu0 %v2668_v5  ;;  %v2527_v9 = vmul.f32 %v6657_v15, %v6649_v18 }
 0xb2f   :  { %6296 = vmatprep.subr.mxu0 %v2666_v36 }
 0xb30   :  { %6297 = vmatpush3.msra.mxu0 %v2666_v36 }
 0xb4c   :  { %v2516_v46 = vpop.xlane.xlu1 %2515 }
 0xb4d   :  { %6658 = vrcp.f32 %v2516_v46 }
 0xb50   :  { %v2076_v16 = vpop.permute.xlu1 %2075 }
 0xb51   :  { %v2084_v45 = vsel %vm166_vm1, %v7696_v42, %v2076_v16 }
 0xb5a   :  { %v6659_v49 = vpop.eup %6658 }
 0xb5b   :  { %v2526_v3 = vmul.f32 %v6659_v49, %v6651_v52 }
 0xb5d   :  { %6287 = vmatprep.mubr.msk.f32.mxu0 %vm1234_vm6, %v2526_v3 }
 0xb5e   :  { %6288 = vmatmul.mubr.msk.f32.gmra.mxu0 %vm1234_vm6, %v2527_v9 }
 0xb5f   :  { %6298 = vmatprep.mubr.msk.f32.mxu0 %vm1234_vm6, %v2081_v11 }
 0xb62   :  { %6299 = vmatmul.mubr.msk.f32.vlgmr.msra.gmra.mxu0 %vm1234_vm6, %v2082_v44 }
 0xb63   :  { %6301 = vmatprep.mubr.msk.f32.mxu0 %vm1234_vm6, %v2083_v27 }
 0xb66   :  { %6302 = vmatmul.mubr.msk.f32.gmra.mxu0 %vm1234_vm6, %v2084_v45  ;;  %v2945_v45 = vld [vmem:[%s8847_s9 + $0x18] sm:$0xff] }
 0xb67   :  { %6310 = vmatprep.subr.mxu1 %v2945_v45 }
 0xb68   :  { %6311 = vmatpush3.msra.mxu1 %v2945_v45 }
 0xb69   :  { %6312 = vmatprep.subr.mxu1 %v2944_v23 }
 0xb6a   :  { %6313 = vmatpush3.msra.mxu1 %v2944_v23 }
 0xbe9   :  { %v6286_v35 = vpop.f32.mrf.mxu0 }
 0xbeb   :  { %v2618_v51 = vpop.f32.mrf.mxu0 }
 0xc1e   :  { %v6289_v30 = vpop.f32.mrf.mxu0 }
 0xc20   :  { %v2628_v53 = vpop.f32.mrf.mxu0 }
 0xc22   :  { %v6300_v40 = vpop.f32.mrf.mxu0 }
 0xc23   :  { %v2773_v34 = vadd.f32 %v6300_v40, %v7839_v25  ;;  %v2943_v40 = vld [vmem:[%s8847_s9 + $0x8] sm:$0xff] }
 0xc24   :  { %v2767_v18 = vpop.f32.mrf.mxu0  ;;  %6314 = vmatprep.subr.mxu1 %v2943_v40 }
 0xc25   :  { %v7843_v31 = vadd.f32 %v2773_v34, %v7273_v54  ;;  %v2768_v42 = vadd.f32 %v2767_v18, %v7839_v25  ;;  %6315 = vmatpush3.msra.mxu1 %v2943_v40 }
 0xc26   :  { %v6303_v50 = vpop.f32.mrf.mxu0 }
 0xc27   :  { %v7847_v58 = vadd.f32 %v2768_v42, %v7276_v59  ;;  %v2817_v2 = vsel %vm1234_vm6, %v7843_v31, 0.0  ;;  %v2783_v47 = vadd.f32 %v6303_v50, %v7839_v25 }
 0xc28   :  { %2818 = vadd.xlane.f32.xlu1 %v2817_v2  ;;  %v2777_v52 = vpop.f32.mrf.mxu0 }
 0xc29   :  { %v2778_v37 = vadd.f32 %v2777_v52, %v7839_v25  ;;  %v2814_v5 = vsel %vm1234_vm6, %v7847_v58, 0.0  ;;  %v7859_v55 = vadd.f32 %v2783_v47, %v7290_v6 }
 0xc2a   :  { %2815 = vadd.xlane.f32.xlu0 %v2814_v5 }
 0xc2b   :  { %v7856_v54 = vadd.f32 %v2778_v37, %v7287_v4  ;;  %v2823_v43 = vsel %vm1234_vm6, %v7859_v55, 0.0 }
 0xc2d   :  { %v2820_v59 = vsel %vm1234_vm6, %v7856_v54, 0.0 }
 0xc2e   :  { %2821 = vadd.xlane.f32.xlu0 %v2820_v59 }
 0xc32   :  { %2824 = vadd.xlane.f32.xlu0 %v2823_v43 }
 0xcb1   :  { %v2819_v21 = vpop.xlane.xlu1 %2818 }
 0xcb2   :  { %v2839_v60 = vmul.f32 0.03125, %v2819_v21  ;;  %v2920_v21 = vsub.s32 6, %v7363_v0 }
 0xcb3   :  { %v2816_v13 = vpop.xlane.xlu0 %2815 }
 0xcb4   :  { %v7866_v17 = vsub.f32 %v7843_v31, %v2839_v60  ;;  %v2838_v22 = vmul.f32 0.03125, %v2816_v13 }
 0xcb6   :  { %v7869_v4 = vsub.f32 %v7847_v58, %v2838_v22  ;;  %v2855_v6 = vmul.f32 %v7866_v17, %v7866_v17 }
 0xcb7   :  { %v2822_v38 = vpop.xlane.xlu0 %2821 }
 0xcb8   :  { %v2840_v36 = vmul.f32 0.03125, %v2822_v38  ;;  %v2865_v62 = vsel %vm1234_vm6, %v2855_v6, 0.0  ;;  %v2854_v46 = vmul.f32 %v7869_v4, %v7869_v4  ;;  %v7918_v38 = vrot.slane %v7836_v33, %v2920_v21 }
 0xcb9   :  { %2866 = vadd.xlane.f32.xlu0 %v2865_v62 }
 0xcba   :  { %v7877_v15 = vsub.f32 %v7856_v54, %v2840_v36  ;;  %v2862_v49 = vsel %vm1234_vm6, %v2854_v46, 0.0  ;;  %v2932_v36 = vsub.s32 7, %v7363_v0 }
 0xcbb   :  { %2863 = vadd.xlane.f32.xlu1 %v2862_v49  ;;  %v2825_v3 = vpop.xlane.xlu0 %2824 }
 0xcbc   :  { %v2841_v9 = vmul.f32 0.03125, %v2825_v3  ;;  %v2856_v11 = vmul.f32 %v7877_v15, %v7877_v15  ;;  %v7929_v3 = vrot.slane %v7836_v33, %v2932_v36 }
 0xcbe   :  { %v7883_v28 = vsub.f32 %v7859_v55, %v2841_v9  ;;  %v2868_v44 = vsel %vm1234_vm6, %v2856_v11, 0.0 }
 0xcbf   :  { %2869 = vadd.xlane.f32.xlu1 %v2868_v44 }
 0xcc0   :  { %v2857_v27 = vmul.f32 %v7883_v28, %v7883_v28 }
 0xcc2   :  { %v2871_v16 = vsel %vm1234_vm6, %v2857_v27, 0.0 }
 0xcc3   :  { %2872 = vadd.xlane.f32.xlu0 %v2871_v16 }
 0xcd0   :  { %2641 = vrot.lane.b32.xlu1 %v2618_v51, %s7021_s21  ;;  %v2942_v51 = vld [vmem:[%s8847_s9] sm:$0xff] }
 0xcd1   :  { %6316 = vmatprep.subr.mxu1 %v2942_v51 }
 0xcd2   :  { %6317 = vmatpush3.msra.mxu1 %v2942_v51  ;;  %v3160_v51 = vld [vmem:[%s8849_s11 + $0x30] sm:$0xff] }
 0xcd4   :  { %2645 = vrot.lane.b32.xlu1 %v2628_v53, %s7021_s21 }
 0xcd8   :  { %2647 = vrot.lane.b32.xlu1 %v6289_v30, %s7021_s21 }
 0xcd9   :  { %2643 = vrot.lane.b32.xlu0 %v6286_v35, %s7021_s21 }
 0xd42   :  { %v2867_v53 = vpop.xlane.xlu0 %2866 }
 0xd43   :  { %v2887_v34 = vmul.f32 0.03125, %v2867_v53  ;;  %v3158_v53 = vld [vmem:[%s8849_s11 + $0x20] sm:$0xff] }
 0xd44   :  { %v2864_v30 = vpop.xlane.xlu1 %2863 }
 0xd45   :  { %v2895_v18 = vadd.f32 1e-06, %v2887_v34  ;;  %v2886_v42 = vmul.f32 0.03125, %v2864_v30  ;;  %v3157_v34 = vld [vmem:[%s8849_s11 + $0x18] sm:$0xff]  ;;  %v3156_v30 = vld [vmem:[%s8849_s11 + $0x10] sm:$0xff] }
 0xd47   :  { %6660 = vrsqrt.f32 %v2895_v18  ;;  %v2894_v50 = vadd.f32 1e-06, %v2886_v42  ;;  %v3155_v18 = vld [vmem:[%s8849_s11 + $0x8] sm:$0xff]  ;;  %v3154_v42 = vld [vmem:[%s8849_s11] sm:$0xff] }
 0xd48   :  { %v2870_v2 = vpop.xlane.xlu1 %2869 }
 0xd49   :  { %6662 = vrsqrt.f32 %v2894_v50  ;;  %v2888_v35 = vmul.f32 0.03125, %v2870_v2 }
 0xd4b   :  { %v2896_v52 = vadd.f32 1e-06, %v2888_v35 }
 0xd4c   :  { %v2642_v47 = vpop.permute.xlu1 %2641  ;;  %v2873_v37 = vpop.xlane.xlu0 %2872 }
 0xd4d   :  { %6664 = vrsqrt.f32 %v2896_v52  ;;  %v2653_v5 = vsel %vm166_vm1, %v7769_v14, %v2642_v47  ;;  %v2889_v59 = vmul.f32 0.03125, %v2873_v37 }
 0xd4e   :  { %6304 = vmatprep.mubr.msk.f32.mxu0 %vm1234_vm6, %v2653_v5 }
 0xd4f   :  { %v2897_v43 = vadd.f32 1e-06, %v2889_v59 }
 0xd50   :  { %v2646_v60 = vpop.permute.xlu1 %2645  ;;  %v2644_v13 = vpop.permute.xlu0 %2643 }
 0xd51   :  { %6666 = vrsqrt.f32 %v2897_v43  ;;  %v2655_v22 = vsel %vm166_vm1, %v7773_v20, %v2646_v60  ;;  %v2654_v6 = vsel %vm166_vm1, %v7767_v12, %v2644_v13 }
 0xd52   :  { %6305 = vmatmul.mubr.msk.f32.gmra.mxu0 %vm1234_vm6, %v2654_v6 }
 0xd53   :  { %6307 = vmatprep.mubr.msk.f32.mxu0 %vm1234_vm6, %v2655_v22 }
 0xd54   :  { %v6661_v14 = vpop.eup %6660  ;;  %v2648_v62 = vpop.permute.xlu1 %2647 }
 0xd55   :  { %v2911_v46 = vmul.f32 %v6661_v14, %v7866_v17  ;;  %v2656_v20 = vsel %vm166_vm1, %v7771_v24, %v2648_v62 }
 0xd56   :  { %v6663_v49 = vpop.eup %6662  ;;  %6308 = vmatmul.mubr.msk.f32.gmra.mxu0 %vm1234_vm6, %v2656_v20 }
 0xd57   :  { %v2910_v12 = vmul.f32 %v6663_v49, %v7869_v4  ;;  %v2923_v9 = vmul.f32 %v7918_v38, %v2911_v46 }
 0xd59   :  { %v2922_v11 = vmul.f32 %v7918_v38, %v2910_v12  ;;  %v2935_v24 = vadd.f32 %v7929_v3, %v2923_v9 }
 0xd5a   :  { %v6665_v44 = vpop.eup %6664 }
 0xd5b   :  { %v2934_v17 = vadd.f32 %v7929_v3, %v2922_v11  ;;  %v2912_v27 = vmul.f32 %v6665_v44, %v7877_v15  ;;  %v3161_v15 = vld [vmem:[%s8849_s11 + $0x38] sm:$0xff] }
 0xd5c   :  { %6330 = vmatprep.subr.mxu0 %v3161_v15 }
 0xd5d   :  { %6318 = vmatprep.mubr.msk.f32.mxu1 %vm1234_vm6, %v2934_v17  ;;  %v2924_v4 = vmul.f32 %v7918_v38, %v2912_v27  ;;  %6331 = vmatpush3.msra.mxu0 %v3161_v15 }
 0xd5e   :  { %v6667_v16 = vpop.eup %6666  ;;  %6319 = vmatmul.mubr.msk.f32.vlgmr.msra.gmra.mxu1 %vm1234_vm6, %v2935_v24  ;;  %6332 = vmatprep.subr.mxu0 %v3160_v51 }
 0xd5f   :  { %v2936_v33 = vadd.f32 %v7929_v3, %v2924_v4  ;;  %v2913_v45 = vmul.f32 %v6667_v16, %v7883_v28  ;;  %6333 = vmatpush3.msra.mxu0 %v3160_v51  ;;  %v3159_v28 = vld [vmem:[%s8849_s11 + $0x28] sm:$0xff] }
 0xd60   :  { %6334 = vmatprep.subr.mxu0 %v3159_v28 }
 0xd61   :  { %6321 = vmatprep.mubr.msk.f32.mxu1 %vm1234_vm6, %v2936_v33  ;;  %v2925_v23 = vmul.f32 %v7918_v38, %v2913_v45  ;;  %6335 = vmatpush3.msra.mxu0 %v3159_v28 }
 0xd62   :  { %6336 = vmatprep.subr.mxu0 %v3158_v53 }
 0xd63   :  { %v2937_v40 = vadd.f32 %v7929_v3, %v2925_v23  ;;  %6337 = vmatpush3.msra.mxu0 %v3158_v53 }
 0xd64   :  { %6338 = vmatprep.subr.mxu0 %v3157_v34 }
 0xd65   :  { %6322 = vmatmul.mubr.msk.f32.gmra.mxu1 %vm1234_vm6, %v2937_v40  ;;  %6339 = vmatpush3.msra.mxu0 %v3157_v34 }
 0xd66   :  { %6340 = vmatprep.subr.mxu0 %v3156_v30 }
 0xd67   :  { %6341 = vmatpush3.msra.mxu0 %v3156_v30 }
 0xd68   :  { %6342 = vmatprep.subr.mxu0 %v3155_v18 }
 0xd69   :  { %6343 = vmatpush3.msra.mxu0 %v3155_v18 }
 0xd6a   :  { %6344 = vmatprep.subr.mxu0 %v3154_v42 }
 0xd6b   :  { %6345 = vmatpush3.msra.mxu0 %v3154_v42 }
 0xe12   :  { %v6306_v50 = vpop.f32.mrf.mxu0 }
 0xe13   :  { %v2793_v2 = vadd.f32 %v6306_v50, %v7839_v25 }
 0xe14   :  { %v2787_v35 = vpop.f32.mrf.mxu0 }
 0xe15   :  { %v7971_v52 = vadd.f32 %v2793_v2, %v7452_v41  ;;  %v2788_v47 = vadd.f32 %v2787_v35, %v7839_v25 }
 0xe16   :  { %v6309_v37 = vpop.f32.mrf.mxu0 }
 0xe17   :  { %v7975_v5 = vadd.f32 %v2788_v47, %v7357_v48  ;;  %v2829_v59 = vsel %vm1234_vm6, %v7971_v52, 0.0  ;;  %v2803_v60 = vadd.f32 %v6309_v37, %v7839_v25  ;;  %v7989_v48 = vld [vmem:[%s8848_s10] ss:$0 sm:$0xff] }
 0xe18   :  { %2830 = vadd.xlane.f32.xlu1 %v2829_v59  ;;  %v2797_v43 = vpop.f32.mrf.mxu0 }
 0xe19   :  { %v2798_v13 = vadd.f32 %v2797_v43, %v7839_v25  ;;  %v2826_v22 = vsel %vm1234_vm6, %v7975_v5, 0.0  ;;  %v7992_v6 = vadd.f32 %v2803_v60, %v7444_v57 }
 0xe1a   :  { %2827 = vadd.xlane.f32.xlu0 %v2826_v22 }
 0xe1b   :  { %v7984_v41 = vadd.f32 %v2798_v13, %v7441_v56  ;;  %v2835_v49 = vsel %vm1234_vm6, %v7992_v6, 0.0 }
 0xe1d   :  { %v2832_v14 = vsel %vm1234_vm6, %v7984_v41, 0.0 }
 0xe1e   :  { %v6320_v62 = vpop.f32.mrf.mxu1  ;;  %2833 = vadd.xlane.f32.xlu0 %v2832_v14 }
 0xe1f   :  { %v3049_v25 = vadd.f32 %v6320_v62, %v7989_v48 }
 0xe20   :  { %v3043_v46 = vpop.f32.mrf.mxu1 }
 0xe21   :  { %v3083_v20 = vmul.f32 %v3049_v25, %v3049_v25  ;;  %v3044_v56 = vadd.f32 %v7989_v48, %v3043_v46 }
 0xe22   :  { %2836 = vadd.xlane.f32.xlu0 %v2835_v49 }
 0xe23   :  { %v3091_v12 = vmul.f32 %v3083_v20, %v3049_v25  ;;  %v3082_v9 = vmul.f32 %v3044_v56, %v3044_v56 }
 0xe25   :  { %v3099_v11 = vmul.f32 0.044715, %v3091_v12  ;;  %v3090_v57 = vmul.f32 %v3082_v9, %v3044_v56  ;;  %v6323_v44 = vpop.f32.mrf.mxu1 }
 0xe26   :  { %v3059_v17 = vadd.f32 %v6323_v44, %v7989_v48 }
 0xe27   :  { %v3107_v27 = vadd.f32 %v3099_v11, %v3049_v25  ;;  %v3098_v24 = vmul.f32 0.044715, %v3090_v57  ;;  %v3053_v4 = vpop.f32.mrf.mxu1 }
 0xe28   :  { %v3085_v16 = vmul.f32 %v3059_v17, %v3059_v17  ;;  %v3054_v33 = vadd.f32 %v7989_v48, %v3053_v4 }
 0xe29   :  { %v3115_v45 = vmul.f32 0.7978846, %v3107_v27  ;;  %v3106_v23 = vadd.f32 %v3098_v24, %v3044_v56 }
 0xe2a   :  { %v3093_v40 = vmul.f32 %v3085_v16, %v3059_v17  ;;  %v3084_v15 = vmul.f32 %v3054_v33, %v3054_v33 }
 0xe2b   :  { %6668 = vtanh.f32 %v3115_v45  ;;  %v3114_v51 = vmul.f32 0.7978846, %v3106_v23 }
 0xe2c   :  { %v3101_v28 = vmul.f32 0.044715, %v3093_v40  ;;  %v3092_v53 = vmul.f32 %v3084_v15, %v3054_v33 }
 0xe2d   :  { %6670 = vtanh.f32 %v3114_v51 }
 0xe2e   :  { %v3109_v34 = vadd.f32 %v3101_v28, %v3059_v17  ;;  %v3100_v30 = vmul.f32 0.044715, %v3092_v53 }
 0xe30   :  { %v3117_v18 = vmul.f32 0.7978846, %v3109_v34  ;;  %v3108_v42 = vadd.f32 %v3100_v30, %v3054_v33 }
 0xe32   :  { %6672 = vtanh.f32 %v3117_v18  ;;  %v3116_v50 = vmul.f32 0.7978846, %v3108_v42  ;;  %v8014_v18 = vld [vmem:[#allocation13 + $0x8] sm:$0xff] }
 0xe33   :  { %v8018_v42 = vrot.slane %v8014_v18, %v7366_v7 }
 0xe34   :  { %6674 = vtanh.f32 %v3116_v50 }
 0xe38   :  { %v6669_v2 = vpop.eup %6668 }
 0xe39   :  { %v3131_v35 = vadd.f32 1.0, %v6669_v2 }
 0xe3a   :  { %v6671_v47 = vpop.eup %6670 }
 0xe3b   :  { %v3130_v37 = vadd.f32 1.0, %v6671_v47  ;;  %v3139_v59 = vmul.f32 0.5, %v3131_v35 }
 0xe3d   :  { %v3138_v43 = vmul.f32 0.5, %v3130_v37  ;;  %v3147_v22 = vmul.f32 %v3139_v59, %v3049_v25 }
 0xe3f   :  { %v6673_v60 = vpop.eup %6672  ;;  %v3146_v13 = vmul.f32 %v3138_v43, %v3044_v56 }
 0xe40   :  { %v3133_v14 = vadd.f32 1.0, %v6673_v60 }
 0xe41   :  { %v6675_v62 = vpop.eup %6674  ;;  %6346 = vmatprep.mubr.msk.f32.mxu0 %vm1378_vm7, %v3146_v13 }
 0xe42   :  { %6347 = vmatmul.mubr.msk.f32.vlgmr.msra.gmra.mxu0 %vm1378_vm7, %v3147_v22  ;;  %v3132_v46 = vadd.f32 1.0, %v6675_v62  ;;  %v3141_v20 = vmul.f32 0.5, %v3133_v14 }
 0xe44   :  { %v3140_v49 = vmul.f32 0.5, %v3132_v46  ;;  %v3149_v9 = vmul.f32 %v3141_v20, %v3059_v17 }
 0xe46   :  { %v3148_v12 = vmul.f32 %v3140_v49, %v3054_v33 }
 0xe48   :  { %6349 = vmatprep.mubr.msk.f32.mxu0 %vm1378_vm7, %v3148_v12 }
 0xe49   :  { %6350 = vmatmul.mubr.msk.f32.gmra.mxu0 %vm1378_vm7, %v3149_v9 }
 0xea1   :  { %v2831_v11 = vpop.xlane.xlu1 %2830 }
 0xea2   :  { %v2843_v57 = vmul.f32 0.03125, %v2831_v11 }
 0xea3   :  { %v2828_v44 = vpop.xlane.xlu0 %2827 }
 0xea4   :  { %v2851_v25 = vsub.f32 %v7971_v52, %v2843_v57  ;;  %v2842_v56 = vmul.f32 0.03125, %v2828_v44 }
 0xea6   :  { %v2850_v27 = vsub.f32 %v7975_v5, %v2842_v56  ;;  %v2859_v24 = vmul.f32 %v2851_v25, %v2851_v25 }
 0xea7   :  { %v2834_v4 = vpop.xlane.xlu0 %2833 }
 0xea8   :  { %v2844_v16 = vmul.f32 0.03125, %v2834_v4  ;;  %v2877_v45 = vsel %vm1234_vm6, %v2859_v24, 0.0  ;;  %v2858_v23 = vmul.f32 %v2850_v27, %v2850_v27 }
 0xea9   :  { %2878 = vadd.xlane.f32.xlu0 %v2877_v45 }
 0xeaa   :  { %v2852_v17 = vsub.f32 %v7984_v41, %v2844_v16  ;;  %v2874_v33 = vsel %vm1234_vm6, %v2858_v23, 0.0 }
 0xeab   :  { %2875 = vadd.xlane.f32.xlu1 %v2874_v33  ;;  %v2837_v40 = vpop.xlane.xlu0 %2836 }
 0xeac   :  { %v2845_v15 = vmul.f32 0.03125, %v2837_v40  ;;  %v2860_v51 = vmul.f32 %v2852_v17, %v2852_v17 }
 0xeae   :  { %v2853_v28 = vsub.f32 %v7992_v6, %v2845_v15  ;;  %v2880_v53 = vsel %vm1234_vm6, %v2860_v51, 0.0 }
 0xeaf   :  { %2881 = vadd.xlane.f32.xlu1 %v2880_v53 }
 0xeb0   :  { %v2861_v34 = vmul.f32 %v2853_v28, %v2853_v28 }
 0xeb2   :  { %v2883_v30 = vsel %vm1234_vm6, %v2861_v34, 0.0 }
 0xeb3   :  { %2884 = vadd.xlane.f32.xlu0 %v2883_v30 }
 0xf02   :  { %v6348_v50 = vpop.f32.mrf.mxu0 }
 0xf03   :  { %v3292_v2 = vadd.f32 %v6348_v50, %v7843_v31 }
 0xf04   :  { %v3252_v35 = vpop.f32.mrf.mxu0 }
 0xf05   :  { %v8022_v47 = vadd.f32 %v8018_v42, %v3292_v2  ;;  %v3291_v37 = vadd.f32 %v3252_v35, %v7847_v58 }
 0xf07   :  { %v8026_v59 = vadd.f32 %v8018_v42, %v3291_v37  ;;  %v3314_v43 = vsel %vm1234_vm6, %v8022_v47, 0.0 }
 0xf08   :  { %3315 = vadd.xlane.f32.xlu0 %v3314_v43 }
 0xf09   :  { %v6351_v60 = vpop.f32.mrf.mxu0  ;;  %v3311_v13 = vsel %vm1234_vm6, %v8026_v59, 0.0 }
 0xf0a   :  { %v3294_v22 = vadd.f32 %v6351_v60, %v7859_v55  ;;  %3312 = vadd.xlane.f32.xlu1 %v3311_v13 }
 0xf0b   :  { %v3262_v31 = vpop.f32.mrf.mxu0 }
 0xf0c   :  { %v8034_v14 = vadd.f32 %v8018_v42, %v3294_v22  ;;  %v3293_v58 = vadd.f32 %v3262_v31, %v7856_v54 }
 0xf0e   :  { %v8038_v62 = vadd.f32 %v8018_v42, %v3293_v58  ;;  %v3320_v46 = vsel %vm1234_vm6, %v8034_v14, 0.0 }
 0xf0f   :  { %3321 = vadd.xlane.f32.xlu0 %v3320_v46 }
 0xf10   :  { %v3317_v20 = vsel %vm1234_vm6, %v8038_v62, 0.0 }
 0xf11   :  { %3318 = vadd.xlane.f32.xlu1 %v3317_v20 }
 0xf32   :  { %v2879_v49 = vpop.xlane.xlu0 %2878 }
 0xf33   :  { %v2891_v55 = vmul.f32 0.03125, %v2879_v49 }
 0xf34   :  { %v2876_v12 = vpop.xlane.xlu1 %2875 }
 0xf35   :  { %v2899_v9 = vadd.f32 1e-06, %v2891_v55  ;;  %v2890_v11 = vmul.f32 0.03125, %v2876_v12 }
 0xf37   :  { %6676 = vrsqrt.f32 %v2899_v9  ;;  %v2898_v57 = vadd.f32 1e-06, %v2890_v11 }
 0xf38   :  { %v2882_v44 = vpop.xlane.xlu1 %2881 }
 0xf39   :  { %6678 = vrsqrt.f32 %v2898_v57  ;;  %v2892_v54 = vmul.f32 0.03125, %v2882_v44 }
 0xf3b   :  { %v2900_v56 = vadd.f32 1e-06, %v2892_v54 }
 0xf3c   :  { %v2885_v24 = vpop.xlane.xlu0 %2884 }
 0xf3d   :  { %6680 = vrsqrt.f32 %v2900_v56  ;;  %v2893_v4 = vmul.f32 0.03125, %v2885_v24  ;;  %v5673_v24 = vld [vmem:[%s8846_s8 + $0x38] sm:$0xff] }
 0xf3e   :  { %6358 = vmatprep.subr.mxu1 %v5673_v24 }
 0xf3f   :  { %v2901_v16 = vadd.f32 1e-06, %v2893_v4  ;;  %v5672_v4 = vld [vmem:[%s8846_s8 + $0x30] sm:$0xff]  ;;  %6359 = vmatpush3.msra.mxu1 %v5673_v24 }
 0xf40   :  { %6360 = vmatprep.subr.mxu1 %v5672_v4 }
 0xf41   :  { %6682 = vrsqrt.f32 %v2901_v16  ;;  %v5671_v16 = vld [vmem:[%s8846_s8 + $0x28] sm:$0xff]  ;;  %6361 = vmatpush3.msra.mxu1 %v5672_v4 }
 0xf42   :  { %6362 = vmatprep.subr.mxu1 %v5671_v16 }
 0xf43   :  { %6363 = vmatpush3.msra.mxu1 %v5671_v16 }
 0xf44   :  { %v6677_v45 = vpop.eup %6676 }
 0xf45   :  { %v2915_v23 = vmul.f32 %v6677_v45, %v2851_v25  ;;  %v5670_v45 = vld [vmem:[%s8846_s8 + $0x20] sm:$0xff] }
 0xf46   :  { %v6679_v33 = vpop.eup %6678  ;;  %6364 = vmatprep.subr.mxu1 %v5670_v45 }
 0xf47   :  { %v2914_v40 = vmul.f32 %v6679_v33, %v2850_v27  ;;  %v2927_v15 = vmul.f32 %v7918_v38, %v2915_v23  ;;  %6365 = vmatpush3.msra.mxu1 %v5670_v45  ;;  %v3445_v23 = vrot.slane %v8014_v18, 1  ;;  %v3449_v33 = vrot.slane %v8014_v18, 2 }
 0xf49   :  { %v2926_v51 = vmul.f32 %v7918_v38, %v2914_v40  ;;  %v2939_v50 = vadd.f32 %v7929_v3, %v2927_v15 }
 0xf4a   :  { %v6681_v53 = vpop.eup %6680 }
 0xf4b   :  { %v2938_v34 = vadd.f32 %v7929_v3, %v2926_v51  ;;  %v2916_v30 = vmul.f32 %v6681_v53, %v2852_v17 }
 0xf4d   :  { %6324 = vmatprep.mubr.msk.f32.mxu1 %vm1234_vm6, %v2938_v34  ;;  %v2928_v2 = vmul.f32 %v7918_v38, %v2916_v30 }
 0xf4e   :  { %v6683_v35 = vpop.eup %6682  ;;  %6325 = vmatmul.mubr.msk.f32.gmra.mxu1 %vm1234_vm6, %v2939_v50 }
 0xf4f   :  { %v2940_v25 = vadd.f32 %v7929_v3, %v2928_v2  ;;  %v2917_v27 = vmul.f32 %v6683_v35, %v2853_v28 }
 0xf51   :  { %6327 = vmatprep.mubr.msk.f32.mxu1 %vm1234_vm6, %v2940_v25  ;;  %v2929_v37 = vmul.f32 %v7918_v38, %v2917_v27 }
 0xf53   :  { %v2941_v43 = vadd.f32 %v7929_v3, %v2929_v37 }
 0xf55   :  { %6328 = vmatmul.mubr.msk.f32.gmra.mxu1 %vm1234_vm6, %v2941_v43 }
 0xf91   :  { %v3316_v17 = vpop.xlane.xlu0 %3315 }
 0xf92   :  { %v3336_v60 = vmul.f32 0.03125, %v3316_v17 }
 0xf93   :  { %v3313_v13 = vpop.xlane.xlu1 %3312 }
 0xf94   :  { %v8057_v22 = vsub.f32 %v8022_v47, %v3336_v60  ;;  %v3335_v31 = vmul.f32 0.03125, %v3313_v13 }
 0xf96   :  { %v8060_v58 = vsub.f32 %v8026_v59, %v3335_v31  ;;  %v3352_v28 = vmul.f32 %v8057_v22, %v8057_v22 }
 0xf98   :  { %v3322_v46 = vpop.xlane.xlu0 %3321  ;;  %v3362_v38 = vsel %vm1234_vm6, %v3352_v28, 0.0  ;;  %v3351_v3 = vmul.f32 %v8060_v58, %v8060_v58 }
 0xf99   :  { %v3338_v20 = vmul.f32 0.03125, %v3322_v46  ;;  %3363 = vadd.xlane.f32.xlu0 %v3362_v38 }
 0xf9a   :  { %v3319_v49 = vpop.xlane.xlu1 %3318  ;;  %v3359_v55 = vsel %vm1234_vm6, %v3351_v3, 0.0 }
 0xf9b   :  { %v8069_v12 = vsub.f32 %v8034_v14, %v3338_v20  ;;  %v3337_v9 = vmul.f32 0.03125, %v3319_v49  ;;  %3360 = vadd.xlane.f32.xlu1 %v3359_v55 }
 0xf9d   :  { %v8072_v11 = vsub.f32 %v8038_v62, %v3337_v9  ;;  %v3354_v57 = vmul.f32 %v8069_v12, %v8069_v12 }
 0xf9f   :  { %v3368_v44 = vsel %vm1234_vm6, %v3354_v57, 0.0  ;;  %v3353_v54 = vmul.f32 %v8072_v11, %v8072_v11 }
 0xfa0   :  { %3369 = vadd.xlane.f32.xlu0 %v3368_v44 }
 0xfa1   :  { %v3365_v56 = vsel %vm1234_vm6, %v3353_v54, 0.0 }
 0xfa2   :  { %3366 = vadd.xlane.f32.xlu1 %v3365_v56 }
 0xfb3   :  { %3446 = vrot.lane.b32.xlu1 %v3445_v23, %s7016_s30 }
 0xfb6   :  { %3450 = vrot.lane.b32.xlu0 %v3449_v33, %s7007_s4 }
0x100e   :  { %v6326_v40 = vpop.f32.mrf.mxu1 }
0x100f   :  { %v3069_v15 = vadd.f32 %v6326_v40, %v7989_v48 }
0x1010   :  { %v3063_v51 = vpop.f32.mrf.mxu1 }
0x1011   :  { %v3087_v53 = vmul.f32 %v3069_v15, %v3069_v15  ;;  %v3064_v34 = vadd.f32 %v7989_v48, %v3063_v51 }
0x1013   :  { %v3095_v30 = vmul.f32 %v3087_v53, %v3069_v15  ;;  %v3086_v50 = vmul.f32 %v3064_v34, %v3064_v34 }
0x1015   :  { %v3103_v2 = vmul.f32 0.044715, %v3095_v30  ;;  %v3094_v35 = vmul.f32 %v3086_v50, %v3064_v34  ;;  %v6329_v25 = vpop.f32.mrf.mxu1 }
0x1016   :  { %v3079_v27 = vadd.f32 %v6329_v25, %v7989_v48 }
0x1017   :  { %v3111_v37 = vadd.f32 %v3103_v2, %v3069_v15  ;;  %v3102_v43 = vmul.f32 0.044715, %v3094_v35  ;;  %v3073_v17 = vpop.f32.mrf.mxu1 }
0x1018   :  { %v3089_v60 = vmul.f32 %v3079_v27, %v3079_v27  ;;  %v3074_v13 = vadd.f32 %v7989_v48, %v3073_v17 }
0x1019   :  { %v3119_v31 = vmul.f32 0.7978846, %v3111_v37  ;;  %v3110_v28 = vadd.f32 %v3102_v43, %v3064_v34 }
0x101a   :  { %v3097_v46 = vmul.f32 %v3089_v60, %v3079_v27  ;;  %v3088_v38 = vmul.f32 %v3074_v13, %v3074_v13 }
0x101b   :  { %6684 = vtanh.f32 %v3119_v31  ;;  %v3118_v3 = vmul.f32 0.7978846, %v3110_v28 }
0x101c   :  { %v3105_v20 = vmul.f32 0.044715, %v3097_v46  ;;  %v3096_v49 = vmul.f32 %v3088_v38, %v3074_v13 }
0x101d   :  { %6686 = vtanh.f32 %v3118_v3 }
0x101e   :  { %v3113_v55 = vadd.f32 %v3105_v20, %v3079_v27  ;;  %v3104_v9 = vmul.f32 0.044715, %v3096_v49  ;;  %v8104_v49 = vrot.slane %v8014_v18, %v7373_v10 }
0x1020   :  { %v3121_v57 = vmul.f32 0.7978846, %v3113_v55  ;;  %v3112_v44 = vadd.f32 %v3104_v9, %v3074_v13 }
0x1022   :  { %6688 = vtanh.f32 %v3121_v57  ;;  %v3120_v54 = vmul.f32 0.7978846, %v3112_v44  ;;  %v3364_v56 = vpop.xlane.xlu0 %3363 }
0x1023   :  { %v3384_v24 = vmul.f32 0.03125, %v3364_v56 }
0x1024   :  { %6690 = vtanh.f32 %v3120_v54  ;;  %v3361_v4 = vpop.xlane.xlu1 %3360  ;;  %v8110_v54 = vrot.slane %v8014_v18, %v7398_v32 }
0x1025   :  { %v3392_v48 = vadd.f32 1e-06, %v3384_v24  ;;  %v3383_v16 = vmul.f32 0.03125, %v3361_v4 }
0x1027   :  { %6692 = vrsqrt.f32 %v3392_v48  ;;  %v3391_v45 = vadd.f32 1e-06, %v3383_v16 }
0x1028   :  { %v6685_v23 = vpop.eup %6684 }
0x1029   :  { %6694 = vrsqrt.f32 %v3391_v45  ;;  %v3370_v33 = vpop.xlane.xlu0 %3369  ;;  %v3135_v40 = vadd.f32 1.0, %v6685_v23 }
0x102a   :  { %v6687_v51 = vpop.eup %6686  ;;  %v3386_v53 = vmul.f32 0.03125, %v3370_v33 }
0x102b   :  { %v3367_v30 = vpop.xlane.xlu1 %3366  ;;  %v3134_v50 = vadd.f32 1.0, %v6687_v51  ;;  %v3143_v25 = vmul.f32 0.5, %v3135_v40  ;;  %v164_v40 = vld [vmem:[#allocation13 + $0x10] sm:$0xf] }
0x102c   :  { %v3394_v2 = vadd.f32 1e-06, %v3386_v53  ;;  %v3385_v35 = vmul.f32 0.03125, %v3367_v30 }
0x102d   :  { %v3142_v37 = vmul.f32 0.5, %v3134_v50  ;;  %v3151_v31 = vmul.f32 %v3143_v25, %v3069_v15 }
0x102e   :  { %6696 = vrsqrt.f32 %v3394_v2  ;;  %v3393_v43 = vadd.f32 1e-06, %v3385_v35  ;;  %v3451_v35 = vpop.permute.xlu0 %3450 }
0x102f   :  { %v6689_v17 = vpop.eup %6688  ;;  %v3150_v60 = vmul.f32 %v3142_v37, %v3064_v34  ;;  %v3447_v30 = vpop.permute.xlu1 %3446 }
0x1030   :  { %6698 = vrsqrt.f32 %v3393_v43  ;;  %v3137_v28 = vadd.f32 1.0, %v6689_v17  ;;  %v3453_v2 = vsel %vm1234_vm6, %v8014_v18, %v3447_v30 }
0x1031   :  { %v6691_v46 = vpop.eup %6690  ;;  %6352 = vmatprep.mubr.msk.f32.mxu0 %vm1378_vm7, %v3150_v60  ;;  %v3454_v37 = vsel %vm1378_vm7, %v3453_v2, %v3451_v35 }
0x1032   :  { %6353 = vmatmul.mubr.msk.f32.gmra.mxu0 %vm1378_vm7, %v3151_v31  ;;  %v3136_v38 = vadd.f32 1.0, %v6691_v46  ;;  %v3145_v3 = vmul.f32 0.5, %v3137_v28 }
0x1034   :  { %v6693_v20 = vpop.eup %6692  ;;  %v3144_v55 = vmul.f32 0.5, %v3136_v38  ;;  %v3153_v44 = vmul.f32 %v3145_v3, %v3079_v27 }
0x1035   :  { %v3408_v9 = vmul.f32 %v6693_v20, %v8057_v22 }
0x1036   :  { %v6695_v57 = vpop.eup %6694  ;;  %v3152_v34 = vmul.f32 %v3144_v55, %v3074_v13 }
0x1037   :  { %v3407_v15 = vmul.f32 %v6695_v57, %v8060_v58  ;;  %v3420_v56 = vmul.f32 %v8104_v49, %v3408_v9 }
0x1038   :  { %6355 = vmatprep.mubr.msk.f32.mxu0 %vm1378_vm7, %v3152_v34 }
0x1039   :  { %6356 = vmatmul.mubr.msk.f32.gmra.mxu0 %vm1378_vm7, %v3153_v44  ;;  %v3419_v24 = vmul.f32 %v8104_v49, %v3407_v15  ;;  %v3432_v13 = vadd.f32 %v8110_v54, %v3420_v56 }
0x103b   :  { %v6697_v4 = vpop.eup %6696  ;;  %v3431_v22 = vadd.f32 %v8110_v54, %v3419_v24 }
0x103c   :  { %v3410_v27 = vmul.f32 %v6697_v4, %v8069_v12  ;;  %v3457_v12 = vsub.s32 3, %v7363_v0 }
0x103d   :  { %v6699_v58 = vpop.eup %6698  ;;  %6366 = vmatprep.mubr.msk.f32.mxu1 %vm1234_vm6, %v3431_v22 }
0x103e   :  { %6367 = vmatmul.mubr.msk.f32.vlgmr.msra.gmra.mxu1 %vm1234_vm6, %v3432_v13  ;;  %v3409_v48 = vmul.f32 %v6699_v58, %v8072_v11  ;;  %v3422_v16 = vmul.f32 %v8104_v49, %v3410_v27  ;;  %v8129_v51 = vrot.slane %v164_v40, %v3457_v12  ;;  %v8140_v17 = vrot.slane %v3454_v37, %v3457_v12 }
0x1040   :  { %v3421_v45 = vmul.f32 %v8104_v49, %v3409_v48  ;;  %v3434_v33 = vadd.f32 %v8110_v54, %v3422_v16 }
0x1042   :  { %v3433_v23 = vadd.f32 %v8110_v54, %v3421_v45 }
0x1044   :  { %6369 = vmatprep.mubr.msk.f32.mxu1 %vm1234_vm6, %v3433_v23 }
0x1045   :  { %6370 = vmatmul.mubr.msk.f32.gmra.mxu1 %vm1234_vm6, %v3434_v33 }
0x10f2   :  { %v6354_v53 = vpop.f32.mrf.mxu0 }
0x10f3   :  { %v3296_v9 = vadd.f32 %v6354_v53, %v7971_v52 }
0x10f4   :  { %v3272_v11 = vpop.f32.mrf.mxu0 }
0x10f5   :  { %v3295_v50 = vadd.f32 %v3272_v11, %v7975_v5  ;;  %v8179_v34 = vadd.f32 %v8018_v42, %v3296_v9 }
0x10f7   :  { %v8135_v25 = vadd.f32 %v8018_v42, %v3295_v50  ;;  %v3326_v56 = vsel %vm1234_vm6, %v8179_v34, 0.0 }
0x10f9   :  { %v3323_v43 = vsel %vm1234_vm6, %v8135_v25, 0.0  ;;  %v6357_v20 = vpop.f32.mrf.mxu0 }
0x10fa   :  { %3324 = vadd.xlane.f32.xlu0 %v3323_v43  ;;  %v3298_v44 = vadd.f32 %v6357_v20, %v7992_v6 }
0x10fb   :  { %v3282_v55 = vpop.f32.mrf.mxu0 }
0x10fc   :  { %v3297_v57 = vadd.f32 %v3282_v55, %v7984_v41  ;;  %v8188_v24 = vadd.f32 %v8018_v42, %v3298_v44 }
0x10fe   :  { %v6368_v60 = vpop.f32.mrf.mxu1  ;;  %v8183_v15 = vadd.f32 %v8018_v42, %v3297_v57  ;;  %v3332_v41 = vsel %vm1234_vm6, %v8188_v24, 0.0 }
0x10ff   :  { %v8143_v31 = vadd.f32 %v6368_v60, %v8140_v17 }
0x1100   :  { %v3549_v5 = vpop.f32.mrf.mxu1  ;;  %v3329_v52 = vsel %vm1234_vm6, %v8183_v15, 0.0 }
0x1101   :  { %v8146_v28 = vadd.f32 %v3549_v5, %v8140_v17  ;;  %3864 = vrot.lane.b32.xlu1 %v8143_v31, %s7017_s14 }
0x1103   :  { %6386 = vmatprep.mubr.msk.f32.mxu0 %vm166_vm1, %v8146_v28 }
0x1105   :  { %3592 = vrot.lane.b32.xlu1 %v8146_v28, %s7018_s15  ;;  %v6371_v18 = vpop.f32.mrf.mxu1 }
0x1106   :  { %v8157_v46 = vadd.f32 %v6371_v18, %v8140_v17 }
0x1107   :  { %v3559_v38 = vpop.f32.mrf.mxu1 }
0x1108   :  { %v8162_v3 = vadd.f32 %v3559_v38, %v8140_v17 }
0x1109   :  { %3870 = vrot.lane.b32.xlu1 %v8146_v28, %s7019_s7 }
0x110d   :  { %3598 = vrot.lane.b32.xlu1 %v8157_v46, %s7018_s15 }
0x1110   :  { %3594 = vrot.lane.b32.xlu0 %v8143_v31, %s7018_s15 }
0x1111   :  { %3596 = vrot.lane.b32.xlu1 %v8162_v3, %s7018_s15 }
0x1114   :  { %3872 = vrot.lane.b32.xlu0 %v8143_v31, %s7019_s7 }
0x1115   :  { %3874 = vrot.lane.b32.xlu1 %v8162_v3, %s7019_s7 }
0x1118   :  { %3862 = vrot.lane.b32.xlu0 %v8146_v28, %s7017_s14 }
0x111c   :  { %3876 = vrot.lane.b32.xlu0 %v8157_v46, %s7019_s7 }
0x1139   :  { %3327 = vadd.xlane.f32.xlu1 %v3326_v56 }
0x113b   :  { %3330 = vadd.xlane.f32.xlu0 %v3329_v52 }
0x113f   :  { %3333 = vadd.xlane.f32.xlu0 %v3332_v41 }
0x114a   :  { %3866 = vrot.lane.b32.xlu1 %v8162_v3, %s7017_s14 }
0x1155   :  { %3868 = vrot.lane.b32.xlu0 %v8157_v46, %s7017_s14 }
0x1173   :  { %v3865_v6 = vpop.permute.xlu1 %3864 }
0x1177   :  { %v3593_v4 = vpop.permute.xlu1 %3592 }
0x117b   :  { %v3871_v22 = vpop.permute.xlu1 %3870 }
0x117f   :  { %v3599_v13 = vpop.permute.xlu1 %3598 }
0x1180   :  { %6378 = vmatprep.subr.msk.mxu0 %vm166_vm1, %v3599_v13 }
0x1181   :  { %6379 = vmatpush3.xpose.msk.msra.mxu0 %vm166_vm1, %v3599_v13 }
0x1183   :  { %v3597_v42 = vpop.permute.xlu1 %3596  ;;  %v3325_v27 = vpop.xlane.xlu0 %3324 }
0x1184   :  { %v3339_v58 = vmul.f32 0.03125, %v3325_v27  ;;  %6380 = vmatprep.subr.msk.mxu0 %vm166_vm1, %v3597_v42 }
0x1185   :  { %6381 = vmatpush3.xpose.msk.msra.mxu0 %vm166_vm1, %v3597_v42 }
0x1186   :  { %v3347_v48 = vsub.f32 %v8135_v25, %v3339_v58 }
0x1187   :  { %v3595_v16 = vpop.permute.xlu0 %3594  ;;  %v3875_v53 = vpop.permute.xlu1 %3874 }
0x1188   :  { %6382 = vmatprep.subr.msk.mxu0 %vm166_vm1, %v3595_v16  ;;  %v3355_v45 = vmul.f32 %v3347_v48, %v3347_v48 }
0x1189   :  { %6383 = vmatpush3.xpose.msk.msra.mxu0 %vm166_vm1, %v3595_v16 }
0x118a   :  { %6384 = vmatprep.subr.msk.mxu0 %vm166_vm1, %v3593_v4  ;;  %v3371_v23 = vsel %vm1234_vm6, %v3355_v45, 0.0 }
0x118b   :  { %3372 = vadd.xlane.f32.xlu1 %v3371_v23  ;;  %v3873_v33 = vpop.permute.xlu0 %3872 }
0x118d   :  { %6385 = vmatpush3.xpose.msk.msra.mxu0 %vm166_vm1, %v3593_v4 }
0x118f   :  { %v3863_v12 = vpop.permute.xlu0 %3862 }
0x1190   :  { %6387 = vmatmul.mubr.msk.f32.vlgmr.msra.gmra.mxu0 %vm166_vm1, %v8143_v31 }
0x1191   :  { %6389 = vmatprep.mubr.msk.f32.mxu0 %vm166_vm1, %v8162_v3 }
0x1193   :  { %v3877_v40 = vpop.permute.xlu0 %3876 }
0x1194   :  { %6390 = vmatmul.mubr.msk.f32.gmra.mxu0 %vm166_vm1, %v8157_v46  ;;  %6406 = vmatprep.subr.msk.mxu0 %vm166_vm1, %v3877_v40 }
0x1195   :  { %6407 = vmatpush3.xpose.msk.msra.mxu0 %vm166_vm1, %v3877_v40  ;;  %6414 = vmatprep.mubr.msk.f32.mxu0 %vm166_vm1, %v3863_v12 }
0x1196   :  { %6408 = vmatprep.subr.msk.mxu0 %vm166_vm1, %v3875_v53 }
0x1199   :  { %6409 = vmatpush3.xpose.msk.msra.mxu0 %vm166_vm1, %v3875_v53 }
0x119a   :  { %6410 = vmatprep.subr.msk.mxu0 %vm166_vm1, %v3873_v33 }
0x119d   :  { %6411 = vmatpush3.xpose.msk.msra.mxu0 %vm166_vm1, %v3873_v33 }
0x119e   :  { %6412 = vmatprep.subr.msk.mxu0 %vm166_vm1, %v3871_v22 }
0x11a1   :  { %6413 = vmatpush3.xpose.msk.msra.mxu0 %vm166_vm1, %v3871_v22 }
0x11a4   :  { %6415 = vmatmul.mubr.msk.f32.vlgmr.msra.gmra.mxu0 %vm166_vm1, %v3865_v6 }
0x11c2   :  { %v3328_v30 = vpop.xlane.xlu1 %3327 }
0x11c3   :  { %v3340_v11 = vmul.f32 0.03125, %v3328_v30 }
0x11c4   :  { %v3331_v50 = vpop.xlane.xlu0 %3330 }
0x11c5   :  { %v8225_v2 = vsub.f32 %v8179_v34, %v3340_v11  ;;  %v3341_v35 = vmul.f32 0.03125, %v3331_v50 }
0x11c6   :  { %v3867_v37 = vpop.permute.xlu1 %3866 }
0x11c7   :  { %v8228_v43 = vsub.f32 %v8183_v15, %v3341_v35  ;;  %6417 = vmatprep.mubr.msk.f32.mxu0 %vm166_vm1, %v3867_v37  ;;  %v3356_v60 = vmul.f32 %v8225_v2, %v8225_v2 }
0x11c8   :  { %v3334_v5 = vpop.xlane.xlu0 %3333 }
0x11c9   :  { %v3342_v18 = vmul.f32 0.03125, %v3334_v5  ;;  %v3374_v38 = vsel %vm1234_vm6, %v3356_v60, 0.0  ;;  %v3357_v20 = vmul.f32 %v8228_v43, %v8228_v43 }
0x11ca   :  { %3375 = vadd.xlane.f32.xlu0 %v3374_v38 }
0x11cb   :  { %v8237_v55 = vsub.f32 %v8188_v24, %v3342_v18  ;;  %v3377_v9 = vsel %vm1234_vm6, %v3357_v20, 0.0 }
0x11cc   :  { %3378 = vadd.xlane.f32.xlu1 %v3377_v9  ;;  %v3869_v57 = vpop.permute.xlu0 %3868 }
0x11cd   :  { %6418 = vmatmul.mubr.msk.f32.gmra.mxu0 %vm166_vm1, %v3869_v57  ;;  %v3358_v44 = vmul.f32 %v8237_v55, %v8237_v55 }
0x11cf   :  { %v3380_v56 = vsel %vm1234_vm6, %v3358_v44, 0.0 }
0x11d0   :  { %3381 = vadd.xlane.f32.xlu0 %v3380_v56 }
0x1214   :  { %v3373_v52 = vpop.xlane.xlu1 %3372 }
0x1215   :  { %v3387_v41 = vmul.f32 0.03125, %v3373_v52 }
0x1217   :  { %v3395_v6 = vadd.f32 1e-06, %v3387_v41 }
0x1219   :  { %6700 = vrsqrt.f32 %v3395_v6 }
0x1226   :  { %v6701_v4 = vpop.eup %6700 }
0x1227   :  { %v3411_v22 = vmul.f32 %v6701_v4, %v3347_v48 }
0x1229   :  { %v3423_v13 = vmul.f32 %v8104_v49, %v3411_v22 }
0x122b   :  { %v3435_v42 = vadd.f32 %v8110_v54, %v3423_v13 }
0x122d   :  { %6372 = vmatprep.mubr.msk.f32.mxu1 %vm1234_vm6, %v3435_v42 }
0x1250   :  { %v6388_v27 = vpop.f32.mrf.mxu0 }
0x1251   :  { %v3702_v58 = vmul.f32 0.25, %v6388_v27 }
0x1252   :  { %v3682_v16 = vpop.f32.mrf.mxu0 }
0x1253   :  { %v8248_v45 = vadd.f32 %v3702_v58, %v7517_v61  ;;  %v3701_v23 = vmul.f32 0.25, %v3682_v16  ;;  %v3376_v33 = vpop.xlane.xlu0 %3375 }
0x1254   :  { %v3388_v12 = vmul.f32 0.03125, %v3376_v33  ;;  %v6391_v40 = vpop.f32.mrf.mxu0 }
0x1255   :  { %v8251_v53 = vadd.f32 %v3701_v23, %v7522_v63  ;;  %v3704_v48 = vmul.f32 0.25, %v6391_v40  ;;  %v3379_v30 = vpop.xlane.xlu1 %3378  ;;  %v3712_v11 = vsel %vm1234_vm6, %v8248_v45, -inf }
0x1256   :  { %v3396_v50 = vadd.f32 1e-06, %v3388_v12  ;;  %v3389_v35 = vmul.f32 0.03125, %v3379_v30  ;;  %v3692_v37 = vpop.f32.mrf.mxu0  ;;  %3713 = vmax.xlane.f32.xlu0 %v3712_v11 }
0x1257   :  { %v8256_v60 = vadd.f32 %v3704_v48, %v7530_v8  ;;  %v3703_v5 = vmul.f32 0.25, %v3692_v37  ;;  %v3709_v18 = vsel %vm1234_vm6, %v8251_v53, -inf }
0x1258   :  { %6702 = vrsqrt.f32 %v3396_v50  ;;  %v3397_v38 = vadd.f32 1e-06, %v3389_v35  ;;  %3710 = vmax.xlane.f32.xlu1 %v3709_v18 }
0x1259   :  { %v8261_v20 = vadd.f32 %v3703_v5, %v7538_v19  ;;  %v3382_v9 = vpop.xlane.xlu0 %3381  ;;  %v3718_v57 = vsel %vm1234_vm6, %v8256_v60, -inf }
0x125a   :  { %6704 = vrsqrt.f32 %v3397_v38  ;;  %v3390_v44 = vmul.f32 0.03125, %v3382_v9  ;;  %3719 = vmax.xlane.f32.xlu0 %v3718_v57 }
0x125b   :  { %v3715_v56 = vsel %vm1234_vm6, %v8261_v20, -inf }
0x125c   :  { %v3398_v52 = vadd.f32 1e-06, %v3390_v44  ;;  %3716 = vmax.xlane.f32.xlu1 %v3715_v56 }
0x125e   :  { %6706 = vrsqrt.f32 %v3398_v52 }
0x1264   :  { %v6416_v41 = vpop.f32.mrf.mxu0 }
0x1265   :  { %v6703_v6 = vpop.eup %6702  ;;  %v3980_v4 = vmul.f32 0.25, %v6416_v41 }
0x1266   :  { %v3960_v22 = vpop.f32.mrf.mxu0  ;;  %v3412_v13 = vmul.f32 %v6703_v6, %v8225_v2 }
0x1267   :  { %v6705_v42 = vpop.eup %6704  ;;  %v3984_v27 = vadd.f32 %v3980_v4, %v7517_v61  ;;  %v3979_v58 = vmul.f32 0.25, %v3960_v22 }
0x1268   :  { %v3424_v16 = vmul.f32 %v8104_v49, %v3412_v13  ;;  %v3413_v23 = vmul.f32 %v6705_v42, %v8228_v43 }
0x1269   :  { %v8272_v33 = vadd.f32 %v3979_v58, %v7522_v63  ;;  %v3990_v12 = vsel %vm1234_vm6, %v3984_v27, -inf }
0x126a   :  { %3991 = vmax.xlane.f32.xlu0 %v3990_v12  ;;  %v3436_v40 = vadd.f32 %v8110_v54, %v3424_v16  ;;  %v3425_v48 = vmul.f32 %v8104_v49, %v3413_v23 }
0x126b   :  { %v6707_v30 = vpop.eup %6706  ;;  %v3987_v2 = vsel %vm1234_vm6, %v8272_v33, -inf }
0x126c   :  { %3988 = vmax.xlane.f32.xlu1 %v3987_v2  ;;  %6373 = vmatmul.mubr.msk.f32.gmra.mxu1 %vm1234_vm6, %v3436_v40  ;;  %v3437_v61 = vadd.f32 %v8110_v54, %v3425_v48  ;;  %v3414_v43 = vmul.f32 %v6707_v30, %v8237_v55 }
0x126e   :  { %6375 = vmatprep.mubr.msk.f32.mxu1 %vm1234_vm6, %v3437_v61  ;;  %v3426_v63 = vmul.f32 %v8104_v49, %v3414_v43 }
0x1270   :  { %v3438_v11 = vadd.f32 %v8110_v54, %v3426_v63 }
0x1272   :  { %6376 = vmatmul.mubr.msk.f32.gmra.mxu1 %vm1234_vm6, %v3438_v11 }
0x127d   :  { %3757 = vrot.lane.b32.xlu1 %v8162_v3, %s7007_s4 }
0x1281   :  { %3753 = vrot.lane.b32.xlu1 %v8146_v28, %s7007_s4 }
0x1285   :  { %4035 = vrot.lane.b32.xlu1 %v8162_v3, %s7020_s18 }
0x128d   :  { %v6419_v50 = vpop.f32.mrf.mxu0 }
0x128e   :  { %v3982_v35 = vmul.f32 0.25, %v6419_v50 }
0x128f   :  { %v3970_v54 = vpop.f32.mrf.mxu0 }
0x1290   :  { %v8293_v55 = vadd.f32 %v3982_v35, %v7530_v8  ;;  %v3981_v37 = vmul.f32 0.25, %v3970_v54 }
0x1292   :  { %v3996_v49 = vsel %vm1234_vm6, %v8293_v55, -inf  ;;  %v8298_v5 = vadd.f32 %v3981_v37, %v7538_v19 }
0x1293   :  { %3997 = vmax.xlane.f32.xlu0 %v3996_v49 }
0x1294   :  { %v3993_v18 = vsel %vm1234_vm6, %v8298_v5, -inf }
0x12a9   :  { %3759 = vrot.lane.b32.xlu0 %v8157_v46, %s7007_s4  ;;  %3994 = vmax.xlane.f32.xlu1 %v3993_v18 }
0x12ad   :  { %3755 = vrot.lane.b32.xlu0 %v8143_v31, %s7007_s4 }
0x12b1   :  { %4037 = vrot.lane.b32.xlu0 %v8157_v46, %s7020_s18 }
0x12b5   :  { %4033 = vrot.lane.b32.xlu0 %v8143_v31, %s7020_s18 }
0x12ba   :  { %4031 = vrot.lane.b32.xlu1 %v8146_v28, %s7020_s18 }
0x12df   :  { %v3714_v8 = vpop.xlane.xlu0 %3713 }
0x12e0   :  { %v3722_v19 = vsub.f32 %v8248_v45, %v3714_v8 }
0x12e1   :  { %v3711_v3 = vpop.xlane.xlu1 %3710 }
0x12e2   :  { %v3727_v38 = vmul.f32 1.442695, %v3722_v19  ;;  %v3721_v9 = vsub.f32 %v8251_v53, %v3711_v3 }
0x12e3   :  { %v3720_v57 = vpop.xlane.xlu0 %3719 }
0x12e4   :  { %6708 = vpow2.f32 %v3727_v38  ;;  %v3725_v44 = vmul.f32 1.442695, %v3721_v9  ;;  %v3724_v56 = vsub.f32 %v8256_v60, %v3720_v57 }
0x12e5   :  { %v3717_v52 = vpop.xlane.xlu1 %3716 }
0x12e6   :  { %6710 = vpow2.f32 %v3725_v44  ;;  %v3731_v46 = vmul.f32 1.442695, %v3724_v56  ;;  %v3723_v31 = vsub.f32 %v8261_v20, %v3717_v52 }
0x12e8   :  { %6712 = vpow2.f32 %v3731_v46  ;;  %v3729_v41 = vmul.f32 1.442695, %v3723_v31 }
0x12ea   :  { %6714 = vpow2.f32 %v3729_v41 }
0x12f1   :  { %v8316_v28 = vpop.eup %6708 }
0x12f2   :  { %v3736_v45 = vsel %vm1234_vm6, %v8316_v28, 0.0 }
0x12f3   :  { %v8320_v6 = vpop.eup %6710  ;;  %3737 = vadd.xlane.f32.xlu0 %v3736_v45  ;;  %v3992_v53 = vpop.xlane.xlu0 %3991 }
0x12f4   :  { %v4000_v4 = vsub.f32 %v3984_v27, %v3992_v53  ;;  %v3733_v60 = vsel %vm1234_vm6, %v8320_v6, 0.0 }
0x12f5   :  { %v8324_v22 = vpop.eup %6712  ;;  %3734 = vadd.xlane.f32.xlu1 %v3733_v60  ;;  %v3989_v23 = vpop.xlane.xlu1 %3988 }
0x12f6   :  { %v4005_v20 = vmul.f32 1.442695, %v4000_v4  ;;  %v3742_v13 = vsel %vm1234_vm6, %v8324_v22, 0.0  ;;  %v3999_v37 = vsub.f32 %v8272_v33, %v3989_v23 }
0x12f7   :  { %v8328_v42 = vpop.eup %6714  ;;  %3743 = vadd.xlane.f32.xlu0 %v3742_v13 }
0x12f8   :  { %6716 = vpow2.f32 %v4005_v20  ;;  %v3739_v58 = vsel %vm1234_vm6, %v8328_v42, 0.0  ;;  %v4003_v8 = vmul.f32 1.442695, %v3999_v37 }
0x12f9   :  { %3740 = vadd.xlane.f32.xlu1 %v3739_v58  ;;  %v3758_v40 = vpop.permute.xlu1 %3757 }
0x12fa   :  { %6718 = vpow2.f32 %v4003_v8 }
0x12fd   :  { %v3754_v2 = vpop.permute.xlu1 %3753 }
0x1301   :  { %v4036_v18 = vpop.permute.xlu1 %4035 }
0x1305   :  { %v8332_v16 = vpop.eup %6716 }
0x1306   :  { %v4014_v27 = vsel %vm1234_vm6, %v8332_v16, 0.0 }
0x1307   :  { %4015 = vadd.xlane.f32.xlu0 %v4014_v27  ;;  %v6719_v44 = vpop.eup %6718 }
0x1308   :  { %v4011_v56 = vsel %vm1234_vm6, %v6719_v44, 0.0 }
0x131c   :  { %v3998_v12 = vpop.xlane.xlu0 %3997 }
0x131d   :  { %v4002_v19 = vsub.f32 %v8293_v55, %v3998_v12 }
0x131f   :  { %v4009_v38 = vmul.f32 1.442695, %v4002_v19 }
0x1320   :  { %v3760_v48 = vpop.permute.xlu0 %3759 }
0x1321   :  { %6392 = vmatprep.subr.mxu1 %v3760_v48  ;;  %6720 = vpow2.f32 %v4009_v38 }
0x1322   :  { %6393 = vmatpush3.msra.mxu1 %v3760_v48 }
0x1323   :  { %6394 = vmatprep.subr.mxu1 %v3758_v40 }
0x1324   :  { %6395 = vmatpush3.msra.mxu1 %v3758_v40  ;;  %v3756_v30 = vpop.permute.xlu0 %3755 }
0x1325   :  { %6396 = vmatprep.subr.mxu1 %v3756_v30 }
0x1326   :  { %6397 = vmatpush3.msra.mxu1 %v3756_v30 }
0x1327   :  { %6398 = vmatprep.subr.mxu1 %v3754_v2 }
0x1328   :  { %6399 = vmatpush3.msra.mxu1 %v3754_v2  ;;  %v4038_v61 = vpop.permute.xlu0 %4037 }
0x1329   :  { %6420 = vmatprep.subr.mxu1 %v4038_v61 }
0x132c   :  { %v6374_v43 = vpop.f32.mrf.mxu1  ;;  %v4034_v31 = vpop.permute.xlu0 %4033 }
0x132d   :  { %v8345_v54 = vadd.f32 %v6374_v43, %v8140_v17 }
0x132e   :  { %v3569_v63 = vpop.f32.mrf.mxu1  ;;  %v8357_v52 = vpop.eup %6720 }
0x132f   :  { %v4020_v33 = vsel %vm1234_vm6, %v8357_v52, 0.0 }
0x1332   :  { %v6377_v11 = vpop.f32.mrf.mxu1  ;;  %v3995_v3 = vpop.xlane.xlu1 %3994 }
0x1333   :  { %v8337_v50 = vadd.f32 %v6377_v11, %v8140_v17  ;;  %v4001_v9 = vsub.f32 %v8298_v5, %v3995_v3  ;;  %v8366_v5 = vadd.f32 %v3569_v63, %v8140_v17 }
0x1334   :  { %v3579_v35 = vpop.f32.mrf.mxu1 }
0x1335   :  { %v8340_v49 = vadd.f32 %v3579_v35, %v8140_v17  ;;  %4170 = vrot.lane.b32.xlu0 %v8337_v50, %s7018_s15  ;;  %v4007_v57 = vmul.f32 1.442695, %v4001_v9 }
0x1336   :  { %v4032_v41 = vpop.permute.xlu1 %4031 }
0x1337   :  { %4168 = vrot.lane.b32.xlu1 %v8340_v49, %s7018_s15  ;;  %6722 = vpow2.f32 %v4007_v57 }
0x1339   :  { %4166 = vrot.lane.b32.xlu0 %v8345_v54, %s7018_s15 }
0x133d   :  { %4329 = vrot.lane.b32.xlu0 %v8340_v49, %s7007_s4 }
0x1344   :  { %v8361_v46 = vpop.eup %6722 }
0x1345   :  { %v4017_v55 = vsel %vm1234_vm6, %v8361_v46, 0.0 }
0x135b   :  { %4012 = vadd.xlane.f32.xlu1 %v4011_v56 }
0x135f   :  { %4021 = vadd.xlane.f32.xlu1 %v4020_v33 }
0x1363   :  { %4018 = vadd.xlane.f32.xlu1 %v4017_v55 }
0x1374   :  { %4164 = vrot.lane.b32.xlu1 %v8366_v5, %s7018_s15 }
0x1378   :  { %4331 = vrot.lane.b32.xlu1 %v8337_v50, %s7007_s4 }
0x137c   :  { %4327 = vrot.lane.b32.xlu1 %v8345_v54, %s7007_s4  ;;  %v3738_v45 = vpop.xlane.xlu0 %3737 }
0x137d   :  { %6724 = vrcp.f32 %v3738_v45 }
0x137e   :  { %v3735_v53 = vpop.xlane.xlu1 %3734 }
0x137f   :  { %6726 = vrcp.f32 %v3735_v53 }
0x1380   :  { %4325 = vrot.lane.b32.xlu1 %v8366_v5, %s7007_s4  ;;  %v3744_v17 = vpop.xlane.xlu0 %3743 }
0x1381   :  { %6728 = vrcp.f32 %v3744_v17 }
0x1382   :  { %v3741_v4 = vpop.xlane.xlu1 %3740 }
0x1383   :  { %6730 = vrcp.f32 %v3741_v4 }
0x138a   :  { %v6725_v60 = vpop.eup %6724 }
0x138b   :  { %v3750_v58 = vmul.f32 %v6725_v60, %v8316_v28 }
0x138c   :  { %v6727_v20 = vpop.eup %6726 }
0x138d   :  { %v3749_v13 = vmul.f32 %v6727_v20, %v8320_v6 }
0x138e   :  { %v6729_v27 = vpop.eup %6728 }
0x138f   :  { %6400 = vmatprep.mubr.msk.f32.mxu1 %vm1234_vm6, %v3749_v13  ;;  %v3752_v40 = vmul.f32 %v6729_v27, %v8324_v22 }
0x1390   :  { %v6731_v23 = vpop.eup %6730  ;;  %6401 = vmatmul.mubr.msk.f32.vlgmr.msra.gmra.mxu1 %vm1234_vm6, %v3750_v58  ;;  %v4016_v28 = vpop.xlane.xlu0 %4015 }
0x1391   :  { %6421 = vmatpush3.msra.mxu1 %v4038_v61  ;;  %v3751_v12 = vmul.f32 %v6731_v23, %v8328_v42  ;;  %6732 = vrcp.f32 %v4016_v28 }
0x1392   :  { %6422 = vmatprep.subr.mxu1 %v4036_v18 }
0x1393   :  { %6423 = vmatpush3.msra.mxu1 %v4036_v18  ;;  %6403 = vmatprep.mubr.msk.f32.mxu1 %vm1234_vm6, %v3751_v12 }
0x1394   :  { %6424 = vmatprep.subr.mxu1 %v4034_v31  ;;  %6404 = vmatmul.mubr.msk.f32.gmra.mxu1 %vm1234_vm6, %v3752_v40 }
0x1395   :  { %6425 = vmatpush3.msra.mxu1 %v4034_v31 }
0x1396   :  { %6426 = vmatprep.subr.mxu1 %v4032_v41 }
0x1397   :  { %6427 = vmatpush3.msra.mxu1 %v4032_v41 }
0x139e   :  { %v6733_v43 = vpop.eup %6732 }
0x139f   :  { %v4028_v35 = vmul.f32 %v6733_v43, %v8332_v16 }
0x13a7   :  { %v4171_v6 = vpop.permute.xlu0 %4170 }
0x13a8   :  { %6434 = vmatprep.subr.msk.mxu1 %vm166_vm1, %v4171_v6 }
0x13a9   :  { %v4169_v48 = vpop.permute.xlu1 %4168 }
0x13ab   :  { %v4167_v2 = vpop.permute.xlu0 %4166 }
0x13af   :  { %v4330_v18 = vpop.permute.xlu0 %4329 }
0x13e4   :  { %v4013_v30 = vpop.xlane.xlu1 %4012 }
0x13e5   :  { %6734 = vrcp.f32 %v4013_v30 }
0x13e8   :  { %v4022_v42 = vpop.xlane.xlu1 %4021 }
0x13e9   :  { %6736 = vrcp.f32 %v4022_v42 }
0x13ec   :  { %v4019_v22 = vpop.xlane.xlu1 %4018 }
0x13ed   :  { %6738 = vrcp.f32 %v4019_v22 }
0x13f0   :  { %v4165_v61 = vpop.permute.xlu1 %4164 }
0x13f2   :  { %v6735_v63 = vpop.eup %6734 }
0x13f3   :  { %v4027_v11 = vmul.f32 %v6735_v63, %v6719_v44 }
0x13f4   :  { %v4332_v37 = vpop.permute.xlu1 %4331 }
0x13f5   :  { %6428 = vmatprep.mubr.msk.f32.mxu1 %vm1234_vm6, %v4027_v11  ;;  %6448 = vmatprep.subr.mxu0 %v4332_v37 }
0x13f6   :  { %6429 = vmatmul.mubr.msk.f32.vlgmr.msra.gmra.mxu1 %vm1234_vm6, %v4028_v35  ;;  %6449 = vmatpush3.msra.mxu0 %v4332_v37  ;;  %v6737_v19 = vpop.eup %6736 }
0x13f7   :  { %6435 = vmatpush3.xpose.msk.msra.mxu1 %vm166_vm1, %v4171_v6  ;;  %6450 = vmatprep.subr.mxu0 %v4330_v18  ;;  %v4030_v9 = vmul.f32 %v6737_v19, %v8357_v52 }
0x13f8   :  { %6436 = vmatprep.subr.msk.mxu1 %vm166_vm1, %v4169_v48  ;;  %v4328_v8 = vpop.permute.xlu1 %4327  ;;  %6451 = vmatpush3.msra.mxu0 %v4330_v18 }
0x13f9   :  { %6452 = vmatprep.subr.mxu0 %v4328_v8 }
0x13fa   :  { %v6739_v3 = vpop.eup %6738  ;;  %6453 = vmatpush3.msra.mxu0 %v4328_v8 }
0x13fb   :  { %6437 = vmatpush3.xpose.msk.msra.mxu1 %vm166_vm1, %v4169_v48  ;;  %v4029_v16 = vmul.f32 %v6739_v3, %v8361_v46 }
0x13fc   :  { %6438 = vmatprep.subr.msk.mxu1 %vm166_vm1, %v4167_v2  ;;  %v4326_v38 = vpop.permute.xlu1 %4325 }
0x13fd   :  { %6431 = vmatprep.mubr.msk.f32.mxu1 %vm1234_vm6, %v4029_v16  ;;  %6454 = vmatprep.subr.mxu0 %v4326_v38 }
0x13fe   :  { %6432 = vmatmul.mubr.msk.f32.gmra.mxu1 %vm1234_vm6, %v4030_v9  ;;  %6455 = vmatpush3.msra.mxu0 %v4326_v38 }
0x13ff   :  { %6439 = vmatpush3.xpose.msk.msra.mxu1 %vm166_vm1, %v4167_v2  ;;  %6442 = vmatprep.mubr.msk.f32.mxu1 %vm166_vm1, %v8366_v5 }
0x1400   :  { %6440 = vmatprep.subr.msk.mxu1 %vm166_vm1, %v4165_v61 }
0x1403   :  { %6441 = vmatpush3.xpose.msk.msra.mxu1 %vm166_vm1, %v4165_v61 }
0x1406   :  { %6443 = vmatmul.mubr.msk.f32.vlgmr.msra.gmra.mxu1 %vm166_vm1, %v8345_v54 }
0x1407   :  { %6445 = vmatprep.mubr.msk.f32.mxu1 %vm166_vm1, %v8340_v49 }
0x140a   :  { %6446 = vmatmul.mubr.msk.f32.gmra.mxu1 %vm166_vm1, %v8337_v50 }
0x1450   :  { %v8407_v57 = vpop.f32.mrf.mxu1 }
0x1452   :  { %v8409_v44 = vpop.f32.mrf.mxu1 }
0x1454   :  { %v8411_v56 = vpop.f32.mrf.mxu1 }
0x1456   :  { %v8413_v52 = vpop.f32.mrf.mxu1 }
0x14b6   :  { %v8415_v33 = vpop.f32.mrf.mxu1 }
0x14b8   :  { %v8417_v46 = vpop.f32.mrf.mxu1 }
0x14be   :  { %v8419_v55 = vpop.f32.mrf.mxu1 }
0x14c0   :  { %v8421_v31 = vpop.f32.mrf.mxu1 }
0x14c6   :  { %v6444_v41 = vpop.f32.mrf.mxu1 }
0x14c7   :  { %v4274_v45 = vmul.f32 0.25, %v6444_v41 }
0x14c8   :  { %v4254_v53 = vpop.f32.mrf.mxu1 }
0x14c9   :  { %v4278_v17 = vadd.f32 %v4274_v45, %v7712_v29  ;;  %v4273_v4 = vmul.f32 0.25, %v4254_v53 }
0x14ca   :  { %v6447_v60 = vpop.f32.mrf.mxu1 }
0x14cb   :  { %v4277_v20 = vadd.f32 %v4273_v4, %v7715_v26  ;;  %v4276_v13 = vmul.f32 0.25, %v6447_v60  ;;  %v4284_v58 = vsel %vm1234_vm6, %v4278_v17, -inf }
0x14cc   :  { %4285 = vmax.xlane.f32.xlu1 %v4284_v58  ;;  %v4264_v27 = vpop.f32.mrf.mxu1 }
0x14cd   :  { %v4280_v23 = vadd.f32 %v4276_v13, %v7719_v39  ;;  %v4275_v12 = vmul.f32 0.25, %v4264_v27  ;;  %v4281_v40 = vsel %vm1234_vm6, %v4277_v20, -inf }
0x14ce   :  { %4282 = vmax.xlane.f32.xlu0 %v4281_v40 }
0x14cf   :  { %v4279_v28 = vadd.f32 %v4275_v12, %v7726_v1  ;;  %v4290_v6 = vsel %vm1234_vm6, %v4280_v23, -inf }
0x14d1   :  { %v4287_v48 = vsel %vm1234_vm6, %v4279_v28, -inf }
0x14d2   :  { %4291 = vmax.xlane.f32.xlu0 %v4290_v6 }
0x14d6   :  { %4288 = vmax.xlane.f32.xlu0 %v4287_v48 }
0x14dd   :  { %4446 = vrot.lane.b32.xlu1 %v8340_v49, %s7019_s7 }
0x14ec   :  { %4448 = vrot.lane.b32.xlu0 %v8337_v50, %s7019_s7 }
0x1555   :  { %v4286_v30 = vpop.xlane.xlu1 %4285 }
0x1556   :  { %v4294_v42 = vsub.f32 %v4278_v17, %v4286_v30 }
0x1557   :  { %v4283_v22 = vpop.xlane.xlu0 %4282 }
0x1558   :  { %v4299_v2 = vmul.f32 1.442695, %v4294_v42  ;;  %v4293_v61 = vsub.f32 %v4277_v20, %v4283_v22 }
0x1559   :  { %v4447_v4 = vpop.permute.xlu1 %4446 }
0x155a   :  { %6740 = vpow2.f32 %v4299_v2  ;;  %v4297_v43 = vmul.f32 1.442695, %v4293_v61 }
0x155b   :  { %v4292_v63 = vpop.xlane.xlu0 %4291 }
0x155c   :  { %6742 = vpow2.f32 %v4297_v43  ;;  %v4296_v3 = vsub.f32 %v4280_v23, %v4292_v63 }
0x155e   :  { %v4303_v38 = vmul.f32 1.442695, %v4296_v3 }
0x155f   :  { %v4289_v11 = vpop.xlane.xlu0 %4288 }
0x1560   :  { %v4295_v16 = vsub.f32 %v4279_v28, %v4289_v11  ;;  %6744 = vpow2.f32 %v4303_v38 }
0x1562   :  { %v4301_v9 = vmul.f32 1.442695, %v4295_v16 }
0x1563   :  { %v4449_v35 = vpop.permute.xlu0 %4448 }
0x1564   :  { %6462 = vmatprep.subr.msk.mxu0 %vm166_vm1, %v4449_v35  ;;  %6746 = vpow2.f32 %v4301_v9 }
0x1567   :  { %v6741_v37 = vpop.eup %6740 }
0x1568   :  { %v4308_v18 = vsel %vm1234_vm6, %v6741_v37, 0.0 }
0x1569   :  { %v6743_v8 = vpop.eup %6742  ;;  %4309 = vadd.xlane.f32.xlu0 %v4308_v18 }
0x156a   :  { %v4305_v19 = vsel %vm1234_vm6, %v6743_v8, 0.0 }
0x156b   :  { %4306 = vadd.xlane.f32.xlu1 %v4305_v19 }
0x156d   :  { %v6745_v41 = vpop.eup %6744 }
0x156e   :  { %v4314_v53 = vsel %vm1234_vm6, %v6745_v41, 0.0 }
0x1571   :  { %v6747_v45 = vpop.eup %6746 }
0x1572   :  { %v4311_v17 = vsel %vm1234_vm6, %v6747_v45, 0.0 }
0x157c   :  { %4442 = vrot.lane.b32.xlu1 %v8366_v5, %s7019_s7 }
0x157f   :  { %4444 = vrot.lane.b32.xlu0 %v8345_v54, %s7019_s7 }
0x159e   :  { %4315 = vadd.xlane.f32.xlu0 %v4314_v53 }
0x15a0   :  { %4312 = vadd.xlane.f32.xlu1 %v4311_v17 }
0x15b1   :  { %4436 = vrot.lane.b32.xlu1 %v8345_v54, %s7017_s14 }
0x15b4   :  { %4434 = vrot.lane.b32.xlu0 %v8366_v5, %s7017_s14 }
0x15b5   :  { %4440 = vrot.lane.b32.xlu1 %v8337_v50, %s7017_s14 }
0x15b8   :  { %4438 = vrot.lane.b32.xlu0 %v8340_v49, %s7017_s14 }
0x15f2   :  { %v4310_v60 = vpop.xlane.xlu0 %4309 }
0x15f3   :  { %6748 = vrcp.f32 %v4310_v60 }
0x15f4   :  { %v4307_v20 = vpop.xlane.xlu1 %4306 }
0x15f5   :  { %6750 = vrcp.f32 %v4307_v20 }
0x15f6   :  { %v4445_v12 = vpop.permute.xlu0 %4444 }
0x15f8   :  { %v4443_v40 = vpop.permute.xlu1 %4442 }
0x1600   :  { %v6749_v13 = vpop.eup %6748 }
0x1601   :  { %v4322_v23 = vmul.f32 %v6749_v13, %v6741_v37 }
0x1602   :  { %v6751_v58 = vpop.eup %6750 }
0x1603   :  { %v4321_v27 = vmul.f32 %v6751_v58, %v6743_v8 }
0x1605   :  { %6456 = vmatprep.mubr.msk.f32.mxu0 %vm1234_vm6, %v4321_v27 }
0x1606   :  { %6457 = vmatmul.mubr.msk.f32.vlgmr.msra.gmra.mxu0 %vm1234_vm6, %v4322_v23 }
0x1607   :  { %6463 = vmatpush3.xpose.msk.msra.mxu0 %vm166_vm1, %v4449_v35 }
0x1608   :  { %6464 = vmatprep.subr.msk.mxu0 %vm166_vm1, %v4447_v4 }
0x160b   :  { %6465 = vmatpush3.xpose.msk.msra.mxu0 %vm166_vm1, %v4447_v4 }
0x160c   :  { %6466 = vmatprep.subr.msk.mxu0 %vm166_vm1, %v4445_v12 }
0x160f   :  { %6467 = vmatpush3.xpose.msk.msra.mxu0 %vm166_vm1, %v4445_v12 }
0x1610   :  { %6468 = vmatprep.subr.msk.mxu0 %vm166_vm1, %v4443_v40 }
0x1613   :  { %6469 = vmatpush3.xpose.msk.msra.mxu0 %vm166_vm1, %v4443_v40 }
0x1627   :  { %v4316_v28 = vpop.xlane.xlu0 %4315 }
0x1628   :  { %6752 = vrcp.f32 %v4316_v28 }
0x1629   :  { %v4313_v6 = vpop.xlane.xlu1 %4312 }
0x162a   :  { %6754 = vrcp.f32 %v4313_v6 }
0x162b   :  { %v4435_v22 = vpop.permute.xlu0 %4434 }
0x162d   :  { %v4437_v61 = vpop.permute.xlu1 %4436 }
0x162f   :  { %v4439_v43 = vpop.permute.xlu0 %4438 }
0x1631   :  { %v4441_v63 = vpop.permute.xlu1 %4440 }
0x1635   :  { %v6753_v48 = vpop.eup %6752 }
0x1636   :  { %v4324_v2 = vmul.f32 %v6753_v48, %v6745_v41 }
0x1637   :  { %v6755_v30 = vpop.eup %6754 }
0x1638   :  { %v4323_v42 = vmul.f32 %v6755_v30, %v6747_v45 }
0x163a   :  { %6459 = vmatprep.mubr.msk.f32.mxu0 %vm1234_vm6, %v4323_v42 }
0x163b   :  { %6460 = vmatmul.mubr.msk.f32.gmra.mxu0 %vm1234_vm6, %v4324_v2 }
0x163c   :  { %6470 = vmatprep.mubr.msk.f32.mxu0 %vm166_vm1, %v4435_v22 }
0x163f   :  { %6471 = vmatmul.mubr.msk.f32.vlgmr.msra.gmra.mxu0 %vm166_vm1, %v4437_v61 }
0x1640   :  { %6473 = vmatprep.mubr.msk.f32.mxu0 %vm166_vm1, %v4439_v43 }
0x1643   :  { %6474 = vmatmul.mubr.msk.f32.gmra.mxu0 %vm166_vm1, %v4441_v63 }
0x16c6   :  { %v8467_v11 = vpop.f32.mrf.mxu0 }
0x16c8   :  { %v8469_v35 = vpop.f32.mrf.mxu0 }
0x16fb   :  { %v8471_v37 = vpop.f32.mrf.mxu0 }
0x16fd   :  { %v8473_v18 = vpop.f32.mrf.mxu0 }
0x16ff   :  { %v6472_v8 = vpop.f32.mrf.mxu0 }
0x1700   :  { %v4552_v19 = vmul.f32 0.25, %v6472_v8 }
0x1701   :  { %v4532_v3 = vpop.f32.mrf.mxu0 }
0x1702   :  { %v4556_v16 = vadd.f32 %v4552_v19, %v7712_v29  ;;  %v4551_v38 = vmul.f32 0.25, %v4532_v3  ;;  %v6825_v19 = vld [vmem:[%s8846_s8 + $0x38] sm:$0xff]  ;;  %v6826_v3 = vld [vmem:[%s8846_s8 + $0x28] sm:$0xff] }
0x1703   :  { %v6475_v9 = vpop.f32.mrf.mxu0 }
0x1704   :  { %v4555_v41 = vadd.f32 %v4551_v38, %v7715_v26  ;;  %v4562_v45 = vsel %vm1234_vm6, %v4556_v16, -inf  ;;  %v4554_v17 = vmul.f32 0.25, %v6475_v9  ;;  %v6828_v38 = vld [vmem:[%s8846_s8 + $0x30] sm:$0xff] }
0x1705   :  { %4563 = vmax.xlane.f32.xlu1 %v4562_v45  ;;  %v4542_v53 = vpop.f32.mrf.mxu0 }
0x1706   :  { %v4553_v4 = vmul.f32 0.25, %v4542_v53  ;;  %v4559_v60 = vsel %vm1234_vm6, %v4555_v41, -inf  ;;  %v4558_v13 = vadd.f32 %v4554_v17, %v7719_v39 }
0x1707   :  { %4560 = vmax.xlane.f32.xlu0 %v4559_v60 }
0x1708   :  { %v4557_v20 = vadd.f32 %v4553_v4, %v7726_v1  ;;  %v4568_v29 = vsel %vm1234_vm6, %v4558_v13, -inf }
0x170a   :  { %v4565_v58 = vsel %vm1234_vm6, %v4557_v20, -inf }
0x170b   :  { %4566 = vmax.xlane.f32.xlu0 %v4565_v58 }
0x170f   :  { %4569 = vmax.xlane.f32.xlu0 %v4568_v29 }
0x1716   :  { %4609 = vrot.lane.b32.xlu1 %v8337_v50, %s7020_s18 }
0x178e   :  { %v4564_v26 = vpop.xlane.xlu1 %4563 }
0x178f   :  { %v4572_v27 = vsub.f32 %v4556_v16, %v4564_v26 }
0x1790   :  { %v4561_v23 = vpop.xlane.xlu0 %4560 }
0x1791   :  { %v4577_v12 = vmul.f32 1.442695, %v4572_v27  ;;  %v4571_v40 = vsub.f32 %v4555_v41, %v4561_v23 }
0x1792   :  { %v4610_v28 = vpop.permute.xlu1 %4609 }
0x1793   :  { %6756 = vpow2.f32 %v4577_v12  ;;  %v4575_v6 = vmul.f32 1.442695, %v4571_v40  ;;  %6476 = vmatprep.subr.mxu1 %v4610_v28 }
0x1794   :  { %6477 = vmatpush3.msra.mxu1 %v4610_v28  ;;  %v4567_v39 = vpop.xlane.xlu0 %4566 }
0x1795   :  { %6758 = vpow2.f32 %v4575_v6  ;;  %v4573_v63 = vsub.f32 %v4557_v20, %v4567_v39 }
0x1797   :  { %v4579_v8 = vmul.f32 1.442695, %v4573_v63 }
0x1798   :  { %v4570_v1 = vpop.xlane.xlu0 %4569 }
0x1799   :  { %v4574_v48 = vsub.f32 %v4558_v13, %v4570_v1 }
0x179b   :  { %v4581_v30 = vmul.f32 1.442695, %v4574_v48 }
0x179d   :  { %6760 = vpow2.f32 %v4581_v30 }
0x179e   :  { %6762 = vpow2.f32 %v4579_v8 }
0x17a0   :  { %v6757_v42 = vpop.eup %6756 }
0x17a1   :  { %v4586_v22 = vsel %vm1234_vm6, %v6757_v42, 0.0 }
0x17a2   :  { %v6759_v50 = vpop.eup %6758  ;;  %4587 = vadd.xlane.f32.xlu0 %v4586_v22 }
0x17a3   :  { %v4583_v2 = vsel %vm1234_vm6, %v6759_v50, 0.0 }
0x17a4   :  { %4584 = vadd.xlane.f32.xlu1 %v4583_v2 }
0x17aa   :  { %v8487_v61 = vpop.eup %6760 }
0x17ab   :  { %v4592_v43 = vsel %vm1234_vm6, %v8487_v61, 0.0 }
0x17ac   :  { %4593 = vadd.xlane.f32.xlu0 %v4592_v43 }
0x17b5   :  { %4605 = vrot.lane.b32.xlu1 %v8345_v54, %s7020_s18  ;;  %v6827_v54 = vld [vmem:[%s8846_s8 + $0x20] sm:$0xff] }
0x17c2   :  { %4607 = vrot.lane.b32.xlu0 %v8340_v49, %s7020_s18  ;;  %v6763_v49 = vpop.eup %6762 }
0x17c3   :  { %v4589_v16 = vsel %vm1234_vm6, %v6763_v49, 0.0 }
0x17c6   :  { %4746 = vrot.lane.b32.xlu0 %v6825_v19, %s7016_s30 }
0x17ca   :  { %4742 = vrot.lane.b32.xlu0 %v6826_v3, %s7016_s30 }
0x17ce   :  { %4740 = vrot.lane.b32.xlu0 %v6827_v54, %s7016_s30 }
0x17d2   :  { %4148 = vrot.lane.b32.xlu0 %v8421_v31, %s7021_s21 }
0x17d9   :  { %4590 = vadd.xlane.f32.xlu1 %v4589_v16 }
0x17ea   :  { %4603 = vrot.lane.b32.xlu1 %v8366_v5, %s7020_s18 }
0x17ee   :  { %4744 = vrot.lane.b32.xlu1 %v6828_v38, %s7016_s30 }
0x17f2   :  { %4144 = vrot.lane.b32.xlu1 %v8417_v46, %s7021_s21 }
0x17f6   :  { %4146 = vrot.lane.b32.xlu1 %v8415_v33, %s7021_s21 }
0x17fa   :  { %4150 = vrot.lane.b32.xlu1 %v8419_v55, %s7021_s21 }
0x182b   :  { %v4588_v9 = vpop.xlane.xlu0 %4587 }
0x182d   :  { %v4585_v31 = vpop.xlane.xlu1 %4584 }
0x182e   :  { %6764 = vrcp.f32 %v4585_v31 }
0x182f   :  { %6766 = vrcp.f32 %v4588_v9 }
0x1831   :  { %v4606_v53 = vpop.permute.xlu1 %4605 }
0x1835   :  { %v4594_v41 = vpop.xlane.xlu0 %4593 }
0x1836   :  { %6768 = vrcp.f32 %v4594_v41 }
0x1839   :  { %v4608_v5 = vpop.permute.xlu0 %4607 }
0x183a   :  { %6478 = vmatprep.subr.mxu1 %v4608_v5 }
0x183b   :  { %v6765_v45 = vpop.eup %6764  ;;  %6479 = vmatpush3.msra.mxu1 %v4608_v5 }
0x183c   :  { %6480 = vmatprep.subr.mxu1 %v4606_v53  ;;  %v4599_v17 = vmul.f32 %v6765_v45, %v6759_v50  ;;  %v6767_v55 = vpop.eup %6766 }
0x183d   :  { %6481 = vmatpush3.msra.mxu1 %v4606_v53  ;;  %v4747_v33 = vpop.permute.xlu0 %4746  ;;  %v4600_v60 = vmul.f32 %v6767_v55, %v6757_v42 }
0x183e   :  { %6484 = vmatprep.mubr.msk.f32.mxu1 %vm1234_vm6, %v4599_v17 }
0x1841   :  { %v4743_v20 = vpop.permute.xlu0 %4742 }
0x1843   :  { %v6769_v26 = vpop.eup %6768 }
0x1844   :  { %v4602_v40 = vmul.f32 %v6769_v26, %v8487_v61  ;;  %v8543_v61 = vld [vmem:[#allocation13 + $0x8] sm:$0xff] }
0x1845   :  { %v4741_v58 = vpop.permute.xlu0 %4740 }
0x1849   :  { %v4149_v6 = vpop.permute.xlu0 %4148 }
0x184a   :  { %v4158_v1 = vsel %vm166_vm1, %v8413_v52, %v4149_v6 }
0x1862   :  { %v4591_v46 = vpop.xlane.xlu1 %4590 }
0x1863   :  { %6770 = vrcp.f32 %v4591_v46 }
0x1866   :  { %v4604_v4 = vpop.permute.xlu1 %4603 }
0x1867   :  { %6482 = vmatprep.subr.mxu1 %v4604_v4 }
0x1868   :  { %6483 = vmatpush3.msra.mxu1 %v4604_v4 }
0x1869   :  { %6485 = vmatmul.mubr.msk.f32.vlgmr.msra.gmra.mxu1 %vm1234_vm6, %v4600_v60  ;;  %6490 = vmatprep.subr.mxu1 %v4747_v33 }
0x186a   :  { %v4745_v13 = vpop.permute.xlu1 %4744  ;;  %6491 = vmatpush3.msra.mxu1 %v4747_v33 }
0x186b   :  { %6492 = vmatprep.subr.mxu1 %v4745_v13 }
0x186c   :  { %6493 = vmatpush3.msra.mxu1 %v4745_v13 }
0x186d   :  { %6494 = vmatprep.subr.mxu1 %v4743_v20 }
0x186e   :  { %v4145_v29 = vpop.permute.xlu1 %4144  ;;  %6495 = vmatpush3.msra.mxu1 %v4743_v20 }
0x186f   :  { %6496 = vmatprep.subr.mxu1 %v4741_v58  ;;  %v4156_v28 = vsel %vm166_vm1, %v8409_v44, %v4145_v29 }
0x1870   :  { %v6771_v27 = vpop.eup %6770  ;;  %6497 = vmatpush3.msra.mxu1 %v4741_v58 }
0x1871   :  { %v4601_v23 = vmul.f32 %v6771_v27, %v6763_v49 }
0x1872   :  { %v4147_v12 = vpop.permute.xlu1 %4146 }
0x1873   :  { %6487 = vmatprep.mubr.msk.f32.mxu1 %vm1234_vm6, %v4601_v23  ;;  %v4157_v39 = vsel %vm166_vm1, %v8407_v57, %v4147_v12 }
0x1874   :  { %6488 = vmatmul.mubr.msk.f32.gmra.mxu1 %vm1234_vm6, %v4602_v40 }
0x1875   :  { %6498 = vmatprep.mubr.msk.f32.mxu1 %vm1234_vm6, %v4156_v28 }
0x1876   :  { %v4151_v48 = vpop.permute.xlu1 %4150 }
0x1877   :  { %v4159_v30 = vsel %vm166_vm1, %v8411_v56, %v4151_v48  ;;  %v4735_v56 = vrot.slane %v8543_v61, %v2920_v21 }
0x1878   :  { %6499 = vmatmul.mubr.msk.f32.vlgmr.msra.gmra.mxu1 %vm1234_vm6, %v4157_v39 }
0x1879   :  { %6501 = vmatprep.mubr.msk.f32.mxu1 %vm1234_vm6, %v4158_v1 }
0x187c   :  { %6502 = vmatmul.mubr.msk.f32.gmra.mxu1 %vm1234_vm6, %v4159_v30 }
0x1929   :  { %v6486_v44 = vpop.f32.mrf.mxu1 }
0x192a   :  { %4718 = vrot.lane.b32.xlu1 %v6486_v44, %s7021_s21 }
0x192b   :  { %v4693_v42 = vpop.f32.mrf.mxu1 }
0x192c   :  { %4716 = vrot.lane.b32.xlu0 %v4693_v42, %s7021_s21 }
0x1934   :  { %v6489_v57 = vpop.f32.mrf.mxu1 }
0x1935   :  { %4722 = vrot.lane.b32.xlu1 %v6489_v57, %s7021_s21 }
0x1936   :  { %v4703_v52 = vpop.f32.mrf.mxu1 }
0x1937   :  { %4720 = vrot.lane.b32.xlu0 %v4703_v52, %s7021_s21 }
0x1938   :  { %v6500_v22 = vpop.f32.mrf.mxu1 }
0x1939   :  { %v4848_v8 = vadd.f32 %v6500_v22, %v4735_v56 }
0x193a   :  { %v4842_v50 = vpop.f32.mrf.mxu1 }
0x193b   :  { %v4843_v43 = vadd.f32 %v4842_v50, %v4735_v56  ;;  %v8552_v54 = vadd.f32 %v4848_v8, %v8022_v47  ;;  %v5739_v8 = vld [vmem:[%s8847_s9 + $0x28] sm:$0xff] }
0x193c   :  { %v6503_v2 = vpop.f32.mrf.mxu1 }
0x193d   :  { %v8549_v19 = vadd.f32 %v4843_v43, %v8026_v59  ;;  %v4858_v49 = vadd.f32 %v6503_v2, %v4735_v56  ;;  %v4892_v21 = vsel %vm1234_vm6, %v8552_v54, 0.0  ;;  %v5741_v43 = vld [vmem:[%s8847_s9 + $0x38] sm:$0xff] }
0x193e   :  { %v4852_v63 = vpop.f32.mrf.mxu1  ;;  %6510 = vmatprep.subr.mxu0 %v5741_v43 }
0x193f   :  { %v4853_v3 = vadd.f32 %v4852_v63, %v4735_v56  ;;  %v4889_v38 = vsel %vm1234_vm6, %v8549_v19, 0.0  ;;  %v8562_v31 = vadd.f32 %v4858_v49, %v8034_v14  ;;  %v5740_v63 = vld [vmem:[%s8847_s9 + $0x30] sm:$0xff]  ;;  %6511 = vmatpush3.msra.mxu0 %v5741_v43 }
0x1940   :  { %6512 = vmatprep.subr.mxu0 %v5740_v63 }
0x1941   :  { %v8555_v16 = vadd.f32 %v4853_v3, %v8038_v62  ;;  %v4898_v47 = vsel %vm1234_vm6, %v8562_v31, 0.0  ;;  %6513 = vmatpush3.msra.mxu0 %v5740_v63  ;;  %v5738_v3 = vld [vmem:[%s8847_s9 + $0x20] sm:$0xff] }
0x1942   :  { %6514 = vmatprep.subr.mxu0 %v5739_v8 }
0x1943   :  { %v4895_v59 = vsel %vm1234_vm6, %v8555_v16, 0.0  ;;  %6515 = vmatpush3.msra.mxu0 %v5739_v8 }
0x1944   :  { %6516 = vmatprep.subr.mxu0 %v5738_v3 }
0x1945   :  { %6517 = vmatpush3.msra.mxu0 %v5738_v3 }
0x1956   :  { %4890 = vadd.xlane.f32.xlu0 %v4889_v38 }
0x1959   :  { %4893 = vadd.xlane.f32.xlu1 %v4892_v21 }
0x195a   :  { %4896 = vadd.xlane.f32.xlu0 %v4895_v59 }
0x195e   :  { %4899 = vadd.xlane.f32.xlu0 %v4898_v47 }
0x199c   :  { %v4719_v62 = vpop.permute.xlu1 %4718 }
0x199d   :  { %v4729_v5 = vsel %vm166_vm1, %v8467_v11, %v4719_v62 }
0x199e   :  { %v4717_v9 = vpop.permute.xlu0 %4716 }
0x199f   :  { %v4728_v41 = vsel %vm166_vm1, %v8469_v35, %v4717_v9 }
0x19a0   :  { %6504 = vmatprep.mubr.msk.f32.mxu1 %vm1234_vm6, %v4728_v41 }
0x19a1   :  { %6505 = vmatmul.mubr.msk.f32.gmra.mxu1 %vm1234_vm6, %v4729_v5 }
0x19a7   :  { %v4723_v14 = vpop.permute.xlu1 %4722 }
0x19a8   :  { %v4731_v17 = vsel %vm166_vm1, %v8471_v37, %v4723_v14 }
0x19a9   :  { %v4721_v45 = vpop.permute.xlu0 %4720 }
0x19aa   :  { %v4730_v53 = vsel %vm166_vm1, %v8473_v18, %v4721_v45 }
0x19ab   :  { %6507 = vmatprep.mubr.msk.f32.mxu1 %vm1234_vm6, %v4730_v53 }
0x19ac   :  { %6508 = vmatmul.mubr.msk.f32.gmra.mxu1 %vm1234_vm6, %v4731_v17 }
0x19df   :  { %v4891_v35 = vpop.xlane.xlu0 %4890 }
0x19e0   :  { %v4913_v26 = vmul.f32 0.03125, %v4891_v35 }
0x19e2   :  { %v4894_v20 = vpop.xlane.xlu1 %4893 }
0x19e3   :  { %v4897_v55 = vpop.xlane.xlu0 %4896  ;;  %v4914_v58 = vmul.f32 0.03125, %v4894_v20 }
0x19e4   :  { %v4915_v28 = vmul.f32 0.03125, %v4897_v55 }
0x19e6   :  { %v8610_v42 = vsub.f32 %v8555_v16, %v4915_v28 }
0x19e7   :  { %v4900_v29 = vpop.xlane.xlu0 %4899 }
0x19e8   :  { %v4916_v23 = vmul.f32 0.03125, %v4900_v29  ;;  %v4931_v50 = vmul.f32 %v8610_v42, %v8610_v42 }
0x19ea   :  { %v8600_v1 = vsub.f32 %v8562_v31, %v4916_v23 }
0x19ec   :  { %v4932_v52 = vmul.f32 %v8600_v1, %v8600_v1 }
0x19ee   :  { %v4946_v2 = vsel %vm1234_vm6, %v4932_v52, 0.0 }
0x1a61   :  { %v6506_v33 = vpop.f32.mrf.mxu1 }
0x1a62   :  { %v4868_v46 = vadd.f32 %v6506_v33, %v4735_v56 }
0x1a63   :  { %v4862_v11 = vpop.f32.mrf.mxu1 }
0x1a64   :  { %v8581_v4 = vadd.f32 %v4868_v46, %v8179_v34  ;;  %v4863_v60 = vadd.f32 %v4862_v11, %v4735_v56  ;;  %v8591_v34 = vsub.f32 %v8552_v54, %v4914_v58 }
0x1a66   :  { %v8584_v13 = vadd.f32 %v4863_v60, %v8135_v25  ;;  %v4904_v37 = vsel %vm1234_vm6, %v8581_v4, 0.0  ;;  %v8594_v25 = vsub.f32 %v8549_v19, %v4913_v26  ;;  %v4930_v44 = vmul.f32 %v8591_v34, %v8591_v34 }
0x1a67   :  { %4905 = vadd.xlane.f32.xlu0 %v4904_v37 }
0x1a68   :  { %v4901_v18 = vsel %vm1234_vm6, %v8584_v13, 0.0  ;;  %v4929_v57 = vmul.f32 %v8594_v25, %v8594_v25 }
0x1a69   :  { %4902 = vadd.xlane.f32.xlu1 %v4901_v18 }
0x1a6a   :  { %v4937_v22 = vsel %vm1234_vm6, %v4929_v57, 0.0 }
0x1a6c   :  { %v6509_v27 = vpop.f32.mrf.mxu1 }
0x1a6d   :  { %v4878_v12 = vadd.f32 %v6509_v27, %v4735_v56 }
0x1a6e   :  { %v4872_v40 = vpop.f32.mrf.mxu1 }
0x1a6f   :  { %v8597_v6 = vadd.f32 %v4878_v12, %v8188_v24  ;;  %v4873_v39 = vadd.f32 %v4872_v40, %v4735_v56  ;;  %v4943_v56 = vsel %vm1234_vm6, %v4931_v50, 0.0  ;;  %v8667_v50 = vld [vmem:[#allocation13 + $0x10] sm:$0xf] }
0x1a71   :  { %v8603_v48 = vadd.f32 %v4873_v39, %v8183_v15  ;;  %v4910_v30 = vsel %vm1234_vm6, %v8597_v6, 0.0  ;;  %v4940_v15 = vsel %vm1234_vm6, %v4930_v44, 0.0 }
0x1a72   :  { %4911 = vadd.xlane.f32.xlu0 %v4910_v30 }
0x1a73   :  { %v4907_v24 = vsel %vm1234_vm6, %v8603_v48, 0.0 }
0x1a74   :  { %4908 = vadd.xlane.f32.xlu1 %v4907_v24  ;;  %v8663_v24 = vrot.slane %v8543_v61, %v2932_v36 }
0x1a76   :  { %4941 = vadd.xlane.f32.xlu0 %v4940_v15 }
0x1a78   :  { %4938 = vadd.xlane.f32.xlu1 %v4937_v22 }
0x1a7a   :  { %4947 = vadd.xlane.f32.xlu0 %v4946_v2  ;;  %v8671_v2 = vrot.slane %v8667_v50, %v7366_v7 }
0x1a7c   :  { %4944 = vadd.xlane.f32.xlu1 %v4943_v56 }
0x1af0   :  { %v4906_v49 = vpop.xlane.xlu0 %4905 }
0x1af1   :  { %v4918_v38 = vmul.f32 0.03125, %v4906_v49  ;;  %v5757_v49 = vld [vmem:[%s8849_s11 + $0x68] sm:$0xff] }
0x1af2   :  { %v4903_v21 = vpop.xlane.xlu1 %4902 }
0x1af3   :  { %v8637_v59 = vsub.f32 %v8581_v4, %v4918_v38  ;;  %v4917_v47 = vmul.f32 0.03125, %v4903_v21  ;;  %v5756_v38 = vld [vmem:[%s8849_s11 + $0x60] sm:$0xff]  ;;  %v5755_v21 = vld [vmem:[%s8849_s11 + $0x58] sm:$0xff] }
0x1af5   :  { %v8640_v62 = vsub.f32 %v8584_v13, %v4917_v47  ;;  %v4934_v9 = vmul.f32 %v8637_v59, %v8637_v59  ;;  %v5754_v47 = vld [vmem:[%s8849_s11 + $0x50] sm:$0xff] }
0x1af7   :  { %v4952_v41 = vsel %vm1234_vm6, %v4934_v9, 0.0  ;;  %v4933_v5 = vmul.f32 %v8640_v62, %v8640_v62  ;;  %v5753_v9 = vld [vmem:[%s8849_s11 + $0x48] sm:$0xff] }
0x1af8   :  { %4953 = vadd.xlane.f32.xlu0 %v4952_v41  ;;  %v5752_v41 = vld [vmem:[%s8849_s11 + $0x40] sm:$0xff] }
0x1af9   :  { %v4949_v14 = vsel %vm1234_vm6, %v4933_v5, 0.0 }
0x1afa   :  { %4950 = vadd.xlane.f32.xlu1 %v4949_v14 }
0x1afb   :  { %v4912_v45 = vpop.xlane.xlu0 %4911 }
0x1afc   :  { %v4920_v53 = vmul.f32 0.03125, %v4912_v45 }
0x1afd   :  { %v4909_v17 = vpop.xlane.xlu1 %4908 }
0x1afe   :  { %v8649_v35 = vsub.f32 %v8597_v6, %v4920_v53  ;;  %v4919_v33 = vmul.f32 0.03125, %v4909_v17 }
0x1aff   :  { %v4942_v46 = vpop.xlane.xlu0 %4941 }
0x1b00   :  { %v8652_v11 = vsub.f32 %v8603_v48, %v4919_v33  ;;  %v4962_v55 = vmul.f32 0.03125, %v4942_v46  ;;  %v4936_v60 = vmul.f32 %v8649_v35, %v8649_v35 }
0x1b01   :  { %v4939_v20 = vpop.xlane.xlu1 %4938 }
0x1b02   :  { %v4970_v37 = vadd.f32 1e-06, %v4962_v55  ;;  %v4961_v18 = vmul.f32 0.03125, %v4939_v20  ;;  %v4958_v58 = vsel %vm1234_vm6, %v4936_v60, 0.0  ;;  %v4935_v29 = vmul.f32 %v8652_v11, %v8652_v11 }
0x1b03   :  { %4959 = vadd.xlane.f32.xlu0 %v4958_v58  ;;  %v4948_v26 = vpop.xlane.xlu0 %4947 }
0x1b04   :  { %6772 = vrsqrt.f32 %v4970_v37  ;;  %v4969_v27 = vadd.f32 1e-06, %v4961_v18  ;;  %v4964_v23 = vmul.f32 0.03125, %v4948_v26  ;;  %v4955_v12 = vsel %vm1234_vm6, %v4935_v29, 0.0 }
0x1b05   :  { %4956 = vadd.xlane.f32.xlu1 %v4955_v12  ;;  %v4945_v40 = vpop.xlane.xlu1 %4944 }
0x1b06   :  { %6774 = vrsqrt.f32 %v4969_v27  ;;  %v4972_v28 = vadd.f32 1e-06, %v4964_v23  ;;  %v4963_v39 = vmul.f32 0.03125, %v4945_v40 }
0x1b08   :  { %6776 = vrsqrt.f32 %v4972_v28  ;;  %v4971_v30 = vadd.f32 1e-06, %v4963_v39 }
0x1b0a   :  { %6778 = vrsqrt.f32 %v4971_v30 }
0x1b11   :  { %v6773_v44 = vpop.eup %6772 }
0x1b12   :  { %v4986_v57 = vmul.f32 %v6773_v44, %v8591_v34 }
0x1b13   :  { %v6775_v15 = vpop.eup %6774 }
0x1b14   :  { %v4985_v52 = vmul.f32 %v6775_v15, %v8594_v25  ;;  %v4998_v56 = vmul.f32 %v8663_v24, %v4986_v57 }
0x1b15   :  { %v6777_v22 = vpop.eup %6776 }
0x1b16   :  { %v4997_v43 = vmul.f32 %v8663_v24, %v4985_v52  ;;  %v4988_v0 = vmul.f32 %v6777_v22, %v8600_v1  ;;  %v5010_v25 = vadd.f32 %v8671_v2, %v4998_v56  ;;  %v5759_v1 = vld [vmem:[%s8849_s11 + $0x78] sm:$0xff]  ;;  %v8730_v22 = vld [vmem:[%s8848_s10 + $0x1] ss:$0 sm:$0xff]  ;;  %s7022_s10 = smov [#allocation14]  }
0x1b17   :  { %v6779_v36 = vpop.eup %6778  ;;  %6530 = vmatprep.subr.mxu1 %v5759_v1  ;;  %s5531_s12 = sshll.u32 %s7022_s10, 4  ;;  %s5532_s12 = int_to_ptr.vmem [resolvable:$true] %s5531_s12 }
0x1b18   :  { %v5009_v61 = vadd.f32 %v8671_v2, %v4997_v43  ;;  %v4987_v34 = vmul.f32 %v6779_v36, %v8610_v42  ;;  %v5000_v63 = vmul.f32 %v8663_v24, %v4988_v0  ;;  %6531 = vmatpush3.msra.mxu1 %v5759_v1  ;;  %v5758_v42 = vld [vmem:[%s8849_s11 + $0x70] sm:$0xff]  ;;  %s6971_s8 = scalar_lea.vmem %s5532_s12, 1024  ;;  %p6976_p8 = scmp.lt.s32.totalorder %s5532_s12, %s5532_s12 }
0x1b19   :  { %6532 = vmatprep.subr.mxu1 %v5758_v42  ;;  %p6972_p7 = scmp.ne.s32.totalorder %s5532_s12, %s6971_s8  ;;  %p6977_p9 = scmp.lt.s32.totalorder %s6971_s8, %s6971_s8 }
0x1b1a   :  { %6518 = vmatprep.mubr.msk.f32.mxu0 %vm1234_vm6, %v5009_v61  ;;  %v4999_v7 = vmul.f32 %v8663_v24, %v4987_v34  ;;  %v5012_v3 = vadd.f32 %v8671_v2, %v5000_v63  ;;  %6533 = vmatpush3.msra.mxu1 %v5758_v42 }
0x1b1b   :  { %6519 = vmatmul.mubr.msk.f32.vlgmr.msra.gmra.mxu0 %vm1234_vm6, %v5010_v25  ;;  %6534 = vmatprep.subr.mxu1 %v5757_v49  ;;  %p6978_p10 = por %p6977_p9, %p6976_p8 }
0x1b1c   :  { %v5011_v8 = vadd.f32 %v8671_v2, %v4999_v7  ;;  %6535 = vmatpush3.msra.mxu1 %v5757_v49 }
0x1b1d   :  { %6536 = vmatprep.subr.mxu1 %v5756_v38  ;;  %p6979_p11 = pnand %p6978_p10, %p6972_p7 }
0x1b1e   :  { %6521 = vmatprep.mubr.msk.f32.mxu0 %vm1234_vm6, %v5011_v8  ;;  %6537 = vmatpush3.msra.mxu1 %v5756_v38 }
0x1b1f   :  { %6522 = vmatmul.mubr.msk.f32.gmra.mxu0 %vm1234_vm6, %v5012_v3  ;;  %6538 = vmatprep.subr.mxu1 %v5755_v21 }
0x1b20   :  { %6539 = vmatpush3.msra.mxu1 %v5755_v21 }
0x1b21   :  { %6540 = vmatprep.subr.mxu1 %v5754_v47 }
0x1b22   :  { %6541 = vmatpush3.msra.mxu1 %v5754_v47 }
0x1b23   :  { %6542 = vmatprep.subr.mxu1 %v5753_v9 }
0x1b24   :  { %6543 = vmatpush3.msra.mxu1 %v5753_v9 }
0x1b25   :  { %6544 = vmatprep.subr.mxu1 %v5752_v41 }
0x1b26   :  { %6545 = vmatpush3.msra.mxu1 %v5752_v41 }
0x1b81   :  { %v4954_v5 = vpop.xlane.xlu0 %4953 }
0x1b82   :  { %v4966_v14 = vmul.f32 0.03125, %v4954_v5 }
0x1b83   :  { %v4951_v45 = vpop.xlane.xlu1 %4950 }
0x1b84   :  { %v4974_v53 = vadd.f32 1e-06, %v4966_v14  ;;  %v4965_v17 = vmul.f32 0.03125, %v4951_v45 }
0x1b86   :  { %6780 = vrsqrt.f32 %v4974_v53  ;;  %v4973_v33 = vadd.f32 1e-06, %v4965_v17 }
0x1b88   :  { %6782 = vrsqrt.f32 %v4973_v33 }
0x1b8c   :  { %v4960_v46 = vpop.xlane.xlu0 %4959 }
0x1b8d   :  { %v4968_v55 = vmul.f32 0.03125, %v4960_v46 }
0x1b8e   :  { %v4957_v60 = vpop.xlane.xlu1 %4956 }
0x1b8f   :  { %v4976_v20 = vadd.f32 1e-06, %v4968_v55  ;;  %v4967_v37 = vmul.f32 0.03125, %v4957_v60 }
0x1b91   :  { %6784 = vrsqrt.f32 %v4976_v20  ;;  %v4975_v18 = vadd.f32 1e-06, %v4967_v37 }
0x1b93   :  { %v6781_v58 = vpop.eup %6780  ;;  %6786 = vrsqrt.f32 %v4975_v18 }
0x1b94   :  { %v4990_v29 = vmul.f32 %v6781_v58, %v8637_v59 }
0x1b95   :  { %v6783_v26 = vpop.eup %6782 }
0x1b96   :  { %v4989_v27 = vmul.f32 %v6783_v26, %v8640_v62  ;;  %v5002_v23 = vmul.f32 %v8663_v24, %v4990_v29 }
0x1b98   :  { %v5001_v12 = vmul.f32 %v8663_v24, %v4989_v27  ;;  %v5014_v28 = vadd.f32 %v8671_v2, %v5002_v23 }
0x1b9a   :  { %v5013_v40 = vadd.f32 %v8671_v2, %v5001_v12 }
0x1b9c   :  { %6524 = vmatprep.mubr.msk.f32.mxu0 %vm1234_vm6, %v5013_v40 }
0x1b9d   :  { %6525 = vmatmul.mubr.msk.f32.gmra.mxu0 %vm1234_vm6, %v5014_v28 }
0x1b9e   :  { %v6785_v39 = vpop.eup %6784 }
0x1b9f   :  { %v4992_v30 = vmul.f32 %v6785_v39, %v8649_v35 }
0x1ba0   :  { %v6787_v44 = vpop.eup %6786 }
0x1ba1   :  { %v4991_v59 = vmul.f32 %v6787_v44, %v8652_v11  ;;  %v5004_v62 = vmul.f32 %v8663_v24, %v4992_v30 }
0x1ba3   :  { %v5003_v57 = vmul.f32 %v8663_v24, %v4991_v59  ;;  %v5016_v52 = vadd.f32 %v8671_v2, %v5004_v62 }
0x1ba5   :  { %v5015_v15 = vadd.f32 %v8671_v2, %v5003_v57 }
0x1ba7   :  { %6527 = vmatprep.mubr.msk.f32.mxu0 %vm1234_vm6, %v5015_v15 }
0x1ba8   :  { %6528 = vmatmul.mubr.msk.f32.gmra.mxu0 %vm1234_vm6, %v5016_v52 }
0x1bdb   :  { %v6520_v35 = vpop.f32.mrf.mxu0 }
0x1bdc   :  { %v5126_v11 = vadd.f32 %v6520_v35, %v8730_v22 }
0x1bdd   :  { %v5120_v56 = vpop.f32.mrf.mxu0 }
0x1bde   :  { %v5160_v43 = vmul.f32 %v5126_v11, %v5126_v11  ;;  %v5121_v24 = vadd.f32 %v8730_v22, %v5120_v56 }
0x1bdf   :  { %v6523_v0 = vpop.f32.mrf.mxu0 }
0x1be0   :  { %v5168_v36 = vmul.f32 %v5160_v43, %v5126_v11  ;;  %v5159_v61 = vmul.f32 %v5121_v24, %v5121_v24  ;;  %v5136_v2 = vadd.f32 %v6523_v0, %v8730_v22 }
0x1be1   :  { %v5130_v34 = vpop.f32.mrf.mxu0 }
0x1be2   :  { %v5176_v25 = vmul.f32 0.044715, %v5168_v36  ;;  %v5167_v63 = vmul.f32 %v5159_v61, %v5121_v24  ;;  %v5162_v7 = vmul.f32 %v5136_v2, %v5136_v2  ;;  %v5131_v8 = vadd.f32 %v8730_v22, %v5130_v34 }
0x1be4   :  { %v5184_v3 = vadd.f32 %v5176_v25, %v5126_v11  ;;  %v5175_v1 = vmul.f32 0.044715, %v5167_v63  ;;  %v5170_v42 = vmul.f32 %v5162_v7, %v5136_v2  ;;  %v5161_v49 = vmul.f32 %v5131_v8, %v5131_v8 }
0x1be6   :  { %v5192_v38 = vmul.f32 0.7978846, %v5184_v3  ;;  %v5183_v21 = vadd.f32 %v5175_v1, %v5121_v24  ;;  %v5178_v47 = vmul.f32 0.044715, %v5170_v42  ;;  %v5169_v9 = vmul.f32 %v5161_v49, %v5131_v8 }
0x1be8   :  { %6788 = vtanh.f32 %v5192_v38  ;;  %v5191_v41 = vmul.f32 0.7978846, %v5183_v21  ;;  %v5186_v5 = vadd.f32 %v5178_v47, %v5136_v2  ;;  %v5177_v14 = vmul.f32 0.044715, %v5169_v9 }
0x1bea   :  { %6790 = vtanh.f32 %v5191_v41  ;;  %v5194_v45 = vmul.f32 0.7978846, %v5186_v5  ;;  %v5185_v53 = vadd.f32 %v5177_v14, %v5131_v8 }
0x1bec   :  { %6792 = vtanh.f32 %v5194_v45  ;;  %v5193_v17 = vmul.f32 0.7978846, %v5185_v53 }
0x1bee   :  { %6794 = vtanh.f32 %v5193_v17 }
0x1bf5   :  { %v6789_v33 = vpop.eup %6788 }
0x1bf6   :  { %v5208_v46 = vadd.f32 1.0, %v6789_v33 }
0x1bf7   :  { %v6791_v55 = vpop.eup %6790 }
0x1bf8   :  { %v5207_v60 = vadd.f32 1.0, %v6791_v55  ;;  %v5216_v37 = vmul.f32 0.5, %v5208_v46 }
0x1bf9   :  { %v6793_v20 = vpop.eup %6792 }
0x1bfa   :  { %v5215_v18 = vmul.f32 0.5, %v5207_v60  ;;  %v5210_v58 = vadd.f32 1.0, %v6793_v20  ;;  %v5224_v23 = vmul.f32 %v5216_v37, %v5126_v11 }
0x1bfb   :  { %v6795_v29 = vpop.eup %6794 }
0x1bfc   :  { %v5223_v26 = vmul.f32 %v5215_v18, %v5121_v24  ;;  %v5209_v27 = vadd.f32 1.0, %v6795_v29  ;;  %v5218_v12 = vmul.f32 0.5, %v5210_v58  ;;  %v5380_v29 = vrot.slane %v8667_v50, %v7373_v10 }
0x1bfe   :  { %6546 = vmatprep.mubr.msk.f32.mxu1 %vm1378_vm7, %v5223_v26  ;;  %v5217_v40 = vmul.f32 0.5, %v5209_v27  ;;  %v5226_v39 = vmul.f32 %v5218_v12, %v5136_v2 }
0x1bff   :  { %6547 = vmatmul.mubr.msk.f32.vlgmr.msra.gmra.mxu1 %vm1378_vm7, %v5224_v23 }
0x1c00   :  { %v5225_v28 = vmul.f32 %v5217_v40, %v5131_v8 }
0x1c02   :  { %6549 = vmatprep.mubr.msk.f32.mxu1 %vm1378_vm7, %v5225_v28 }
0x1c03   :  { %6550 = vmatmul.mubr.msk.f32.gmra.mxu1 %vm1378_vm7, %v5226_v39 }
0x1c5d   :  { %v6526_v30 = vpop.f32.mrf.mxu0 }
0x1c5e   :  { %v5146_v44 = vadd.f32 %v6526_v30, %v8730_v22 }
0x1c5f   :  { %v5140_v59 = vpop.f32.mrf.mxu0 }
0x1c60   :  { %v5164_v62 = vmul.f32 %v5146_v44, %v5146_v44  ;;  %v5141_v57 = vadd.f32 %v8730_v22, %v5140_v59 }
0x1c62   :  { %v5172_v15 = vmul.f32 %v5164_v62, %v5146_v44  ;;  %v5163_v52 = vmul.f32 %v5141_v57, %v5141_v57 }
0x1c64   :  { %v5180_v35 = vmul.f32 0.044715, %v5172_v15  ;;  %v5171_v11 = vmul.f32 %v5163_v52, %v5141_v57 }
0x1c66   :  { %v5188_v56 = vadd.f32 %v5180_v35, %v5146_v44  ;;  %v5179_v43 = vmul.f32 0.044715, %v5171_v11 }
0x1c68   :  { %v5196_v24 = vmul.f32 0.7978846, %v5188_v56  ;;  %v5187_v0 = vadd.f32 %v5179_v43, %v5141_v57  ;;  %v6529_v36 = vpop.f32.mrf.mxu0 }
0x1c69   :  { %v5156_v61 = vadd.f32 %v6529_v36, %v8730_v22 }
0x1c6a   :  { %6796 = vtanh.f32 %v5196_v24  ;;  %v5195_v2 = vmul.f32 0.7978846, %v5187_v0  ;;  %v5150_v34 = vpop.f32.mrf.mxu0 }
0x1c6b   :  { %v5166_v25 = vmul.f32 %v5156_v61, %v5156_v61  ;;  %v5151_v63 = vadd.f32 %v8730_v22, %v5150_v34 }
0x1c6c   :  { %6798 = vtanh.f32 %v5195_v2 }
0x1c6d   :  { %v5174_v7 = vmul.f32 %v5166_v25, %v5156_v61  ;;  %v5165_v8 = vmul.f32 %v5151_v63, %v5151_v63 }
0x1c6f   :  { %v5182_v3 = vmul.f32 0.044715, %v5174_v7  ;;  %v5173_v1 = vmul.f32 %v5165_v8, %v5151_v63 }
0x1c71   :  { %v5190_v42 = vadd.f32 %v5182_v3, %v5156_v61  ;;  %v5181_v49 = vmul.f32 0.044715, %v5173_v1 }
0x1c73   :  { %v5198_v38 = vmul.f32 0.7978846, %v5190_v42  ;;  %v5189_v21 = vadd.f32 %v5181_v49, %v5151_v63 }
0x1c75   :  { %6800 = vtanh.f32 %v5198_v38  ;;  %v5197_v47 = vmul.f32 0.7978846, %v5189_v21 }
0x1c77   :  { %v6797_v9 = vpop.eup %6796  ;;  %6802 = vtanh.f32 %v5197_v47 }
0x1c78   :  { %v5212_v41 = vadd.f32 1.0, %v6797_v9 }
0x1c79   :  { %v6799_v5 = vpop.eup %6798 }
0x1c7a   :  { %v5211_v14 = vadd.f32 1.0, %v6799_v5  ;;  %v5220_v45 = vmul.f32 0.5, %v5212_v41 }
0x1c7c   :  { %v5219_v53 = vmul.f32 0.5, %v5211_v14  ;;  %v5228_v22 = vmul.f32 %v5220_v45, %v5146_v44 }
0x1c7e   :  { %v5227_v17 = vmul.f32 %v5219_v53, %v5141_v57 }
0x1c80   :  { %6552 = vmatprep.mubr.msk.f32.mxu1 %vm1378_vm7, %v5227_v17 }
0x1c81   :  { %6553 = vmatmul.mubr.msk.f32.gmra.mxu1 %vm1378_vm7, %v5228_v22 }
0x1c82   :  { %v6801_v33 = vpop.eup %6800 }
0x1c83   :  { %v5214_v46 = vadd.f32 1.0, %v6801_v33 }
0x1c84   :  { %v6803_v55 = vpop.eup %6802 }
0x1c85   :  { %v5213_v60 = vadd.f32 1.0, %v6803_v55  ;;  %v5222_v20 = vmul.f32 0.5, %v5214_v46 }
0x1c87   :  { %v5221_v37 = vmul.f32 0.5, %v5213_v60  ;;  %v5230_v58 = vmul.f32 %v5222_v20, %v5156_v61 }
0x1c89   :  { %v5229_v18 = vmul.f32 %v5221_v37, %v5151_v63 }
0x1c8b   :  { %6555 = vmatprep.mubr.msk.f32.mxu1 %vm1378_vm7, %v5229_v18 }
0x1c8c   :  { %6556 = vmatmul.mubr.msk.f32.gmra.mxu1 %vm1378_vm7, %v5230_v58 }
0x1cbf   :  { %v6548_v26 = vpop.f32.mrf.mxu1 }
0x1cc0   :  { %v5370_v27 = vadd.f32 %v6548_v26, %v8552_v54 }
0x1cc1   :  { %v5330_v23 = vpop.f32.mrf.mxu1 }
0x1cc2   :  { %v5382_v12 = vadd.f32 %v5380_v29, %v5370_v27  ;;  %v5369_v40 = vadd.f32 %v5330_v23, %v8549_v19 }
0x1cc3   :  { %v6551_v28 = vpop.f32.mrf.mxu1 }
0x1cc4   :  { %v5381_v39 = vadd.f32 %v5380_v29, %v5369_v40  ;;  %v5372_v30 = vadd.f32 %v6551_v28, %v8562_v31  ;;  %v5392_v44 = vsel %vm1234_vm6, %v5382_v12, 0.0 }
0x1cc5   :  { %5393 = vadd.xlane.f32.xlu0 %v5392_v44  ;;  %v5340_v59 = vpop.f32.mrf.mxu1 }
0x1cc6   :  { %v5384_v62 = vadd.f32 %v5380_v29, %v5372_v30  ;;  %v5371_v57 = vadd.f32 %v5340_v59, %v8555_v16  ;;  %v5389_v10 = vsel %vm1234_vm6, %v5381_v39, 0.0 }
0x1cc7   :  { %5390 = vadd.xlane.f32.xlu1 %v5389_v10 }
0x1cc8   :  { %v5383_v15 = vadd.f32 %v5380_v29, %v5371_v57  ;;  %v5398_v54 = vsel %vm1234_vm6, %v5384_v62, 0.0 }
0x1cc9   :  { %5399 = vadd.xlane.f32.xlu0 %v5398_v54 }
0x1cca   :  { %v5395_v19 = vsel %vm1234_vm6, %v5383_v15, 0.0 }
0x1ccb   :  { %5396 = vadd.xlane.f32.xlu1 %v5395_v19 }
0x1d41   :  { %v6554_v52 = vpop.f32.mrf.mxu1 }
0x1d42   :  { %v5374_v31 = vadd.f32 %v6554_v52, %v8581_v4 }
0x1d43   :  { %v5350_v35 = vpop.f32.mrf.mxu1 }
0x1d44   :  { %v5386_v11 = vadd.f32 %v5380_v29, %v5374_v31  ;;  %v5373_v56 = vadd.f32 %v5350_v35, %v8584_v13 }
0x1d46   :  { %v5385_v43 = vadd.f32 %v5380_v29, %v5373_v56  ;;  %v5404_v16 = vsel %vm1234_vm6, %v5386_v11, 0.0 }
0x1d47   :  { %5405 = vadd.xlane.f32.xlu0 %v5404_v16 }
0x1d48   :  { %v5401_v24 = vsel %vm1234_vm6, %v5385_v43, 0.0 }
0x1d49   :  { %5402 = vadd.xlane.f32.xlu1 %v5401_v24  ;;  %v5496_v24 = vrot.slane %v8667_v50, %v7398_v32 }
0x1d4c   :  { %v6557_v0 = vpop.f32.mrf.mxu1 }
0x1d4d   :  { %v5376_v36 = vadd.f32 %v6557_v0, %v8597_v6 }
0x1d4e   :  { %v5360_v61 = vpop.f32.mrf.mxu1  ;;  %v5394_v2 = vpop.xlane.xlu0 %5393 }
0x1d4f   :  { %v5388_v34 = vadd.f32 %v5380_v29, %v5376_v36  ;;  %v5375_v25 = vadd.f32 %v5360_v61, %v8603_v48  ;;  %v5414_v4 = vmul.f32 0.03125, %v5394_v2 }
0x1d50   :  { %v5391_v63 = vpop.xlane.xlu1 %5390 }
0x1d51   :  { %v5387_v7 = vadd.f32 %v5380_v29, %v5375_v25  ;;  %v8764_v8 = vsub.f32 %v5382_v12, %v5414_v4  ;;  %v5413_v13 = vmul.f32 0.03125, %v5391_v63  ;;  %v5410_v3 = vsel %vm1234_vm6, %v5388_v34, 0.0 }
0x1d52   :  { %5411 = vadd.xlane.f32.xlu0 %v5410_v3  ;;  %v5400_v1 = vpop.xlane.xlu0 %5399 }
0x1d53   :  { %v8767_v42 = vsub.f32 %v5381_v39, %v5413_v13  ;;  %v5416_v49 = vmul.f32 0.03125, %v5400_v1  ;;  %v5407_v6 = vsel %vm1234_vm6, %v5387_v7, 0.0  ;;  %v5430_v38 = vmul.f32 %v8764_v8, %v8764_v8 }
0x1d54   :  { %v5397_v21 = vpop.xlane.xlu1 %5396  ;;  %5408 = vadd.xlane.f32.xlu1 %v5407_v6 }
0x1d55   :  { %v8772_v48 = vsub.f32 %v5384_v62, %v5416_v49  ;;  %v5415_v47 = vmul.f32 0.03125, %v5397_v21  ;;  %v5440_v9 = vsel %vm1234_vm6, %v5430_v38, 0.0  ;;  %v5429_v41 = vmul.f32 %v8767_v42, %v8767_v42 }
0x1d56   :  { %5441 = vadd.xlane.f32.xlu0 %v5440_v9 }
0x1d57   :  { %v8777_v5 = vsub.f32 %v5383_v15, %v5415_v47  ;;  %v5437_v14 = vsel %vm1234_vm6, %v5429_v41, 0.0  ;;  %v5432_v45 = vmul.f32 %v8772_v48, %v8772_v48 }
0x1d58   :  { %5438 = vadd.xlane.f32.xlu1 %v5437_v14 }
0x1d59   :  { %v5446_v53 = vsel %vm1234_vm6, %v5432_v45, 0.0  ;;  %v5431_v17 = vmul.f32 %v8777_v5, %v8777_v5 }
0x1d5a   :  { %5447 = vadd.xlane.f32.xlu0 %v5446_v53 }
0x1d5b   :  { %v5443_v22 = vsel %vm1234_vm6, %v5431_v17, 0.0 }
0x1d5c   :  { %5444 = vadd.xlane.f32.xlu1 %v5443_v22 }
0x1dd0   :  { %v5406_v33 = vpop.xlane.xlu0 %5405 }
0x1dd1   :  { %v5418_v46 = vmul.f32 0.03125, %v5406_v33 }
0x1dd2   :  { %v5403_v55 = vpop.xlane.xlu1 %5402 }
0x1dd3   :  { %v8786_v60 = vsub.f32 %v5386_v11, %v5418_v46  ;;  %v5417_v20 = vmul.f32 0.03125, %v5403_v55 }
0x1dd5   :  { %v8788_v37 = vsub.f32 %v5385_v43, %v5417_v20  ;;  %v5434_v18 = vmul.f32 %v8786_v60, %v8786_v60 }
0x1dd7   :  { %v5452_v58 = vsel %vm1234_vm6, %v5434_v18, 0.0  ;;  %v5433_v29 = vmul.f32 %v8788_v37, %v8788_v37 }
0x1dd8   :  { %5453 = vadd.xlane.f32.xlu0 %v5452_v58 }
0x1dd9   :  { %v5449_v26 = vsel %vm1234_vm6, %v5433_v29, 0.0 }
0x1dda   :  { %5450 = vadd.xlane.f32.xlu1 %v5449_v26 }
0x1ddb   :  { %v5412_v27 = vpop.xlane.xlu0 %5411 }
0x1ddc   :  { %v5420_v23 = vmul.f32 0.03125, %v5412_v27 }
0x1ddd   :  { %v5409_v12 = vpop.xlane.xlu1 %5408 }
0x1dde   :  { %v8796_v40 = vsub.f32 %v5388_v34, %v5420_v23  ;;  %v5419_v28 = vmul.f32 0.03125, %v5409_v12 }
0x1ddf   :  { %v5442_v39 = vpop.xlane.xlu0 %5441 }
0x1de0   :  { %v8798_v30 = vsub.f32 %v5387_v7, %v5419_v28  ;;  %v5462_v44 = vmul.f32 0.03125, %v5442_v39  ;;  %v5436_v59 = vmul.f32 %v8796_v40, %v8796_v40 }
0x1de1   :  { %v5439_v62 = vpop.xlane.xlu1 %5438 }
0x1de2   :  { %v5470_v57 = vadd.f32 1e-06, %v5462_v44  ;;  %v5461_v10 = vmul.f32 0.03125, %v5439_v62  ;;  %v5458_v15 = vsel %vm1234_vm6, %v5436_v59, 0.0  ;;  %v5435_v54 = vmul.f32 %v8798_v30, %v8798_v30 }
0x1de3   :  { %5459 = vadd.xlane.f32.xlu0 %v5458_v15  ;;  %v5448_v19 = vpop.xlane.xlu0 %5447 }
0x1de4   :  { %6804 = vrsqrt.f32 %v5470_v57  ;;  %v5469_v52 = vadd.f32 1e-06, %v5461_v10  ;;  %v5464_v31 = vmul.f32 0.03125, %v5448_v19  ;;  %v5455_v35 = vsel %vm1234_vm6, %v5435_v54, 0.0 }
0x1de5   :  { %5456 = vadd.xlane.f32.xlu1 %v5455_v35  ;;  %v5445_v11 = vpop.xlane.xlu1 %5444 }
0x1de6   :  { %6806 = vrsqrt.f32 %v5469_v52  ;;  %v5472_v56 = vadd.f32 1e-06, %v5464_v31  ;;  %v5463_v43 = vmul.f32 0.03125, %v5445_v11 }
0x1de8   :  { %6808 = vrsqrt.f32 %v5472_v56  ;;  %v5471_v16 = vadd.f32 1e-06, %v5463_v43 }
0x1dea   :  { %6810 = vrsqrt.f32 %v5471_v16 }
0x1df1   :  { %v6805_v0 = vpop.eup %6804 }
0x1df2   :  { %v5486_v36 = vmul.f32 %v6805_v0, %v8764_v8 }
0x1df3   :  { %v6807_v61 = vpop.eup %6806 }
0x1df4   :  { %v5498_v2 = vmul.f32 %v5496_v24, %v5486_v36  ;;  %v5485_v34 = vmul.f32 %v6807_v61, %v8767_v42 }
0x1df5   :  { %v6809_v25 = vpop.eup %6808 }
0x1df6   :  { %v5510_v4 = vadd.f32 %v8129_v51, %v5498_v2  ;;  %v5497_v63 = vmul.f32 %v5496_v24, %v5485_v34  ;;  %v5488_v7 = vmul.f32 %v6809_v25, %v8772_v48 }
0x1df7   :  { %v6811_v13 = vpop.eup %6810 }
0x1df8   :  { %5518 = vst.msk [vmem:[#allocation14 + $0x8] sm:$0xff] %vm1234_vm6, %v5510_v4  ;;  %v5509_v3 = vadd.f32 %v8129_v51, %v5497_v63  ;;  %v5500_v1 = vmul.f32 %v5496_v24, %v5488_v7  ;;  %v5487_v32 = vmul.f32 %v6811_v13, %v8777_v5 }
0x1dfa   :  { %5517 = vst.msk [vmem:[#allocation14] sm:$0xff] %vm1234_vm6, %v5509_v3  ;;  %v5512_v50 = vadd.f32 %v8129_v51, %v5500_v1  ;;  %v5499_v8 = vmul.f32 %v5496_v24, %v5487_v32 }
0x1dfc   :  { %5520 = vst.msk [vmem:[#allocation14 + $0x18] sm:$0xff] %vm1234_vm6, %v5512_v50  ;;  %v5511_v42 = vadd.f32 %v8129_v51, %v5499_v8 }
0x1dfe   :  { %5519 = vst.msk [vmem:[#allocation14 + $0x10] sm:$0xff] %vm1234_vm6, %v5511_v42 }
0x1e61   :  { %v5454_v49 = vpop.xlane.xlu0 %5453 }
0x1e62   :  { %v5466_v6 = vmul.f32 0.03125, %v5454_v49 }
0x1e63   :  { %v5451_v38 = vpop.xlane.xlu1 %5450 }
0x1e64   :  { %v5474_v21 = vadd.f32 1e-06, %v5466_v6  ;;  %v5465_v48 = vmul.f32 0.03125, %v5451_v38 }
0x1e66   :  { %6812 = vrsqrt.f32 %v5474_v21  ;;  %v5473_v47 = vadd.f32 1e-06, %v5465_v48 }
0x1e68   :  { %6814 = vrsqrt.f32 %v5473_v47 }
0x1e6c   :  { %v5460_v9 = vpop.xlane.xlu0 %5459 }
0x1e6d   :  { %v5468_v41 = vmul.f32 0.03125, %v5460_v9 }
0x1e6e   :  { %v5457_v5 = vpop.xlane.xlu1 %5456 }
0x1e6f   :  { %v5476_v14 = vadd.f32 1e-06, %v5468_v41  ;;  %v5467_v45 = vmul.f32 0.03125, %v5457_v5 }
0x1e71   :  { %6816 = vrsqrt.f32 %v5476_v14  ;;  %v5475_v53 = vadd.f32 1e-06, %v5467_v45 }
0x1e73   :  { %v6813_v17 = vpop.eup %6812  ;;  %6818 = vrsqrt.f32 %v5475_v53 }
0x1e74   :  { %v5490_v22 = vmul.f32 %v6813_v17, %v8786_v60 }
0x1e75   :  { %v6815_v33 = vpop.eup %6814 }
0x1e76   :  { %v5502_v46 = vmul.f32 %v5496_v24, %v5490_v22  ;;  %v5489_v55 = vmul.f32 %v6815_v33, %v8788_v37 }
0x1e78   :  { %v5514_v20 = vadd.f32 %v8129_v51, %v5502_v46  ;;  %v5501_v18 = vmul.f32 %v5496_v24, %v5489_v55 }
0x1e7a   :  { %5523 = vst.msk [vmem:[#allocation14 + $0x28] sm:$0xff] %vm1234_vm6, %v5514_v20  ;;  %v5513_v58 = vadd.f32 %v8129_v51, %v5501_v18 }
0x1e7c   :  { %5522 = vst.msk [vmem:[#allocation14 + $0x20] sm:$0xff] %vm1234_vm6, %v5513_v58 }
0x1e7e   :  { %v6817_v29 = vpop.eup %6816 }
0x1e7f   :  { %v5492_v26 = vmul.f32 %v6817_v29, %v8796_v40 }
0x1e80   :  { %v6819_v27 = vpop.eup %6818 }
0x1e81   :  { %v5504_v23 = vmul.f32 %v5496_v24, %v5492_v26  ;;  %v5491_v60 = vmul.f32 %v6819_v27, %v8798_v30 }
0x1e83   :  { %v5516_v37 = vadd.f32 %v8129_v51, %v5504_v23  ;;  %v5503_v12 = vmul.f32 %v5496_v24, %v5491_v60 }
0x1e85   :  { %5525 = vst.msk [vmem:[#allocation14 + $0x38] sm:$0xff] %vm1234_vm6, %v5516_v37  ;;  %v5515_v28 = vadd.f32 %v8129_v51, %v5503_v12 }
0x1e87   :  { %5524 = vst.msk [vmem:[#allocation14 + $0x30] sm:$0xff] %vm1234_vm6, %v5515_v28 }
0x1e88   :  { %6982 = shalt.err (!%p6979_p11)
}
0x1e89   :  { %5537 = dma.vmem_to_hbm [thread:$0]  %s5532_s12, 1024, %s8851_s13, [#allocation4], %s7002_s28, %s7002_s28, %s7003_s29  }
0x1e8a   :  { %6999 = dma.done.wait [#allocation4], 1024  }
0x1e8b   :  { %7000 = vsyncadd [#allocation4], 4294966272 }
0x1e8c   :  { %5541 = vsyncpa [#allocation3], 1 }
0x1e8d   :  { %5542 = vsyncpa [#allocation6], 1 }
0x1e8e   :  { %5543 = vsyncpa [#allocation9], 1 }
0x1e8f   :  { %5544 = vsyncpa [#allocation12], 1 }
0x1e90   :  { %5545 = vsyncpa [#allocation4], 1 }

</bundles_post_ra>
